<compile_context>
chip_gen: v5e
topology: v5e:2x2
jax: 0.10.0
libtpu: 0.0.40
codegen_flags: <defaults>
</compile_context>

<pallas_src>
import jax
import jax.numpy as jnp
from jax.experimental import pallas as pl
from jax.experimental.pallas import tpu as pltpu

# ------------------------- scaled-down ViT config -------------------------
BATCH = 2
CHANNELS = 3
IMG = 32            # vit_base uses 224; scaled down
PATCH = 16          # patch16
EMBED = 32          # vit_base uses 768; scaled down (backbone.embed_dim)
DEPTH = 2           # vit_base uses 12
HEADS = 4
HEAD_DIM = EMBED // HEADS
MLP_HIDDEN = 4 * EMBED          # 128 (lane-dense)
NUM_CLASSES = 14
CLS_PAD = 128                   # lane-dense classifier width
LN_EPS = 1e-6
LORA_R = 4
LORA_ALPHA = 8
LORA_SCALE = LORA_ALPHA / LORA_R
ATTN_SCALE = HEAD_DIM ** -0.5

NUM_PATCHES = (IMG // PATCH) * (IMG // PATCH)   # 4
NUM_TOKENS = NUM_PATCHES + 1                    # 5 (cls + patches)
N_PAD = 8                                       # tokens padded to sublane multiple
ROWS = BATCH * N_PAD                            # 16
PATCH_DIM = CHANNELS * PATCH * PATCH            # 768
NEG_INF = -1e9


# ------------------------------ fused kernel ------------------------------

def _layernorm(x, g, b):
    mu = jnp.mean(x, axis=-1, keepdims=True)
    var = jnp.mean(jnp.square(x - mu), axis=-1, keepdims=True)
    return (x - mu) * jax.lax.rsqrt(var + LN_EPS) * g + b


def _split_heads(t):
    # (B*N_PAD, EMBED) -> (B*HEADS, N_PAD, HEAD_DIM)
    t = t.reshape(BATCH, N_PAD, HEADS, HEAD_DIM)
    t = jnp.transpose(t, (0, 2, 1, 3))
    return t.reshape(BATCH * HEADS, N_PAD, HEAD_DIM)


def _merge_heads(t):
    # (B*HEADS, N_PAD, HEAD_DIM) -> (B*N_PAD, EMBED)
    t = t.reshape(BATCH, HEADS, N_PAD, HEAD_DIM)
    t = jnp.transpose(t, (0, 2, 1, 3))
    return t.reshape(BATCH * N_PAD, EMBED)


def _fused_vit_kernel(patches_ref, add_ref, patch_w_ref,
                      qkv_w_ref, proj_w_ref, fc1_w_ref, fc2_w_ref,
                      vec_ref, head_ref, out_ref):
    # ---- patch embedding: conv(16x16, s=16) == matmul on flattened patches ----
    # patches are already laid out (B*N_PAD, PATCH_DIM) with zero rows for the
    # cls/pad slots; add_ref carries cls_token + pos_embed + patch bias per row.
    tok = (jnp.dot(patches_ref[...], patch_w_ref[...],
                   preferred_element_type=jnp.float32) + add_ref[...])   # (16, 32)

    # additive attention bias masking pad key columns (hoisted out of depth loop)
    key_idx = jax.lax.broadcasted_iota(
        jnp.int32, (BATCH * HEADS, N_PAD, N_PAD), 2)
    attn_bias = jnp.where(key_idx < NUM_TOKENS, 0.0, NEG_INF).astype(jnp.float32)

    # ---- transformer blocks (statically unrolled; DEPTH=2 toy size) ----
    # TODO(synk): for DEPTH > ~2 / real vit_base dims, move depth to a grid axis
    # ("arbitrary") with per-layer weight streaming instead of static unroll.
    for d in range(DEPTH):
        vec = vec_ref[d]                                  # (8, 128) small-param slab
        ln1_g = vec[0:1, :EMBED]
        ln1_b = vec[1:2, :EMBED]
        ln2_g = vec[2:3, :EMBED]
        ln2_b = vec[3:4, :EMBED]
        proj_b = vec[4:5, :EMBED]
        fc2_b = vec[5:6, :EMBED]
        qkv_b = vec[6:7, :3 * EMBED]
        fc1_b = vec[7:8, :MLP_HIDDEN]

        # --- attention sub-block (LoRA already folded into qkv_w_ref) ---
        h = _layernorm(tok, ln1_g, ln1_b)
        qkv = (jnp.dot(h, qkv_w_ref[d], preferred_element_type=jnp.float32)
               + qkv_b)                                    # (16, 96)
        q = _split_heads(qkv[:, 0 * EMBED:1 * EMBED])
        k = _split_heads(qkv[:, 1 * EMBED:2 * EMBED])
        v = _split_heads(qkv[:, 2 * EMBED:3 * EMBED])

        s = (jnp.einsum('bqd,bkd->bqk', q, k,
                        preferred_element_type=jnp.float32) * ATTN_SCALE
             + attn_bias)                                  # (B*H, N_PAD, N_PAD)
        s = s - jnp.max(s, axis=-1, keepdims=True)
        p = jnp.exp(s)
        p = p * pl.reciprocal(jnp.sum(p, axis=-1, keepdims=True), approx=True)
        o = jnp.einsum('bqk,bkd->bqd', p, v,
                       preferred_element_type=jnp.float32)
        attn = _merge_heads(o)                             # (16, 32)

        tok = tok + (jnp.dot(attn, proj_w_ref[d],
                             preferred_element_type=jnp.float32) + proj_b)

        # --- MLP sub-block ---
        h = _layernorm(tok, ln2_g, ln2_b)
        h = (jnp.dot(h, fc1_w_ref[d], preferred_element_type=jnp.float32)
             + fc1_b)
        # TODO(synk): torch nn.GELU default is exact erf; tanh approximation used.
        h = jax.nn.gelu(h, approximate=True)
        tok = tok + (jnp.dot(h, fc2_w_ref[d],
                             preferred_element_type=jnp.float32) + fc2_b)

    # ---- final norm + classifier head (computed for all rows; wrapper picks
    #      the cls rows 0 / 8 — keeps the output tile fully dense) ----
    hs = head_ref[...]                                     # (40, 128) head slab
    cls_w = hs[0:EMBED, :]                                 # (32, 128)
    cls_b = hs[EMBED:EMBED + 1, :]                         # (1, 128)
    norm_g = hs[EMBED + 1:EMBED + 2, :EMBED]
    norm_b = hs[EMBED + 2:EMBED + 3, :EMBED]

    h = _layernorm(tok, norm_g, norm_b)
    out_ref[...] = (jnp.dot(h, cls_w, preferred_element_type=jnp.float32)
                    + cls_b)                               # (16, 128)


def fused_vit(patches_pad, tok_add, patch_w, qkv_w_eff, proj_w, fc1_w, fc2_w,
              vec_slab, head_slab):
    vmem = lambda: pl.BlockSpec(memory_space=pltpu.MemorySpace.VMEM)
    return pl.pallas_call(
        _fused_vit_kernel,
        out_shape=jax.ShapeDtypeStruct((ROWS, CLS_PAD), jnp.float32),
        in_specs=[vmem() for _ in range(9)],
        out_specs=vmem(),
    )(patches_pad, tok_add, patch_w, qkv_w_eff, proj_w, fc1_w, fc2_w,
      vec_slab, head_slab)


# ------------------------------ model (glue) ------------------------------

def extract_patches(x, p):
    """NCHW -> (B, num_patches, C*p*p) with (c, kh, kw) flattening (conv order)."""
    B, C, H, W = x.shape
    x = x.reshape(B, C, H // p, p, W // p, p)
    x = x.transpose(0, 2, 4, 1, 3, 5)            # (B, Hp, Wp, C, p, p)
    return x.reshape(B, (H // p) * (W // p), C * p * p)


def init_params(key):
    def nrm(k, shape, std=0.02):
        return std * jax.random.normal(k, shape, jnp.float32)

    ks = iter(jax.random.split(key, 16))
    return {
        # patch embedding conv(16x16, stride 16) == linear on flattened patches
        'patch_w': nrm(next(ks), (PATCH_DIM, EMBED)),
        'patch_b': jnp.zeros((EMBED,), jnp.float32),
        'cls_token': nrm(next(ks), (EMBED,)),
        'pos_embed': nrm(next(ks), (NUM_TOKENS, EMBED)),
        'norm_g': jnp.ones((EMBED,), jnp.float32),
        'norm_b': jnp.zeros((EMBED,), jnp.float32),
        'cls_w': nrm(next(ks), (EMBED, NUM_CLASSES)),
        'cls_b': jnp.zeros((NUM_CLASSES,), jnp.float32),
        # per-block params stacked along a leading DEPTH axis
        'ln1_g': jnp.ones((DEPTH, EMBED), jnp.float32),
        'ln1_b': jnp.zeros((DEPTH, EMBED), jnp.float32),
        'qkv_w': nrm(next(ks), (DEPTH, EMBED, 3 * EMBED)),
        'qkv_b': jnp.zeros((DEPTH, 3 * EMBED), jnp.float32),
        # LoRA adapter on qkv (nonzero B so the LoRA path is exercised)
        'lora_a': nrm(next(ks), (DEPTH, EMBED, LORA_R), std=1.0 / LORA_R),
        'lora_b': nrm(next(ks), (DEPTH, LORA_R, 3 * EMBED), std=0.02),
        'proj_w': nrm(next(ks), (DEPTH, EMBED, EMBED)),
        'proj_b': jnp.zeros((DEPTH, EMBED), jnp.float32),
        'ln2_g': jnp.ones((DEPTH, EMBED), jnp.float32),
        'ln2_b': jnp.zeros((DEPTH, EMBED), jnp.float32),
        'fc1_w': nrm(next(ks), (DEPTH, EMBED, MLP_HIDDEN)),
        'fc1_b': jnp.zeros((DEPTH, MLP_HIDDEN), jnp.float32),
        'fc2_w': nrm(next(ks), (DEPTH, MLP_HIDDEN, EMBED)),
        'fc2_b': jnp.zeros((DEPTH, EMBED), jnp.float32),
    }


@jax.jit
def fine_tuning_vit_forward(params, x):
    """forward(x) = classifier(backbone(x)); backbone returns cls-token features."""
    # --- patches laid out in the padded token grid (zero rows at cls/pad slots) ---
    patches = extract_patches(x, PATCH)                       # (B, NP, 768)
    pp = jnp.zeros((BATCH, N_PAD, PATCH_DIM), jnp.float32)
    pp = pp.at[:, 1:1 + NUM_PATCHES, :].set(patches)
    pp = pp.reshape(ROWS, PATCH_DIM)

    # --- per-row additive slab: cls_token / patch bias + pos_embed (pad rows 0) ---
    add = jnp.zeros((BATCH, N_PAD, EMBED), jnp.float32)
    add = add.at[:, 0, :].set(params['cls_token'] + params['pos_embed'][0])
    add = add.at[:, 1:1 + NUM_PATCHES, :].set(
        params['patch_b'][None, :] + params['pos_embed'][1:NUM_TOKENS])
    add = add.reshape(ROWS, EMBED)

    # --- fold LoRA into the qkv weight (eval-mode merge: W' = W + scale*A@B) ---
    qkv_w_eff = params['qkv_w'] + LORA_SCALE * jnp.einsum(
        'dkr,drn->dkn', params['lora_a'], params['lora_b'])

    # --- pack per-depth small vectors into one (DEPTH, 8, 128) DMA slab ---
    vec = jnp.zeros((DEPTH, 8, 128), jnp.float32)
    vec = vec.at[:, 0, :EMBED].set(params['ln1_g'])
    vec = vec.at[:, 1, :EMBED].set(params['ln1_b'])
    vec = vec.at[:, 2, :EMBED].set(params['ln2_g'])
    vec = vec.at[:, 3, :EMBED].set(params['ln2_b'])
    vec = vec.at[:, 4, :EMBED].set(params['proj_b'])
    vec = vec.at[:, 5, :EMBED].set(params['fc2_b'])
    vec = vec.at[:, 6, :3 * EMBED].set(params['qkv_b'])
    vec = vec.at[:, 7, :MLP_HIDDEN].set(params['fc1_b'])

    # --- pack head/final-norm params into one (40, 128) slab (lane-dense head) ---
    head = jnp.zeros((EMBED + 8, CLS_PAD), jnp.float32)
    head = head.at[:EMBED, :NUM_CLASSES].set(params['cls_w'])
    head = head.at[EMBED, :NUM_CLASSES].set(params['cls_b'])
    head = head.at[EMBED + 1, :EMBED].set(params['norm_g'])
    head = head.at[EMBED + 2, :EMBED].set(params['norm_b'])

    logits_full = fused_vit(pp, add, params['patch_w'], qkv_w_eff,
                            params['proj_w'], params['fc1_w'], params['fc2_w'],
                            vec, head)                        # (16, 128)
    # cls rows are at aligned offsets 0, 8; slice logits back to NUM_CLASSES.
    return logits_full.reshape(BATCH, N_PAD, CLS_PAD)[:, 0, :NUM_CLASSES]


if __name__ == "__main__":
    root = jax.random.PRNGKey(0)
    k_param, k_x = jax.random.split(root)
    params = init_params(k_param)
    x = jax.random.normal(k_x, (BATCH, CHANNELS, IMG, IMG), jnp.float32)

    logits = fine_tuning_vit_forward(params, x)
    jax.block_until_ready(logits)
    assert logits.shape == (BATCH, NUM_CLASSES)
    assert bool(jnp.all(jnp.isfinite(logits)))
    print("KERNEL_OK")
</pallas_src>

<mosaic_0001>
module attributes {stable_mosaic.version = 11 : i64} {
  func.func @_fused_vit_kernel(%arg0: memref<16x768xf32, #tpu.memory_space<vmem>>, %arg1: memref<16x32xf32, #tpu.memory_space<vmem>>, %arg2: memref<768x32xf32, #tpu.memory_space<vmem>>, %arg3: memref<2x32x96xf32, #tpu.memory_space<vmem>>, %arg4: memref<2x32x32xf32, #tpu.memory_space<vmem>>, %arg5: memref<2x32x128xf32, #tpu.memory_space<vmem>>, %arg6: memref<2x128x32xf32, #tpu.memory_space<vmem>>, %arg7: memref<2x8x128xf32, #tpu.memory_space<vmem>>, %arg8: memref<40x128xf32, #tpu.memory_space<vmem>>, %arg9: memref<16x128xf32, #tpu.memory_space<vmem>>) attributes {dimension_semantics = [], scalar_prefetch = 0 : i64, scratch_operands = 0 : i64, tpu.core_type = #tpu.core_type<tc>} {
    %c0 = arith.constant 0 : index
    %c0_0 = arith.constant 0 : index
    %0 = vector.load %arg0[%c0, %c0_0] : memref<16x768xf32, #tpu.memory_space<vmem>>, vector<16x768xf32>
    %c0_1 = arith.constant 0 : index
    %c0_2 = arith.constant 0 : index
    %1 = vector.load %arg2[%c0_1, %c0_2] : memref<768x32xf32, #tpu.memory_space<vmem>>, vector<768x32xf32>
    %cst = arith.constant dense<0.000000e+00> : vector<16x32xf32>
    %2 = tpu.matmul %0, %1, %cst {dimension_numbers = #tpu.dot_dimension_numbers<[1], [0], [0], [1], [0, 0, 1, 1], [], []>} : vector<16x768xf32>, vector<768x32xf32>, vector<16x32xf32> -> vector<16x32xf32>
    %c0_3 = arith.constant 0 : index
    %c0_4 = arith.constant 0 : index
    %3 = vector.load %arg1[%c0_3, %c0_4] : memref<16x32xf32, #tpu.memory_space<vmem>>, vector<16x32xf32>
    %4 = arith.addf %2, %3 : vector<16x32xf32>
    %5 = tpu.iota {dimensions = array<i32: 2>} : vector<8x8x8xi32>
    %c5_i32 = arith.constant 5 : i32
    %6 = vector.broadcast %c5_i32 : i32 to vector<8x8x8xi32>
    %7 = arith.cmpi slt, %5, %6 : vector<8x8x8xi32>
    %cst_5 = arith.constant 0.000000e+00 : f32
    %cst_6 = arith.constant -1.000000e+09 : f32
    %8 = vector.broadcast %cst_5 : f32 to vector<8x8x8xf32>
    %9 = vector.broadcast %cst_6 : f32 to vector<8x8x8xf32>
    %10 = arith.select %7, %8, %9 : vector<8x8x8xi1>, vector<8x8x8xf32>
    %c0_7 = arith.constant 0 : index
    %c0_8 = arith.constant 0 : index
    %c0_9 = arith.constant 0 : index
    %11 = vector.load %arg7[%c0_7, %c0_8, %c0_9] : memref<2x8x128xf32, #tpu.memory_space<vmem>>, vector<1x8x128xf32>
    %12 = vector.shape_cast %11 : vector<1x8x128xf32> to vector<8x128xf32>
    %13 = vector.extract_strided_slice %12 {offsets = [0, 0], sizes = [1, 32], strides = [1, 1]} : vector<8x128xf32> to vector<1x32xf32>
    %14 = vector.extract_strided_slice %12 {offsets = [1, 0], sizes = [1, 32], strides = [1, 1]} : vector<8x128xf32> to vector<1x32xf32>
    %15 = vector.extract_strided_slice %12 {offsets = [2, 0], sizes = [1, 32], strides = [1, 1]} : vector<8x128xf32> to vector<1x32xf32>
    %16 = vector.extract_strided_slice %12 {offsets = [3, 0], sizes = [1, 32], strides = [1, 1]} : vector<8x128xf32> to vector<1x32xf32>
    %17 = vector.extract_strided_slice %12 {offsets = [4, 0], sizes = [1, 32], strides = [1, 1]} : vector<8x128xf32> to vector<1x32xf32>
    %18 = vector.extract_strided_slice %12 {offsets = [5, 0], sizes = [1, 32], strides = [1, 1]} : vector<8x128xf32> to vector<1x32xf32>
    %19 = vector.extract_strided_slice %12 {offsets = [6, 0], sizes = [1, 96], strides = [1, 1]} : vector<8x128xf32> to vector<1x96xf32>
    %20 = vector.extract_strided_slice %12 {offsets = [7, 0], sizes = [1, 128], strides = [1, 1]} : vector<8x128xf32> to vector<1x128xf32>
    %cst_10 = arith.constant dense<0.000000e+00> : vector<16xf32>
    %21 = vector.multi_reduction <add>, %4, %cst_10 [1] : vector<16x32xf32> to vector<16xf32>
    %22 = vector.shape_cast %21 : vector<16xf32> to vector<16x1xf32>
    %cst_11 = arith.constant 3.200000e+01 : f32
    %23 = vector.broadcast %cst_11 : f32 to vector<16x1xf32>
    %24 = arith.divf %22, %23 : vector<16x1xf32>
    %25 = vector.broadcast %24 : vector<16x1xf32> to vector<16x32xf32>
    %26 = arith.subf %4, %25 : vector<16x32xf32>
    %27 = arith.mulf %26, %26 : vector<16x32xf32>
    %cst_12 = arith.constant dense<0.000000e+00> : vector<16xf32>
    %28 = vector.multi_reduction <add>, %27, %cst_12 [1] : vector<16x32xf32> to vector<16xf32>
    %29 = vector.shape_cast %28 : vector<16xf32> to vector<16x1xf32>
    %cst_13 = arith.constant 3.200000e+01 : f32
    %30 = vector.broadcast %cst_13 : f32 to vector<16x1xf32>
    %31 = arith.divf %29, %30 : vector<16x1xf32>
    %32 = vector.broadcast %24 : vector<16x1xf32> to vector<16x32xf32>
    %33 = arith.subf %4, %32 : vector<16x32xf32>
    %cst_14 = arith.constant 9.99999997E-7 : f32
    %34 = vector.broadcast %cst_14 : f32 to vector<16x1xf32>
    %35 = arith.addf %31, %34 : vector<16x1xf32>
    %36 = math.rsqrt %35 : vector<16x1xf32>
    %37 = vector.broadcast %36 : vector<16x1xf32> to vector<16x32xf32>
    %38 = arith.mulf %33, %37 : vector<16x32xf32>
    %39 = vector.broadcast %13 : vector<1x32xf32> to vector<16x32xf32>
    %40 = arith.mulf %38, %39 : vector<16x32xf32>
    %41 = vector.broadcast %14 : vector<1x32xf32> to vector<16x32xf32>
    %42 = arith.addf %40, %41 : vector<16x32xf32>
    %c0_15 = arith.constant 0 : index
    %c0_16 = arith.constant 0 : index
    %c0_17 = arith.constant 0 : index
    %43 = vector.load %arg3[%c0_15, %c0_16, %c0_17] : memref<2x32x96xf32, #tpu.memory_space<vmem>>, vector<1x32x96xf32>
    %44 = vector.shape_cast %43 : vector<1x32x96xf32> to vector<32x96xf32>
    %cst_18 = arith.constant dense<0.000000e+00> : vector<16x96xf32>
    %45 = tpu.matmul %42, %44, %cst_18 {dimension_numbers = #tpu.dot_dimension_numbers<[1], [0], [0], [1], [0, 0, 1, 1], [], []>} : vector<16x32xf32>, vector<32x96xf32>, vector<16x96xf32> -> vector<16x96xf32>
    %46 = vector.broadcast %19 : vector<1x96xf32> to vector<16x96xf32>
    %47 = arith.addf %45, %46 : vector<16x96xf32>
    %48 = vector.extract_strided_slice %47 {offsets = [0, 0], sizes = [16, 32], strides = [1, 1]} : vector<16x96xf32> to vector<16x32xf32>
    %49 = vector.shape_cast %48 : vector<16x32xf32> to vector<2x8x4x8xf32>
    %50 = tpu.transpose %49, [0, 2, 1, 3] : vector<2x8x4x8xf32> -> vector<2x4x8x8xf32>
    %51 = vector.shape_cast %50 : vector<2x4x8x8xf32> to vector<8x8x8xf32>
    %52 = vector.extract_strided_slice %47 {offsets = [0, 32], sizes = [16, 32], strides = [1, 1]} : vector<16x96xf32> to vector<16x32xf32>
    %53 = vector.shape_cast %52 : vector<16x32xf32> to vector<2x8x4x8xf32>
    %54 = tpu.transpose %53, [0, 2, 1, 3] : vector<2x8x4x8xf32> -> vector<2x4x8x8xf32>
    %55 = vector.shape_cast %54 : vector<2x4x8x8xf32> to vector<8x8x8xf32>
    %56 = vector.extract_strided_slice %47 {offsets = [0, 64], sizes = [16, 32], strides = [1, 1]} : vector<16x96xf32> to vector<16x32xf32>
    %57 = vector.shape_cast %56 : vector<16x32xf32> to vector<2x8x4x8xf32>
    %58 = tpu.transpose %57, [0, 2, 1, 3] : vector<2x8x4x8xf32> -> vector<2x4x8x8xf32>
    %59 = vector.shape_cast %58 : vector<2x4x8x8xf32> to vector<8x8x8xf32>
    "tpu.trace_start"() <{level = 10 : i32, message = "bqd,bkd->bqk"}> : () -> ()
    %cst_19 = arith.constant dense<0.000000e+00> : vector<8x8x8xf32>
    %60 = tpu.matmul %51, %55, %cst_19 {dimension_numbers = #tpu.dot_dimension_numbers<[2], [2], [1], [1], [0, 0, 0, 1, 1, 1], [0], [0]>} : vector<8x8x8xf32>, vector<8x8x8xf32>, vector<8x8x8xf32> -> vector<8x8x8xf32>
    "tpu.trace_stop"() : () -> ()
    %cst_20 = arith.constant 0.353553385 : f32
    %61 = vector.broadcast %cst_20 : f32 to vector<8x8x8xf32>
    %62 = arith.mulf %60, %61 : vector<8x8x8xf32>
    %63 = arith.addf %62, %10 : vector<8x8x8xf32>
    %cst_21 = arith.constant dense<0xFF800000> : vector<8x8xf32>
    %64 = vector.multi_reduction <maximumf>, %63, %cst_21 [2] : vector<8x8x8xf32> to vector<8x8xf32>
    %65 = vector.shape_cast %64 : vector<8x8xf32> to vector<8x8x1xf32>
    %66 = vector.broadcast %65 : vector<8x8x1xf32> to vector<8x8x8xf32>
    %67 = arith.subf %63, %66 : vector<8x8x8xf32>
    %68 = math.exp %67 : vector<8x8x8xf32>
    %cst_22 = arith.constant dense<0.000000e+00> : vector<8x8xf32>
    %69 = vector.multi_reduction <add>, %68, %cst_22 [2] : vector<8x8x8xf32> to vector<8x8xf32>
    %70 = vector.shape_cast %69 : vector<8x8xf32> to vector<8x8x1xf32>
    %71 = tpu.reciprocal %70 {approx = true} : vector<8x8x1xf32> -> vector<8x8x1xf32>
    %72 = vector.broadcast %71 : vector<8x8x1xf32> to vector<8x8x8xf32>
    %73 = arith.mulf %68, %72 : vector<8x8x8xf32>
    "tpu.trace_start"() <{level = 10 : i32, message = "bqk,bkd->bqd"}> : () -> ()
    %cst_23 = arith.constant dense<0.000000e+00> : vector<8x8x8xf32>
    %74 = tpu.matmul %73, %59, %cst_23 {dimension_numbers = #tpu.dot_dimension_numbers<[2], [1], [1], [2], [0, 0, 0, 1, 1, 2], [0], [0]>} : vector<8x8x8xf32>, vector<8x8x8xf32>, vector<8x8x8xf32> -> vector<8x8x8xf32>
    "tpu.trace_stop"() : () -> ()
    %75 = vector.shape_cast %74 : vector<8x8x8xf32> to vector<2x4x8x8xf32>
    %76 = tpu.transpose %75, [0, 2, 1, 3] : vector<2x4x8x8xf32> -> vector<2x8x4x8xf32>
    %77 = vector.shape_cast %76 : vector<2x8x4x8xf32> to vector<16x32xf32>
    %c0_24 = arith.constant 0 : index
    %c0_25 = arith.constant 0 : index
    %c0_26 = arith.constant 0 : index
    %78 = vector.load %arg4[%c0_24, %c0_25, %c0_26] : memref<2x32x32xf32, #tpu.memory_space<vmem>>, vector<1x32x32xf32>
    %79 = vector.shape_cast %78 : vector<1x32x32xf32> to vector<32x32xf32>
    %cst_27 = arith.constant dense<0.000000e+00> : vector<16x32xf32>
    %80 = tpu.matmul %77, %79, %cst_27 {dimension_numbers = #tpu.dot_dimension_numbers<[1], [0], [0], [1], [0, 0, 1, 1], [], []>} : vector<16x32xf32>, vector<32x32xf32>, vector<16x32xf32> -> vector<16x32xf32>
    %81 = vector.broadcast %17 : vector<1x32xf32> to vector<16x32xf32>
    %82 = arith.addf %80, %81 : vector<16x32xf32>
    %83 = arith.addf %4, %82 : vector<16x32xf32>
    %cst_28 = arith.constant dense<0.000000e+00> : vector<16xf32>
    %84 = vector.multi_reduction <add>, %83, %cst_28 [1] : vector<16x32xf32> to vector<16xf32>
    %85 = vector.shape_cast %84 : vector<16xf32> to vector<16x1xf32>
    %cst_29 = arith.constant 3.200000e+01 : f32
    %86 = vector.broadcast %cst_29 : f32 to vector<16x1xf32>
    %87 = arith.divf %85, %86 : vector<16x1xf32>
    %88 = vector.broadcast %87 : vector<16x1xf32> to vector<16x32xf32>
    %89 = arith.subf %83, %88 : vector<16x32xf32>
    %90 = arith.mulf %89, %89 : vector<16x32xf32>
    %cst_30 = arith.constant dense<0.000000e+00> : vector<16xf32>
    %91 = vector.multi_reduction <add>, %90, %cst_30 [1] : vector<16x32xf32> to vector<16xf32>
    %92 = vector.shape_cast %91 : vector<16xf32> to vector<16x1xf32>
    %cst_31 = arith.constant 3.200000e+01 : f32
    %93 = vector.broadcast %cst_31 : f32 to vector<16x1xf32>
    %94 = arith.divf %92, %93 : vector<16x1xf32>
    %95 = vector.broadcast %87 : vector<16x1xf32> to vector<16x32xf32>
    %96 = arith.subf %83, %95 : vector<16x32xf32>
    %cst_32 = arith.constant 9.99999997E-7 : f32
    %97 = vector.broadcast %cst_32 : f32 to vector<16x1xf32>
    %98 = arith.addf %94, %97 : vector<16x1xf32>
    %99 = math.rsqrt %98 : vector<16x1xf32>
    %100 = vector.broadcast %99 : vector<16x1xf32> to vector<16x32xf32>
    %101 = arith.mulf %96, %100 : vector<16x32xf32>
    %102 = vector.broadcast %15 : vector<1x32xf32> to vector<16x32xf32>
    %103 = arith.mulf %101, %102 : vector<16x32xf32>
    %104 = vector.broadcast %16 : vector<1x32xf32> to vector<16x32xf32>
    %105 = arith.addf %103, %104 : vector<16x32xf32>
    %c0_33 = arith.constant 0 : index
    %c0_34 = arith.constant 0 : index
    %c0_35 = arith.constant 0 : index
    %106 = vector.load %arg5[%c0_33, %c0_34, %c0_35] : memref<2x32x128xf32, #tpu.memory_space<vmem>>, vector<1x32x128xf32>
    %107 = vector.shape_cast %106 : vector<1x32x128xf32> to vector<32x128xf32>
    %cst_36 = arith.constant dense<0.000000e+00> : vector<16x128xf32>
    %108 = tpu.matmul %105, %107, %cst_36 {dimension_numbers = #tpu.dot_dimension_numbers<[1], [0], [0], [1], [0, 0, 1, 1], [], []>} : vector<16x32xf32>, vector<32x128xf32>, vector<16x128xf32> -> vector<16x128xf32>
    %109 = vector.broadcast %20 : vector<1x128xf32> to vector<16x128xf32>
    %110 = arith.addf %108, %109 : vector<16x128xf32>
    %111 = arith.mulf %110, %110 : vector<16x128xf32>
    %112 = arith.mulf %110, %111 : vector<16x128xf32>
    %cst_37 = arith.constant 4.471500e-02 : f32
    %113 = vector.broadcast %cst_37 : f32 to vector<16x128xf32>
    %114 = arith.mulf %113, %112 : vector<16x128xf32>
    %115 = arith.addf %110, %114 : vector<16x128xf32>
    %cst_38 = arith.constant 0.797884583 : f32
    %116 = vector.broadcast %cst_38 : f32 to vector<16x128xf32>
    %117 = arith.mulf %116, %115 : vector<16x128xf32>
    %118 = math.tanh %117 : vector<16x128xf32>
    %cst_39 = arith.constant 1.000000e+00 : f32
    %119 = vector.broadcast %cst_39 : f32 to vector<16x128xf32>
    %120 = arith.addf %119, %118 : vector<16x128xf32>
    %cst_40 = arith.constant 5.000000e-01 : f32
    %121 = vector.broadcast %cst_40 : f32 to vector<16x128xf32>
    %122 = arith.mulf %121, %120 : vector<16x128xf32>
    %123 = arith.mulf %110, %122 : vector<16x128xf32>
    %c0_41 = arith.constant 0 : index
    %c0_42 = arith.constant 0 : index
    %c0_43 = arith.constant 0 : index
    %124 = vector.load %arg6[%c0_41, %c0_42, %c0_43] : memref<2x128x32xf32, #tpu.memory_space<vmem>>, vector<1x128x32xf32>
    %125 = vector.shape_cast %124 : vector<1x128x32xf32> to vector<128x32xf32>
    %cst_44 = arith.constant dense<0.000000e+00> : vector<16x32xf32>
    %126 = tpu.matmul %123, %125, %cst_44 {dimension_numbers = #tpu.dot_dimension_numbers<[1], [0], [0], [1], [0, 0, 1, 1], [], []>} : vector<16x128xf32>, vector<128x32xf32>, vector<16x32xf32> -> vector<16x32xf32>
    %127 = vector.broadcast %18 : vector<1x32xf32> to vector<16x32xf32>
    %128 = arith.addf %126, %127 : vector<16x32xf32>
    %129 = arith.addf %83, %128 : vector<16x32xf32>
    %c1 = arith.constant 1 : index
    %c0_45 = arith.constant 0 : index
    %c0_46 = arith.constant 0 : index
    %130 = vector.load %arg7[%c1, %c0_45, %c0_46] : memref<2x8x128xf32, #tpu.memory_space<vmem>>, vector<1x8x128xf32>
    %131 = vector.shape_cast %130 : vector<1x8x128xf32> to vector<8x128xf32>
    %132 = vector.extract_strided_slice %131 {offsets = [0, 0], sizes = [1, 32], strides = [1, 1]} : vector<8x128xf32> to vector<1x32xf32>
    %133 = vector.extract_strided_slice %131 {offsets = [1, 0], sizes = [1, 32], strides = [1, 1]} : vector<8x128xf32> to vector<1x32xf32>
    %134 = vector.extract_strided_slice %131 {offsets = [2, 0], sizes = [1, 32], strides = [1, 1]} : vector<8x128xf32> to vector<1x32xf32>
    %135 = vector.extract_strided_slice %131 {offsets = [3, 0], sizes = [1, 32], strides = [1, 1]} : vector<8x128xf32> to vector<1x32xf32>
    %136 = vector.extract_strided_slice %131 {offsets = [4, 0], sizes = [1, 32], strides = [1, 1]} : vector<8x128xf32> to vector<1x32xf32>
    %137 = vector.extract_strided_slice %131 {offsets = [5, 0], sizes = [1, 32], strides = [1, 1]} : vector<8x128xf32> to vector<1x32xf32>
    %138 = vector.extract_strided_slice %131 {offsets = [6, 0], sizes = [1, 96], strides = [1, 1]} : vector<8x128xf32> to vector<1x96xf32>
    %139 = vector.extract_strided_slice %131 {offsets = [7, 0], sizes = [1, 128], strides = [1, 1]} : vector<8x128xf32> to vector<1x128xf32>
    %cst_47 = arith.constant dense<0.000000e+00> : vector<16xf32>
    %140 = vector.multi_reduction <add>, %129, %cst_47 [1] : vector<16x32xf32> to vector<16xf32>
    %141 = vector.shape_cast %140 : vector<16xf32> to vector<16x1xf32>
    %cst_48 = arith.constant 3.200000e+01 : f32
    %142 = vector.broadcast %cst_48 : f32 to vector<16x1xf32>
    %143 = arith.divf %141, %142 : vector<16x1xf32>
    %144 = vector.broadcast %143 : vector<16x1xf32> to vector<16x32xf32>
    %145 = arith.subf %129, %144 : vector<16x32xf32>
    %146 = arith.mulf %145, %145 : vector<16x32xf32>
    %cst_49 = arith.constant dense<0.000000e+00> : vector<16xf32>
    %147 = vector.multi_reduction <add>, %146, %cst_49 [1] : vector<16x32xf32> to vector<16xf32>
    %148 = vector.shape_cast %147 : vector<16xf32> to vector<16x1xf32>
    %cst_50 = arith.constant 3.200000e+01 : f32
    %149 = vector.broadcast %cst_50 : f32 to vector<16x1xf32>
    %150 = arith.divf %148, %149 : vector<16x1xf32>
    %151 = vector.broadcast %143 : vector<16x1xf32> to vector<16x32xf32>
    %152 = arith.subf %129, %151 : vector<16x32xf32>
    %cst_51 = arith.constant 9.99999997E-7 : f32
    %153 = vector.broadcast %cst_51 : f32 to vector<16x1xf32>
    %154 = arith.addf %150, %153 : vector<16x1xf32>
    %155 = math.rsqrt %154 : vector<16x1xf32>
    %156 = vector.broadcast %155 : vector<16x1xf32> to vector<16x32xf32>
    %157 = arith.mulf %152, %156 : vector<16x32xf32>
    %158 = vector.broadcast %132 : vector<1x32xf32> to vector<16x32xf32>
    %159 = arith.mulf %157, %158 : vector<16x32xf32>
    %160 = vector.broadcast %133 : vector<1x32xf32> to vector<16x32xf32>
    %161 = arith.addf %159, %160 : vector<16x32xf32>
    %c1_52 = arith.constant 1 : index
    %c0_53 = arith.constant 0 : index
    %c0_54 = arith.constant 0 : index
    %162 = vector.load %arg3[%c1_52, %c0_53, %c0_54] : memref<2x32x96xf32, #tpu.memory_space<vmem>>, vector<1x32x96xf32>
    %163 = vector.shape_cast %162 : vector<1x32x96xf32> to vector<32x96xf32>
    %cst_55 = arith.constant dense<0.000000e+00> : vector<16x96xf32>
    %164 = tpu.matmul %161, %163, %cst_55 {dimension_numbers = #tpu.dot_dimension_numbers<[1], [0], [0], [1], [0, 0, 1, 1], [], []>} : vector<16x32xf32>, vector<32x96xf32>, vector<16x96xf32> -> vector<16x96xf32>
    %165 = vector.broadcast %138 : vector<1x96xf32> to vector<16x96xf32>
    %166 = arith.addf %164, %165 : vector<16x96xf32>
    %167 = vector.extract_strided_slice %166 {offsets = [0, 0], sizes = [16, 32], strides = [1, 1]} : vector<16x96xf32> to vector<16x32xf32>
    %168 = vector.shape_cast %167 : vector<16x32xf32> to vector<2x8x4x8xf32>
    %169 = tpu.transpose %168, [0, 2, 1, 3] : vector<2x8x4x8xf32> -> vector<2x4x8x8xf32>
    %170 = vector.shape_cast %169 : vector<2x4x8x8xf32> to vector<8x8x8xf32>
    %171 = vector.extract_strided_slice %166 {offsets = [0, 32], sizes = [16, 32], strides = [1, 1]} : vector<16x96xf32> to vector<16x32xf32>
    %172 = vector.shape_cast %171 : vector<16x32xf32> to vector<2x8x4x8xf32>
    %173 = tpu.transpose %172, [0, 2, 1, 3] : vector<2x8x4x8xf32> -> vector<2x4x8x8xf32>
    %174 = vector.shape_cast %173 : vector<2x4x8x8xf32> to vector<8x8x8xf32>
    %175 = vector.extract_strided_slice %166 {offsets = [0, 64], sizes = [16, 32], strides = [1, 1]} : vector<16x96xf32> to vector<16x32xf32>
    %176 = vector.shape_cast %175 : vector<16x32xf32> to vector<2x8x4x8xf32>
    %177 = tpu.transpose %176, [0, 2, 1, 3] : vector<2x8x4x8xf32> -> vector<2x4x8x8xf32>
    %178 = vector.shape_cast %177 : vector<2x4x8x8xf32> to vector<8x8x8xf32>
    "tpu.trace_start"() <{level = 10 : i32, message = "bqd,bkd->bqk"}> : () -> ()
    %cst_56 = arith.constant dense<0.000000e+00> : vector<8x8x8xf32>
    %179 = tpu.matmul %170, %174, %cst_56 {dimension_numbers = #tpu.dot_dimension_numbers<[2], [2], [1], [1], [0, 0, 0, 1, 1, 1], [0], [0]>} : vector<8x8x8xf32>, vector<8x8x8xf32>, vector<8x8x8xf32> -> vector<8x8x8xf32>
    "tpu.trace_stop"() : () -> ()
    %cst_57 = arith.constant 0.353553385 : f32
    %180 = vector.broadcast %cst_57 : f32 to vector<8x8x8xf32>
    %181 = arith.mulf %179, %180 : vector<8x8x8xf32>
    %182 = arith.addf %181, %10 : vector<8x8x8xf32>
    %cst_58 = arith.constant dense<0xFF800000> : vector<8x8xf32>
    %183 = vector.multi_reduction <maximumf>, %182, %cst_58 [2] : vector<8x8x8xf32> to vector<8x8xf32>
    %184 = vector.shape_cast %183 : vector<8x8xf32> to vector<8x8x1xf32>
    %185 = vector.broadcast %184 : vector<8x8x1xf32> to vector<8x8x8xf32>
    %186 = arith.subf %182, %185 : vector<8x8x8xf32>
    %187 = math.exp %186 : vector<8x8x8xf32>
    %cst_59 = arith.constant dense<0.000000e+00> : vector<8x8xf32>
    %188 = vector.multi_reduction <add>, %187, %cst_59 [2] : vector<8x8x8xf32> to vector<8x8xf32>
    %189 = vector.shape_cast %188 : vector<8x8xf32> to vector<8x8x1xf32>
    %190 = tpu.reciprocal %189 {approx = true} : vector<8x8x1xf32> -> vector<8x8x1xf32>
    %191 = vector.broadcast %190 : vector<8x8x1xf32> to vector<8x8x8xf32>
    %192 = arith.mulf %187, %191 : vector<8x8x8xf32>
    "tpu.trace_start"() <{level = 10 : i32, message = "bqk,bkd->bqd"}> : () -> ()
    %cst_60 = arith.constant dense<0.000000e+00> : vector<8x8x8xf32>
    %193 = tpu.matmul %192, %178, %cst_60 {dimension_numbers = #tpu.dot_dimension_numbers<[2], [1], [1], [2], [0, 0, 0, 1, 1, 2], [0], [0]>} : vector<8x8x8xf32>, vector<8x8x8xf32>, vector<8x8x8xf32> -> vector<8x8x8xf32>
    "tpu.trace_stop"() : () -> ()
    %194 = vector.shape_cast %193 : vector<8x8x8xf32> to vector<2x4x8x8xf32>
    %195 = tpu.transpose %194, [0, 2, 1, 3] : vector<2x4x8x8xf32> -> vector<2x8x4x8xf32>
    %196 = vector.shape_cast %195 : vector<2x8x4x8xf32> to vector<16x32xf32>
    %c1_61 = arith.constant 1 : index
    %c0_62 = arith.constant 0 : index
    %c0_63 = arith.constant 0 : index
    %197 = vector.load %arg4[%c1_61, %c0_62, %c0_63] : memref<2x32x32xf32, #tpu.memory_space<vmem>>, vector<1x32x32xf32>
    %198 = vector.shape_cast %197 : vector<1x32x32xf32> to vector<32x32xf32>
    %cst_64 = arith.constant dense<0.000000e+00> : vector<16x32xf32>
    %199 = tpu.matmul %196, %198, %cst_64 {dimension_numbers = #tpu.dot_dimension_numbers<[1], [0], [0], [1], [0, 0, 1, 1], [], []>} : vector<16x32xf32>, vector<32x32xf32>, vector<16x32xf32> -> vector<16x32xf32>
    %200 = vector.broadcast %136 : vector<1x32xf32> to vector<16x32xf32>
    %201 = arith.addf %199, %200 : vector<16x32xf32>
    %202 = arith.addf %129, %201 : vector<16x32xf32>
    %cst_65 = arith.constant dense<0.000000e+00> : vector<16xf32>
    %203 = vector.multi_reduction <add>, %202, %cst_65 [1] : vector<16x32xf32> to vector<16xf32>
    %204 = vector.shape_cast %203 : vector<16xf32> to vector<16x1xf32>
    %cst_66 = arith.constant 3.200000e+01 : f32
    %205 = vector.broadcast %cst_66 : f32 to vector<16x1xf32>
    %206 = arith.divf %204, %205 : vector<16x1xf32>
    %207 = vector.broadcast %206 : vector<16x1xf32> to vector<16x32xf32>
    %208 = arith.subf %202, %207 : vector<16x32xf32>
    %209 = arith.mulf %208, %208 : vector<16x32xf32>
    %cst_67 = arith.constant dense<0.000000e+00> : vector<16xf32>
    %210 = vector.multi_reduction <add>, %209, %cst_67 [1] : vector<16x32xf32> to vector<16xf32>
    %211 = vector.shape_cast %210 : vector<16xf32> to vector<16x1xf32>
    %cst_68 = arith.constant 3.200000e+01 : f32
    %212 = vector.broadcast %cst_68 : f32 to vector<16x1xf32>
    %213 = arith.divf %211, %212 : vector<16x1xf32>
    %214 = vector.broadcast %206 : vector<16x1xf32> to vector<16x32xf32>
    %215 = arith.subf %202, %214 : vector<16x32xf32>
    %cst_69 = arith.constant 9.99999997E-7 : f32
    %216 = vector.broadcast %cst_69 : f32 to vector<16x1xf32>
    %217 = arith.addf %213, %216 : vector<16x1xf32>
    %218 = math.rsqrt %217 : vector<16x1xf32>
    %219 = vector.broadcast %218 : vector<16x1xf32> to vector<16x32xf32>
    %220 = arith.mulf %215, %219 : vector<16x32xf32>
    %221 = vector.broadcast %134 : vector<1x32xf32> to vector<16x32xf32>
    %222 = arith.mulf %220, %221 : vector<16x32xf32>
    %223 = vector.broadcast %135 : vector<1x32xf32> to vector<16x32xf32>
    %224 = arith.addf %222, %223 : vector<16x32xf32>
    %c1_70 = arith.constant 1 : index
    %c0_71 = arith.constant 0 : index
    %c0_72 = arith.constant 0 : index
    %225 = vector.load %arg5[%c1_70, %c0_71, %c0_72] : memref<2x32x128xf32, #tpu.memory_space<vmem>>, vector<1x32x128xf32>
    %226 = vector.shape_cast %225 : vector<1x32x128xf32> to vector<32x128xf32>
    %cst_73 = arith.constant dense<0.000000e+00> : vector<16x128xf32>
    %227 = tpu.matmul %224, %226, %cst_73 {dimension_numbers = #tpu.dot_dimension_numbers<[1], [0], [0], [1], [0, 0, 1, 1], [], []>} : vector<16x32xf32>, vector<32x128xf32>, vector<16x128xf32> -> vector<16x128xf32>
    %228 = vector.broadcast %139 : vector<1x128xf32> to vector<16x128xf32>
    %229 = arith.addf %227, %228 : vector<16x128xf32>
    %230 = arith.mulf %229, %229 : vector<16x128xf32>
    %231 = arith.mulf %229, %230 : vector<16x128xf32>
    %cst_74 = arith.constant 4.471500e-02 : f32
    %232 = vector.broadcast %cst_74 : f32 to vector<16x128xf32>
    %233 = arith.mulf %232, %231 : vector<16x128xf32>
    %234 = arith.addf %229, %233 : vector<16x128xf32>
    %cst_75 = arith.constant 0.797884583 : f32
    %235 = vector.broadcast %cst_75 : f32 to vector<16x128xf32>
    %236 = arith.mulf %235, %234 : vector<16x128xf32>
    %237 = math.tanh %236 : vector<16x128xf32>
    %cst_76 = arith.constant 1.000000e+00 : f32
    %238 = vector.broadcast %cst_76 : f32 to vector<16x128xf32>
    %239 = arith.addf %238, %237 : vector<16x128xf32>
    %cst_77 = arith.constant 5.000000e-01 : f32
    %240 = vector.broadcast %cst_77 : f32 to vector<16x128xf32>
    %241 = arith.mulf %240, %239 : vector<16x128xf32>
    %242 = arith.mulf %229, %241 : vector<16x128xf32>
    %c1_78 = arith.constant 1 : index
    %c0_79 = arith.constant 0 : index
    %c0_80 = arith.constant 0 : index
    %243 = vector.load %arg6[%c1_78, %c0_79, %c0_80] : memref<2x128x32xf32, #tpu.memory_space<vmem>>, vector<1x128x32xf32>
    %244 = vector.shape_cast %243 : vector<1x128x32xf32> to vector<128x32xf32>
    %cst_81 = arith.constant dense<0.000000e+00> : vector<16x32xf32>
    %245 = tpu.matmul %242, %244, %cst_81 {dimension_numbers = #tpu.dot_dimension_numbers<[1], [0], [0], [1], [0, 0, 1, 1], [], []>} : vector<16x128xf32>, vector<128x32xf32>, vector<16x32xf32> -> vector<16x32xf32>
    %246 = vector.broadcast %137 : vector<1x32xf32> to vector<16x32xf32>
    %247 = arith.addf %245, %246 : vector<16x32xf32>
    %248 = arith.addf %202, %247 : vector<16x32xf32>
    %c0_82 = arith.constant 0 : index
    %c0_83 = arith.constant 0 : index
    %249 = vector.load %arg8[%c0_82, %c0_83] : memref<40x128xf32, #tpu.memory_space<vmem>>, vector<40x128xf32>
    %250 = vector.extract_strided_slice %249 {offsets = [0, 0], sizes = [32, 128], strides = [1, 1]} : vector<40x128xf32> to vector<32x128xf32>
    %251 = vector.extract_strided_slice %249 {offsets = [32, 0], sizes = [1, 128], strides = [1, 1]} : vector<40x128xf32> to vector<1x128xf32>
    %252 = vector.extract_strided_slice %249 {offsets = [33, 0], sizes = [1, 32], strides = [1, 1]} : vector<40x128xf32> to vector<1x32xf32>
    %253 = vector.extract_strided_slice %249 {offsets = [34, 0], sizes = [1, 32], strides = [1, 1]} : vector<40x128xf32> to vector<1x32xf32>
    %cst_84 = arith.constant dense<0.000000e+00> : vector<16xf32>
    %254 = vector.multi_reduction <add>, %248, %cst_84 [1] : vector<16x32xf32> to vector<16xf32>
    %255 = vector.shape_cast %254 : vector<16xf32> to vector<16x1xf32>
    %cst_85 = arith.constant 3.200000e+01 : f32
    %256 = vector.broadcast %cst_85 : f32 to vector<16x1xf32>
    %257 = arith.divf %255, %256 : vector<16x1xf32>
    %258 = vector.broadcast %257 : vector<16x1xf32> to vector<16x32xf32>
    %259 = arith.subf %248, %258 : vector<16x32xf32>
    %260 = arith.mulf %259, %259 : vector<16x32xf32>
    %cst_86 = arith.constant dense<0.000000e+00> : vector<16xf32>
    %261 = vector.multi_reduction <add>, %260, %cst_86 [1] : vector<16x32xf32> to vector<16xf32>
    %262 = vector.shape_cast %261 : vector<16xf32> to vector<16x1xf32>
    %cst_87 = arith.constant 3.200000e+01 : f32
    %263 = vector.broadcast %cst_87 : f32 to vector<16x1xf32>
    %264 = arith.divf %262, %263 : vector<16x1xf32>
    %265 = vector.broadcast %257 : vector<16x1xf32> to vector<16x32xf32>
    %266 = arith.subf %248, %265 : vector<16x32xf32>
    %cst_88 = arith.constant 9.99999997E-7 : f32
    %267 = vector.broadcast %cst_88 : f32 to vector<16x1xf32>
    %268 = arith.addf %264, %267 : vector<16x1xf32>
    %269 = math.rsqrt %268 : vector<16x1xf32>
    %270 = vector.broadcast %269 : vector<16x1xf32> to vector<16x32xf32>
    %271 = arith.mulf %266, %270 : vector<16x32xf32>
    %272 = vector.broadcast %252 : vector<1x32xf32> to vector<16x32xf32>
    %273 = arith.mulf %271, %272 : vector<16x32xf32>
    %274 = vector.broadcast %253 : vector<1x32xf32> to vector<16x32xf32>
    %275 = arith.addf %273, %274 : vector<16x32xf32>
    %cst_89 = arith.constant dense<0.000000e+00> : vector<16x128xf32>
    %276 = tpu.matmul %275, %250, %cst_89 {dimension_numbers = #tpu.dot_dimension_numbers<[1], [0], [0], [1], [0, 0, 1, 1], [], []>} : vector<16x32xf32>, vector<32x128xf32>, vector<16x128xf32> -> vector<16x128xf32>
    %277 = vector.broadcast %251 : vector<1x128xf32> to vector<16x128xf32>
    %278 = arith.addf %276, %277 : vector<16x128xf32>
    %c0_90 = arith.constant 0 : index
    %c0_91 = arith.constant 0 : index
    %279 = vector.load %arg9[%c0_90, %c0_91] : memref<16x128xf32, #tpu.memory_space<vmem>>, vector<16x128xf32>
    tpu.vector_store %arg9[%c0_90, %c0_91], %278 {strides = array<i32>} : memref<16x128xf32, #tpu.memory_space<vmem>>, vector<16x128xf32>,
    return
  }
}

</mosaic_0001>

<bundles_post_ra>
// kernel: fine_tuning_vit_forward.1
= control target key start
LH: loop header
LB: loop body
LE: loop exit
PB: predicated region body
PF: predicated region fallthrough
CT: control target
= control target key end

     0   :  { %vm285_vm0 = vcmask 261120   ;;  %s4110_s26 = smov 120   ;;  %s4111_s27 = smov 112   ;;  %vm398_vm8 = vcmask 1047556   ;;  %vm1106_vm9 = vcmask 64512   ;;  %vm1849_vm11 = vcmask 130048   ;;  %s5862_s2 = inlined_call_operand.vmem [shape: f32[768,32], index: 2, kind: input, shape index: {}]   ;;  %s5863_s0 = inlined_call_operand.vmem [shape: f32[16,768], index: 0, kind: input, shape index: {}]   ;;  %s5864_s1 = inlined_call_operand.vmem [shape: f32[16,32], index: 1, kind: input, shape index: {}]   ;;  %s5865_s3 = inlined_call_operand.vmem [shape: f32[2,32,96], index: 3, kind: input, shape index: {}]   ;;  %s5866_s7 = inlined_call_operand.vmem [shape: f32[2,8,128], index: 7, kind: input, shape index: {}]   ;;  %s5867_s4 = inlined_call_operand.vmem [shape: f32[2,32,32], index: 4, kind: input, shape index: {}]   ;;  %s5868_s5 = inlined_call_operand.vmem [shape: f32[2,32,128], index: 5, kind: input, shape index: {}]   ;;  %s5869_s6 = inlined_call_operand.vmem [shape: f32[2,128,32], index: 6, kind: input, shape index: {}]   ;;  %s5870_s8 = inlined_call_operand.vmem [shape: f32[40,128], index: 8, kind: input, shape index: {}]   ;;  %s5871_s9 = inlined_call_operand.vmem [shape: f32[16,128], index: 9, kind: output, shape index: {}]  }
   0x1   :  { %v59_v0 = vld [vmem:[%s5862_s2 + $0x78] sm:$0xff]  ;;  %v58_v1 = vld [vmem:[%s5862_s2 + $0x70] sm:$0xff]  ;;  %v57_v4 = vld [vmem:[%s5862_s2 + $0x68] sm:$0xff]  ;;  %s4112_s28 = smov 96   ;;  %s4113_s29 = smov 104   ;;  %vm1852_vm12 = vcmask 195584  }
   0x2   :  { %v75_v2 = vld [vmem:[%s5862_s2 + $0xf8] sm:$0xff]  ;;  %142 = vmatpush.msra.mxu0 %v59_v0  ;;  %v74_v3 = vld [vmem:[%s5862_s2 + $0xf0] sm:$0xff]  ;;  %v73_v5 = vld [vmem:[%s5862_s2 + $0xe8] sm:$0xff]  ;;  %s4117_s30 = smov 64   ;;  %s4118_s10 = smov 16  }
   0x3   :  { %165 = vmatpush.msra.mxu1 %v75_v2  ;;  %v56_v6 = vld [vmem:[%s5862_s2 + $0x60] sm:$0xff]  ;;  %v91_v8 = vld [vmem:[%s5862_s2 + $0x178] sm:$0xff]  ;;  %v90_v9 = vld [vmem:[%s5862_s2 + $0x170] sm:$0xff]  ;;  %s4119_s11 = smov 24   ;;  %s4120_s12 = smov 8  }
   0x4   :  { %143 = vmatpush.msra.mxu0 %v58_v1  ;;  %v72_v7 = vld [vmem:[%s5862_s2 + $0xe0] sm:$0xff]  ;;  %v107_v10 = vld [vmem:[%s5862_s2 + $0x1f8] sm:$0xff]  ;;  %188 = vmatpush.msra.mxu2 %v91_v8  ;;  %v89_v13 = vld [vmem:[%s5862_s2 + $0x168] sm:$0xff] }
   0x5   :  { %166 = vmatpush.msra.mxu1 %v74_v3  ;;  %v55_v11 = vld [vmem:[%s5862_s2 + $0x58] sm:$0xff]  ;;  %211 = vmatpush.msra.mxu3 %v107_v10  ;;  %v106_v14 = vld [vmem:[%s5862_s2 + $0x1f0] sm:$0xff]  ;;  %v105_v17 = vld [vmem:[%s5862_s2 + $0x1e8] sm:$0xff] }
   0x6   :  { %144 = vmatpush.msra.mxu0 %v57_v4  ;;  %v71_v12 = vld [vmem:[%s5862_s2 + $0xd8] sm:$0xff]  ;;  %v54_v15 = vld [vmem:[%s5862_s2 + $0x50] sm:$0xff]  ;;  %189 = vmatpush.msra.mxu2 %v90_v9  ;;  %v88_v18 = vld [vmem:[%s5862_s2 + $0x160] sm:$0xff] }
   0x7   :  { %167 = vmatpush.msra.mxu1 %v73_v5  ;;  %v70_v16 = vld [vmem:[%s5862_s2 + $0xd0] sm:$0xff]  ;;  %212 = vmatpush.msra.mxu3 %v106_v14  ;;  %v104_v19 = vld [vmem:[%s5862_s2 + $0x1e0] sm:$0xff]  ;;  %v53_v20 = vld [vmem:[%s5862_s2 + $0x48] sm:$0xff] }
   0x8   :  { %145 = vmatpush.msra.mxu0 %v56_v6  ;;  %v69_v21 = vld [vmem:[%s5862_s2 + $0xc8] sm:$0xff]  ;;  %190 = vmatpush.msra.mxu2 %v89_v13  ;;  %v87_v22 = vld [vmem:[%s5862_s2 + $0x158] sm:$0xff]  ;;  %v52_v24 = vld [vmem:[%s5862_s2 + $0x40] sm:$0xff] }
   0x9   :  { %168 = vmatpush.msra.mxu1 %v72_v7  ;;  %213 = vmatpush.msra.mxu3 %v105_v17  ;;  %v103_v23 = vld [vmem:[%s5862_s2 + $0x1d8] sm:$0xff]  ;;  %v68_v25 = vld [vmem:[%s5862_s2 + $0xc0] sm:$0xff]  ;;  %v86_v26 = vld [vmem:[%s5862_s2 + $0x150] sm:$0xff] }
   0xa   :  { %146 = vmatpush.msra.mxu0 %v55_v11  ;;  %191 = vmatpush.msra.mxu2 %v88_v18  ;;  %v102_v27 = vld [vmem:[%s5862_s2 + $0x1d0] sm:$0xff]  ;;  %v51_v28 = vld [vmem:[%s5862_s2 + $0x38] sm:$0xff]  ;;  %v85_v30 = vld [vmem:[%s5862_s2 + $0x148] sm:$0xff] }
   0xb   :  { %169 = vmatpush.msra.mxu1 %v71_v12  ;;  %214 = vmatpush.msra.mxu3 %v104_v19  ;;  %v67_v29 = vld [vmem:[%s5862_s2 + $0xb8] sm:$0xff]  ;;  %v101_v31 = vld [vmem:[%s5862_s2 + $0x1c8] sm:$0xff]  ;;  %v50_v32 = vld [vmem:[%s5862_s2 + $0x30] sm:$0xff] }
   0xc   :  { %147 = vmatpush.msra.mxu0 %v54_v15  ;;  %192 = vmatpush.msra.mxu2 %v87_v22  ;;  %v66_v33 = vld [vmem:[%s5862_s2 + $0xb0] sm:$0xff]  ;;  %v84_v34 = vld [vmem:[%s5862_s2 + $0x140] sm:$0xff]  ;;  %v49_v36 = vld [vmem:[%s5862_s2 + $0x28] sm:$0xff] }
   0xd   :  { %170 = vmatpush.msra.mxu1 %v70_v16  ;;  %215 = vmatpush.msra.mxu3 %v103_v23  ;;  %v100_v35 = vld [vmem:[%s5862_s2 + $0x1c0] sm:$0xff]  ;;  %v65_v37 = vld [vmem:[%s5862_s2 + $0xa8] sm:$0xff]  ;;  %v83_v38 = vld [vmem:[%s5862_s2 + $0x138] sm:$0xff] }
   0xe   :  { %148 = vmatpush.msra.mxu0 %v53_v20  ;;  %193 = vmatpush.msra.mxu2 %v86_v26  ;;  %v99_v39 = vld [vmem:[%s5862_s2 + $0x1b8] sm:$0xff]  ;;  %v48_v40 = vld [vmem:[%s5862_s2 + $0x20] sm:$0xff]  ;;  %v82_v42 = vld [vmem:[%s5862_s2 + $0x130] sm:$0xff] }
   0xf   :  { %171 = vmatpush.msra.mxu1 %v69_v21  ;;  %216 = vmatpush.msra.mxu3 %v102_v27  ;;  %v64_v41 = vld [vmem:[%s5862_s2 + $0xa0] sm:$0xff]  ;;  %v98_v43 = vld [vmem:[%s5862_s2 + $0x1b0] sm:$0xff]  ;;  %v47_v44 = vld [vmem:[%s5862_s2 + $0x18] sm:$0xff] }
  0x10   :  { %149 = vmatpush.msra.mxu0 %v52_v24  ;;  %194 = vmatpush.msra.mxu2 %v85_v30  ;;  %v63_v45 = vld [vmem:[%s5862_s2 + $0x98] sm:$0xff]  ;;  %v81_v46 = vld [vmem:[%s5862_s2 + $0x128] sm:$0xff]  ;;  %v46_v48 = vld [vmem:[%s5862_s2 + $0x10] sm:$0xff] }
  0x11   :  { %172 = vmatpush.msra.mxu1 %v68_v25  ;;  %217 = vmatpush.msra.mxu3 %v101_v31  ;;  %v97_v47 = vld [vmem:[%s5862_s2 + $0x1a8] sm:$0xff]  ;;  %v62_v49 = vld [vmem:[%s5862_s2 + $0x90] sm:$0xff]  ;;  %v80_v50 = vld [vmem:[%s5862_s2 + $0x120] sm:$0xff] }
  0x12   :  { %150 = vmatpush.msra.mxu0 %v51_v28  ;;  %195 = vmatpush.msra.mxu2 %v84_v34  ;;  %v96_v51 = vld [vmem:[%s5862_s2 + $0x1a0] sm:$0xff]  ;;  %v45_v52 = vld [vmem:[%s5862_s2 + $0x8] sm:$0xff]  ;;  %v79_v54 = vld [vmem:[%s5862_s2 + $0x118] sm:$0xff] }
  0x13   :  { %173 = vmatpush.msra.mxu1 %v67_v29  ;;  %218 = vmatpush.msra.mxu3 %v100_v35  ;;  %v61_v53 = vld [vmem:[%s5862_s2 + $0x88] sm:$0xff]  ;;  %v95_v55 = vld [vmem:[%s5862_s2 + $0x198] sm:$0xff]  ;;  %v44_v56 = vld [vmem:[%s5862_s2] sm:$0xff] }
  0x14   :  { %151 = vmatpush.msra.mxu0 %v50_v32  ;;  %196 = vmatpush.msra.mxu2 %v83_v38  ;;  %v60_v57 = vld [vmem:[%s5862_s2 + $0x80] sm:$0xff]  ;;  %v123_v58 = vld [vmem:[%s5862_s2 + $0x278] sm:$0xff]  ;;  %v78_v60 = vld [vmem:[%s5862_s2 + $0x110] sm:$0xff] }
  0x15   :  { %174 = vmatpush.msra.mxu1 %v66_v33  ;;  %219 = vmatpush.msra.mxu3 %v99_v39  ;;  %v139_v59 = vld [vmem:[%s5862_s2 + $0x2f8] sm:$0xff]  ;;  %v94_v61 = vld [vmem:[%s5862_s2 + $0x190] sm:$0xff]  ;;  %v77_v0 = vld [vmem:[%s5862_s2 + $0x108] sm:$0xff] }
  0x16   :  { %152 = vmatpush.msra.mxu0 %v49_v36  ;;  %197 = vmatpush.msra.mxu2 %v82_v42  ;;  %v122_v62 = vld [vmem:[%s5862_s2 + $0x270] sm:$0xff]  ;;  %v93_v1 = vld [vmem:[%s5862_s2 + $0x188] sm:$0xff]  ;;  %v76_v4 = vld [vmem:[%s5862_s2 + $0x100] sm:$0xff] }
  0x17   :  { %175 = vmatpush.msra.mxu1 %v65_v37  ;;  %220 = vmatpush.msra.mxu3 %v98_v43  ;;  %v138_v63 = vld [vmem:[%s5862_s2 + $0x2f0] sm:$0xff]  ;;  %v121_v2 = vld [vmem:[%s5862_s2 + $0x268] sm:$0xff]  ;;  %v92_v5 = vld [vmem:[%s5862_s2 + $0x180] sm:$0xff] }
  0x18   :  { %153 = vmatpush.msra.mxu0 %v48_v40  ;;  %198 = vmatpush.msra.mxu2 %v81_v46  ;;  %v137_v3 = vld [vmem:[%s5862_s2 + $0x2e8] sm:$0xff]  ;;  %v120_v6 = vld [vmem:[%s5862_s2 + $0x260] sm:$0xff]  ;;  %v34_v8 = vld [vmem:[%s5863_s0 + $0x10] sm:$0xff] }
  0x19   :  { %176 = vmatpush.msra.mxu1 %v64_v41  ;;  %221 = vmatpush.msra.mxu3 %v97_v47  ;;  %v136_v7 = vld [vmem:[%s5862_s2 + $0x2e0] sm:$0xff]  ;;  %v119_v10 = vld [vmem:[%s5862_s2 + $0x258] sm:$0xff]  ;;  %v33_v13 = vld [vmem:[%s5863_s0 + $0x8] sm:$0xff] }
  0x1a   :  { %154 = vmatpush.msra.mxu0 %v47_v44  ;;  %199 = vmatpush.msra.mxu2 %v80_v50  ;;  %v32_v9 = vld [vmem:[%s5863_s0] sm:$0xff]  ;;  %v135_v11 = vld [vmem:[%s5862_s2 + $0x2d8] sm:$0xff]  ;;  %v118_v14 = vld [vmem:[%s5862_s2 + $0x250] sm:$0xff] }
  0x1b   :  { %177 = vmatpush.msra.mxu1 %v63_v45  ;;  %222 = vmatpush.msra.mxu3 %v96_v51  ;;  %v35_v12 = vld [vmem:[%s5863_s0 + $0x18] sm:$0xff]  ;;  %v134_v15 = vld [vmem:[%s5862_s2 + $0x2d0] sm:$0xff]  ;;  %v117_v16 = vld [vmem:[%s5862_s2 + $0x248] sm:$0xff] }
  0x1c   :  { %155 = vmatpush.msra.mxu0 %v46_v48  ;;  %200 = vmatpush.msra.mxu2 %v79_v54  ;;  %v133_v17 = vld [vmem:[%s5862_s2 + $0x2c8] sm:$0xff]  ;;  %v116_v18 = vld [vmem:[%s5862_s2 + $0x240] sm:$0xff]  ;;  %v38_v21 = vld [vmem:[%s5863_s0 + $0x30] sm:$0xff] }
  0x1d   :  { %178 = vmatpush.msra.mxu1 %v62_v49  ;;  %223 = vmatpush.msra.mxu3 %v95_v55  ;;  %v132_v19 = vld [vmem:[%s5862_s2 + $0x2c0] sm:$0xff]  ;;  %v115_v22 = vld [vmem:[%s5862_s2 + $0x238] sm:$0xff]  ;;  %v41_v24 = vld [vmem:[%s5863_s0 + $0x48] sm:$0xff] }
  0x1e   :  { %156 = vmatpush.msra.mxu0 %v45_v52  ;;  %201 = vmatpush.msra.mxu2 %v78_v60  ;;  %v40_v20 = vld [vmem:[%s5863_s0 + $0x40] sm:$0xff]  ;;  %v131_v23 = vld [vmem:[%s5862_s2 + $0x2b8] sm:$0xff]  ;;  %v114_v26 = vld [vmem:[%s5862_s2 + $0x230] sm:$0xff] }
  0x1f   :  { %179 = vmatpush.msra.mxu1 %v61_v53  ;;  %224 = vmatpush.msra.mxu3 %v94_v61  ;;  %v39_v25 = vld [vmem:[%s5863_s0 + $0x38] sm:$0xff]  ;;  %v130_v27 = vld [vmem:[%s5862_s2 + $0x2b0] sm:$0xff]  ;;  %v113_v28 = vld [vmem:[%s5862_s2 + $0x228] sm:$0xff] }
  0x20   :  { %157 = vmatpush.msra.mxu0 %v44_v56  ;;  %202 = vmatpush.msra.mxu2 %v77_v0  ;;  %v129_v29 = vld [vmem:[%s5862_s2 + $0x2a8] sm:$0xff]  ;;  %v112_v30 = vld [vmem:[%s5862_s2 + $0x220] sm:$0xff]  ;;  %v111_v32 = vld [vmem:[%s5862_s2 + $0x218] sm:$0xff] }
  0x21   :  { %180 = vmatpush.msra.mxu1 %v60_v57  ;;  %225 = vmatpush.msra.mxu3 %v93_v1  ;;  %v128_v31 = vld [vmem:[%s5862_s2 + $0x2a0] sm:$0xff]  ;;  %v127_v33 = vld [vmem:[%s5862_s2 + $0x298] sm:$0xff]  ;;  %v110_v34 = vld [vmem:[%s5862_s2 + $0x210] sm:$0xff] }
  0x22   :  { %234 = vmatpush.msrb.mxu0 %v123_v58  ;;  %203 = vmatpush.msra.mxu2 %v76_v4  ;;  %v126_v35 = vld [vmem:[%s5862_s2 + $0x290] sm:$0xff]  ;;  %v109_v36 = vld [vmem:[%s5862_s2 + $0x208] sm:$0xff]  ;;  %v108_v38 = vld [vmem:[%s5862_s2 + $0x200] sm:$0xff] }
  0x23   :  { %257 = vmatpush.msrb.mxu1 %v139_v59  ;;  %226 = vmatpush.msra.mxu3 %v92_v5  ;;  %v125_v37 = vld [vmem:[%s5862_s2 + $0x288] sm:$0xff]  ;;  %v124_v39 = vld [vmem:[%s5862_s2 + $0x280] sm:$0xff]  ;;  %v42_v42 = vld [vmem:[%s5863_s0 + $0x50] sm:$0xff] }
  0x24   :  { %235 = vmatpush.msrb.mxu0 %v122_v62  ;;  %204 = vmatmul.f32.vlgmr.msra.gmra.mxu2 %v34_v8  ;;  %v36_v40 = vld [vmem:[%s5863_s0 + $0x20] sm:$0xff]  ;;  %v37_v41 = vld [vmem:[%s5863_s0 + $0x28] sm:$0xff]  ;;  %v43_v43 = vld [vmem:[%s5863_s0 + $0x58] sm:$0xff]  ;;  %v4109_v8 = vmov 32.0  }
  0x25   :  { %258 = vmatpush.msrb.mxu1 %v138_v63  ;;  %158 = vmatmul.f32.vlgmr.msra.gmra.mxu0 %v32_v9  ;;  %v140_v46 = vld [vmem:[%s5864_s1] sm:$0xff]  ;;  %v141_v52 = vld [vmem:[%s5864_s1 + $0x8] sm:$0xff]  ;;  %4013 = vrcp.f32 %v4109_v8 }
  0x26   :  { %236 = vmatpush.msrb.mxu0 %v121_v2  ;;  %227 = vmatmul.f32.vlgmr.msra.gmra.mxu3 %v35_v12 }
  0x27   :  { %259 = vmatpush.msrb.mxu1 %v137_v3 }
  0x28   :  { %237 = vmatpush.msrb.mxu0 %v120_v6  ;;  %181 = vmatmul.f32.vlgmr.msra.gmra.mxu1 %v33_v13 }
  0x29   :  { %260 = vmatpush.msrb.mxu1 %v136_v7 }
  0x2a   :  { %238 = vmatpush.msrb.mxu0 %v119_v10 }
  0x2b   :  { %261 = vmatpush.msrb.mxu1 %v135_v11  ;;  %v4014_v9 = vpop.eup %4013 }
  0x2c   :  { %239 = vmatpush.msrb.mxu0 %v118_v14  ;;  %207 = vmatmul.f32.gmra.mxu2 %v40_v20  ;;  %v293_v10 = vmul.f32 32.0, %v4014_v9  ;;  %vm297_vm1 = vweird.f32 %v4014_v9 }
  0x2d   :  { %262 = vmatpush.msrb.mxu1 %v134_v15  ;;  %161 = vmatmul.f32.gmra.mxu0 %v38_v21 }
  0x2e   :  { %240 = vmatpush.msrb.mxu0 %v117_v16  ;;  %230 = vmatmul.f32.gmra.mxu3 %v41_v24  ;;  %v294_v11 = vsub.f32 1.0, %v293_v10 }
  0x2f   :  { %263 = vmatpush.msrb.mxu1 %v133_v17 }
  0x30   :  { %241 = vmatpush.msrb.mxu0 %v116_v18  ;;  %184 = vmatmul.f32.gmra.mxu1 %v39_v25  ;;  %v295_v12 = vmul.f32 %v4014_v9, %v294_v11  ;;  %v346_v25 = vld [vmem:[%s5865_s3 + $0x18] sm:$0xff] }
  0x31   :  { %264 = vmatpush.msrb.mxu1 %v132_v19  ;;  %366 = vmatpush.msrb.mxu2 %v346_v25 }
  0x32   :  { %242 = vmatpush.msrb.mxu0 %v115_v22  ;;  %v296_v13 = vadd.f32 %v4014_v9, %v295_v12  ;;  %v4115_v12 = vmov 1934713408  }
  0x33   :  { %265 = vmatpush.msrb.mxu1 %v131_v23 }
  0x34   :  { %243 = vmatpush.msrb.mxu0 %v114_v26  ;;  %v4509_v14 = vsel %vm297_vm1, %v4014_v9, %v296_v13  ;;  %v345_v26 = vld [vmem:[%s5865_s3 + $0x10] sm:$0xff]  ;;  %v427_v13 = vunpack.c.l.s4 %v4115_v12 }
  0x35   :  { %266 = vmatpush.msrb.mxu1 %v130_v27  ;;  %367 = vmatpush.msrb.mxu2 %v345_v26  ;;  %v344_v27 = vld [vmem:[%s5865_s3 + $0x8] sm:$0xff] }
  0x36   :  { %244 = vmatpush.msrb.mxu0 %v113_v28  ;;  %v343_v28 = vld [vmem:[%s5865_s3] sm:$0xff] }
  0x37   :  { %267 = vmatpush.msrb.mxu1 %v129_v29  ;;  %368 = vmatpush.msrb.mxu2 %v344_v27 }
  0x38   :  { %245 = vmatpush.msrb.mxu0 %v112_v30 }
  0x39   :  { %268 = vmatpush.msrb.mxu1 %v128_v31  ;;  %369 = vmatpush.msrb.mxu2 %v343_v28 }
  0x3a   :  { %246 = vmatpush.msrb.mxu0 %v111_v32 }
  0x3b   :  { %269 = vmatpush.msrb.mxu1 %v127_v33 }
  0x3c   :  { %247 = vmatpush.msrb.mxu0 %v110_v34 }
  0x3d   :  { %270 = vmatpush.msrb.mxu1 %v126_v35 }
  0x3e   :  { %248 = vmatpush.msrb.mxu0 %v109_v36 }
  0x3f   :  { %271 = vmatpush.msrb.mxu1 %v125_v37 }
  0x40   :  { %249 = vmatpush.msrb.mxu0 %v108_v38 }
  0x41   :  { %272 = vmatpush.msrb.mxu1 %v124_v39  ;;  %250 = vmatmul.f32.vlgmr.msrb.gmra.mxu0 %v36_v40  ;;  %v284_v40 = vld [vmem:[%s5866_s7] sm:$0xff] }
  0x42   :  { %273 = vmatmul.f32.vlgmr.msrb.gmra.mxu1 %v37_v41 }
  0x49   :  { %253 = vmatmul.f32.gmra.mxu0 %v42_v42 }
  0x4a   :  { %276 = vmatmul.f32.gmra.mxu1 %v43_v43 }
  0xa2   :  { %v159_v44 = vpop.f32.mrf.mxu0 }
  0xa3   :  { %v160_v47 = vadd.f32 %v159_v44, %v140_v46  ;;  %v337_v44 = vperm.slane %v284_v40, 0 }
  0xa5   :  { %v182_v45 = vpop.f32.mrf.mxu1 }
  0xa6   :  { %v183_v51 = vadd.f32 %v182_v45, %v160_v47 }
  0xa7   :  { %v205_v48 = vpop.f32.mrf.mxu2 }
  0xa8   :  { %v206_v54 = vadd.f32 %v205_v48, %v183_v51  ;;  %v340_v48 = vperm.slane %v284_v40, 1 }
  0xa9   :  { %v228_v53 = vpop.f32.mrf.mxu3 }
  0xaa   :  { %v162_v49 = vpop.f32.mrf.mxu0  ;;  %v229_v56 = vadd.f32 %v228_v53, %v206_v54 }
  0xab   :  { %v163_v55 = vadd.f32 %v162_v49, %v141_v52 }
  0xad   :  { %v185_v50 = vpop.f32.mrf.mxu1 }
  0xae   :  { %v186_v57 = vadd.f32 %v185_v50, %v163_v55 }
  0xaf   :  { %v208_v58 = vpop.f32.mrf.mxu2 }
  0xb0   :  { %v209_v62 = vadd.f32 %v208_v58, %v186_v57  ;;  %v347_v58 = vperm.slane %v284_v40, 6 }
  0xb1   :  { %v231_v0 = vpop.f32.mrf.mxu3 }
  0xb2   :  { %v232_v2 = vadd.f32 %v231_v0, %v209_v62 }
  0xbe   :  { %v251_v59 = vpop.f32.mrf.mxu0 }
  0xbf   :  { %v274_v60 = vpop.f32.mrf.mxu1  ;;  %v252_v61 = vadd.f32 %v251_v59, %v229_v56 }
  0xc1   :  { %v4501_v63 = vadd.f32 %v274_v60, %v252_v61 }
  0xc3   :  { %v286_v1 = vsel %vm285_vm0, %v4501_v63, 0.0 }
  0xc4   :  { %287 = vadd.xlane.f32.xlu0 %v286_v1 }
  0xc6   :  { %v254_v3 = vpop.f32.mrf.mxu0 }
  0xc7   :  { %v277_v4 = vpop.f32.mrf.mxu1  ;;  %v255_v5 = vadd.f32 %v254_v3, %v232_v2 }
  0xc9   :  { %v4505_v6 = vadd.f32 %v277_v4, %v255_v5  ;;  %v4114_v4 = vmov 1983009808  }
  0xca   :  { %v403_v5 = vunpack.c.l.s4 %v4114_v4 }
  0xcb   :  { %v289_v7 = vsel %vm285_vm0, %v4505_v6, 0.0 }
  0xcc   :  { %290 = vadd.xlane.f32.xlu0 %v289_v7  ;;  %v4572_v10 = vunpack.c.0.s8 %v403_v5 }
 0x137   :  { %v288_v15 = vpop.xlane.xlu0 %287 }
 0x138   :  { %v299_v16 = vmul.f32 %v4509_v14, %v288_v15 }
 0x13a   :  { %v301_v17 = vsub.f32 %v4501_v63, %v299_v16 }
 0x13c   :  { %v303_v18 = vmul.f32 %v301_v17, %v301_v17 }
 0x13e   :  { %v305_v19 = vsel %vm285_vm0, %v303_v18, 0.0 }
 0x13f   :  { %306 = vadd.xlane.f32.xlu1 %v305_v19  ;;  %v291_v20 = vpop.xlane.xlu0 %290 }
 0x140   :  { %v300_v21 = vmul.f32 %v4509_v14, %v291_v20  ;;  %v4583_v20 = vunpack.c.0.s8 %v427_v13 }
 0x142   :  { %v302_v22 = vsub.f32 %v4505_v6, %v300_v21 }
 0x144   :  { %v304_v23 = vmul.f32 %v302_v22, %v302_v22 }
 0x146   :  { %v308_v24 = vsel %vm285_vm0, %v304_v23, 0.0 }
 0x147   :  { %309 = vadd.xlane.f32.xlu1 %v308_v24 }
 0x1b2   :  { %v307_v29 = vpop.xlane.xlu1 %306 }
 0x1b3   :  { %v311_v30 = vmul.f32 %v307_v29, %v4509_v14 }
 0x1b5   :  { %v313_v31 = vadd.f32 1e-06, %v311_v30 }
 0x1b7   :  { %4015 = vrsqrt.f32 %v313_v31  ;;  %vm321_vm3 = vweird.f32 %v313_v31 }
 0x1ba   :  { %v310_v32 = vpop.xlane.xlu1 %309 }
 0x1bb   :  { %v312_v33 = vmul.f32 %v310_v32, %v4509_v14 }
 0x1bd   :  { %v4016_v34 = vpop.eup %4015  ;;  %v314_v35 = vadd.f32 1e-06, %v312_v33 }
 0x1be   :  { %v316_v36 = vmul.f32 %v4016_v34, %v313_v31  ;;  %vm322_vm2 = vweird.f32 %v4016_v34 }
 0x1bf   :  { %4017 = vrsqrt.f32 %v314_v35  ;;  %vm323_vm4 = vmor %vm321_vm3, %vm322_vm2  ;;  %vm331_vm6 = vweird.f32 %v314_v35 }
 0x1c0   :  { %v317_v37 = vmul.f32 %v4016_v34, %v316_v36 }
 0x1c2   :  { %v318_v38 = vmul.f32 0.5, %v317_v37 }
 0x1c4   :  { %v319_v39 = vsub.f32 1.5, %v318_v38 }
 0x1c5   :  { %v4018_v41 = vpop.eup %4017 }
 0x1c6   :  { %v320_v42 = vmul.f32 %v4016_v34, %v319_v39  ;;  %v326_v43 = vmul.f32 %v4018_v41, %v314_v35  ;;  %vm332_vm5 = vweird.f32 %v4018_v41 }
 0x1c7   :  { %vm333_vm7 = vmor %vm331_vm6, %vm332_vm5 }
 0x1c8   :  { %v324_v45 = vsel %vm323_vm4, %v4016_v34, %v320_v42  ;;  %v327_v46 = vmul.f32 %v4018_v41, %v326_v43 }
 0x1c9   :  { %v335_v47 = vmul.f32 %v324_v45, %v301_v17 }
 0x1ca   :  { %v328_v49 = vmul.f32 0.5, %v327_v46 }
 0x1cb   :  { %v338_v50 = vmul.f32 %v337_v44, %v335_v47 }
 0x1cc   :  { %v329_v51 = vsub.f32 1.5, %v328_v49 }
 0x1cd   :  { %v341_v52 = vadd.f32 %v340_v48, %v338_v50 }
 0x1ce   :  { %v330_v53 = vmul.f32 %v4018_v41, %v329_v51 }
 0x1cf   :  { %3870 = vmatmul.msk.f32.vlgmr.msrb.gmra.mxu2 %vm285_vm0, %v341_v52 }
 0x1d0   :  { %v334_v54 = vsel %vm333_vm7, %v4018_v41, %v330_v53 }
 0x1d1   :  { %v336_v55 = vmul.f32 %v334_v54, %v302_v22 }
 0x1d3   :  { %v339_v56 = vmul.f32 %v337_v44, %v336_v55 }
 0x1d5   :  { %v342_v57 = vadd.f32 %v340_v48, %v339_v56 }
 0x1d7   :  { %3871 = vmatmul.msk.f32.gmra.mxu2 %vm285_vm0, %v342_v57 }
 0x252   :  { %v371_v59 = vpop.f32.mrf.mxu2 }
 0x253   :  { %v4536_v60 = vadd.f32 %v371_v59, %v347_v58 }
 0x255   :  { %379 = vrot.lane.b32.xlu0 %v4536_v60, %s4110_s26  ;;  %385 = vrot.lane.b32.xlu2 %v4536_v60, %s4111_s27  ;;  %v400_v9 = vrot.slane %v4536_v60, 4 }
 0x25a   :  { %v374_v61 = vpop.f32.mrf.mxu2 }
 0x25b   :  { %v4542_v62 = vadd.f32 %v374_v61, %v347_v58 }
 0x25d   :  { %618 = vrot.lane.b32.xlu0 %v4536_v60, %s4112_s28  ;;  %391 = vrot.lane.b32.xlu2 %v4536_v60, %s4113_s29 }
 0x25e   :  { %381 = vrot.lane.b32.xlu1 %v4542_v62, %s4110_s26 }
 0x265   :  { %620 = vrot.lane.b32.xlu0 %v4542_v62, %s4112_s28  ;;  %387 = vrot.lane.b32.xlu2 %v4542_v62, %s4111_s27 }
 0x26d   :  { %393 = vrot.lane.b32.xlu2 %v4542_v62, %s4113_s29 }
 0x2af   :  { %v4556_v0 = vpop.permute.xlu2 %385 }
 0x2b0   :  { %626 = vrot.lane.b32.xlu2 %v4556_v0, %s4112_s28  ;;  %v397_v3 = vrot.slane %v4556_v0, 4  ;;  %v401_v11 = vsel %vm398_vm8, %v4556_v0, %v400_v9 }
 0x2b1   :  { %v409_v17 = vperm.slane %v401_v11, %v4572_v10 }
 0x2b2   :  { %v399_v8 = vsel %vm398_vm8, %v397_v3, %v4536_v60 }
 0x2b3   :  { %v405_v15 = vperm.slane %v399_v8, %v4572_v10  ;;  %v436_v26 = vrot.slane %v409_v17, 4 }
 0x2b5   :  { %v424_v23 = vrot.slane %v405_v15, 4 }
 0x2b7   :  { %v4560_v1 = vpop.permute.xlu2 %391 }
 0x2b8   :  { %630 = vrot.lane.b32.xlu2 %v4560_v1, %s4112_s28  ;;  %v3978_v2 = vpack.i.bf16 %v4560_v1, %v4556_v0  ;;  %v410_v16 = vrot.slane %v4560_v1, 4 }
 0x2bf   :  { %v4567_v7 = vpop.permute.xlu2 %387 }
 0x2c7   :  { %v4579_v18 = vpop.permute.xlu2 %393  ;;  %v4581_v19 = vpop.permute.xlu0 %379 }
 0x2c8   :  { %v411_v21 = vsel %vm398_vm8, %v410_v16, %v4581_v19  ;;  %v412_v22 = vrot.slane %v4581_v19, 4  ;;  %632 = vrot.lane.b32.xlu0 %v4579_v18, %s4112_s28  ;;  %622 = vrot.lane.b32.xlu1 %v4581_v19, %s4112_s28 }
 0x2c9   :  { %v417_v24 = vperm.slane %v411_v21, %v4572_v10 }
 0x2ca   :  { %v413_v25 = vsel %vm398_vm8, %v4560_v1, %v412_v22 }
 0x2cb   :  { %v421_v27 = vperm.slane %v413_v25, %v4572_v10  ;;  %v422_v28 = vrot.slane %v417_v24, 4  ;;  %v425_v29 = vsel %vm398_vm8, %v417_v24, %v424_v23 }
 0x2cc   :  { %v433_v30 = vperm.slane %v425_v29, %v4583_v20  ;;  %v466_v29 = vrot.slane %v4579_v18, 4 }
 0x2cd   :  { %v423_v31 = vsel %vm398_vm8, %v422_v28, %v405_v15  ;;  %v434_v32 = vrot.slane %v421_v27, 4  ;;  %v437_v33 = vsel %vm398_vm8, %v421_v27, %v436_v26  ;;  %v454_v26 = vrot.slane %v4567_v7, 4 }
 0x2ce   :  { %v429_v34 = vperm.slane %v423_v31, %v4583_v20  ;;  %v445_v35 = vperm.slane %v437_v33, %v4583_v20  ;;  %v448_v36 = vrot.slane %v433_v30, 4  ;;  %v456_v28 = vrot.slane %v4542_v62, 4 }
 0x2cf   :  { %v435_v37 = vsel %vm398_vm8, %v434_v32, %v409_v17  ;;  %v455_v27 = vsel %vm398_vm8, %v454_v26, %v4542_v62 }
 0x2d0   :  { %v441_v38 = vperm.slane %v435_v37, %v4583_v20  ;;  %v446_v39 = vrot.slane %v429_v34, 4  ;;  %v449_v40 = vsel %vm398_vm8, 0.0, %v448_v36  ;;  %v452_v41 = vrot.slane %v445_v35, 4  ;;  %v4605_v42 = vpop.permute.xlu1 %381  ;;  %628 = vrot.lane.b32.xlu1 %v4567_v7, %s4112_s28 }
 0x2d1   :  { %v510_v43 = vsel %vm398_vm8, %v448_v36, %v429_v34  ;;  %v515_v44 = vrot.slane %v449_v40, 4  ;;  %624 = vrot.lane.b32.xlu2 %v4605_v42, %s4112_s28  ;;  %v468_v30 = vrot.slane %v4605_v42, 4  ;;  %v457_v31 = vsel %vm398_vm8, %v4567_v7, %v456_v28 }
 0x2d2   :  { %v447_v45 = vsel %vm398_vm8, 0.0, %v446_v39  ;;  %v450_v46 = vrot.slane %v441_v38, 4  ;;  %v453_v47 = vsel %vm398_vm8, 0.0, %v452_v41  ;;  %v521_v51 = vsel %vm398_vm8, %v452_v41, %v441_v38 }
 0x2d3   :  { %v516_v48 = vsel %vm398_vm8, %v515_v44, %v447_v45  ;;  %v526_v52 = vrot.slane %v453_v47, 4  ;;  %v514_v53 = vperm.slane %v510_v43, %v4572_v10  ;;  %v525_v54 = vperm.slane %v521_v51, %v4572_v10 }
 0x2d4   :  { %v451_v49 = vsel %vm398_vm8, 0.0, %v450_v46  ;;  %v520_v50 = vperm.slane %v516_v48, %v4572_v10  ;;  %v467_v32 = vsel %vm398_vm8, %v466_v29, %v4605_v42  ;;  %v461_v33 = vperm.slane %v455_v27, %v4572_v10 }
 0x2d5   :  { %v527_v55 = vsel %vm398_vm8, %v526_v52, %v451_v49  ;;  %v534_v58 = vrot.slane %v514_v53, 4  ;;  %v546_v61 = vrot.slane %v525_v54, 4  ;;  %v469_v34 = vsel %vm398_vm8, %v4579_v18, %v468_v30  ;;  %v619_v49 = vpop.permute.xlu0 %618 }
 0x2d6   :  { %v531_v56 = vperm.slane %v527_v55, %v4572_v10  ;;  %v532_v57 = vrot.slane %v520_v50, 4  ;;  %v465_v35 = vperm.slane %v457_v31, %v4572_v10  ;;  %v473_v36 = vperm.slane %v467_v32, %v4572_v10 }
 0x2d7   :  { %v535_v3 = vsel %vm398_vm8, %v520_v50, %v534_v58  ;;  %v480_v37 = vrot.slane %v461_v33, 4  ;;  %v477_v38 = vperm.slane %v469_v34, %v4572_v10 }
 0x2d8   :  { %v544_v59 = vrot.slane %v531_v56, 4  ;;  %v533_v4 = vsel %vm398_vm8, %v532_v57, %v514_v53  ;;  %v543_v8 = vperm.slane %v535_v3, %v4583_v20  ;;  %v547_v9 = vsel %vm398_vm8, %v531_v56, %v546_v61 }
 0x2d9   :  { %v539_v11 = vperm.slane %v533_v4, %v4583_v20  ;;  %v555_v13 = vperm.slane %v547_v9, %v4583_v20  ;;  %v492_v39 = vrot.slane %v465_v35, 4  ;;  %v478_v40 = vrot.slane %v473_v36, 4 }
 0x2da   :  { %v545_v5 = vsel %vm398_vm8, %v544_v59, %v525_v54  ;;  %v562_v15 = vrot.slane %v543_v8, 4  ;;  %v481_v41 = vsel %vm398_vm8, %v473_v36, %v480_v37  ;;  %v490_v44 = vrot.slane %v477_v38, 4 }
 0x2db   :  { %v551_v12 = vperm.slane %v545_v5, %v4583_v20  ;;  %v558_v16 = vrot.slane %v539_v11, 4  ;;  %v560_v21 = vrot.slane %v555_v13, 4  ;;  %v493_v45 = vsel %vm398_vm8, %v477_v38, %v492_v39 }
 0x2dc   :  { %v4631_v22 = vsel %vm398_vm8, %v555_v13, %v562_v15  ;;  %v489_v46 = vperm.slane %v481_v41, %v4583_v20  ;;  %v479_v47 = vsel %vm398_vm8, %v478_v40, %v461_v33  ;;  %v501_v48 = vperm.slane %v493_v45, %v4583_v20 }
 0x2dd   :  { %v556_v17 = vrot.slane %v551_v12, 4  ;;  %v4634_v23 = vsel %vm398_vm8, %v551_v12, %v558_v16  ;;  %v4640_v25 = vsel %vm398_vm8, %v560_v21, %v543_v8  ;;  %v491_v50 = vsel %vm398_vm8, %v490_v44, %v465_v35  ;;  %v4669_v5 = vpop.permute.xlu0 %620 }
 0x2de   :  { %v485_v51 = vperm.slane %v479_v47, %v4583_v20  ;;  %v504_v52 = vrot.slane %v489_v46, 4  ;;  %v497_v53 = vperm.slane %v491_v50, %v4583_v20  ;;  %v508_v54 = vrot.slane %v501_v48, 4 }
 0x2df   :  { %v4637_v24 = vsel %vm398_vm8, %v556_v17, %v539_v11  ;;  %v644_v9 = vrot.slane %v619_v49, 4 }
 0x2e0   :  { %v502_v55 = vrot.slane %v485_v51, 4  ;;  %v505_v56 = vsel %vm398_vm8, 0.0, %v504_v52  ;;  %v506_v58 = vrot.slane %v497_v53, 4  ;;  %v509_v59 = vsel %vm398_vm8, 0.0, %v508_v54 }
 0x2e1   :  { %v569_v61 = vrot.slane %v505_v56, 4  ;;  %v580_v8 = vrot.slane %v509_v59, 4  ;;  %v575_v15 = vsel %vm398_vm8, %v508_v54, %v497_v53  ;;  %v564_v21 = vsel %vm398_vm8, %v504_v52, %v485_v51 }
 0x2e2   :  { %v503_v4 = vsel %vm398_vm8, 0.0, %v502_v55  ;;  %v507_v11 = vsel %vm398_vm8, 0.0, %v506_v58  ;;  %v4683_v29 = vperm.slane %v575_v15, %v4572_v10  ;;  %v4687_v35 = vperm.slane %v564_v21, %v4572_v10 }
 0x2e3   :  { %v570_v13 = vsel %vm398_vm8, %v569_v61, %v503_v4  ;;  %v581_v26 = vsel %vm398_vm8, %v580_v8, %v507_v11  ;;  %v700_v54 = vrot.slane %v4669_v5, 4 }
 0x2e4   :  { %v4680_v28 = vperm.slane %v570_v13, %v4572_v10  ;;  %v4690_v36 = vperm.slane %v581_v26, %v4572_v10  ;;  %v600_v44 = vrot.slane %v4683_v29, 4  ;;  %v588_v59 = vrot.slane %v4687_v35, 4 }
 0x2e6   :  { %v586_v45 = vrot.slane %v4680_v28, 4  ;;  %v4717_v15 = vsel %vm398_vm8, %v4690_v36, %v600_v44 }
 0x2e8   :  { %v4712_v8 = vsel %vm398_vm8, %v586_v45, %v4687_v35 }
 0x30a   :  { %v627_v43 = vpop.permute.xlu2 %626 }
 0x30b   :  { %v642_v3 = vrot.slane %v627_v43, 4  ;;  %v645_v16 = vsel %vm398_vm8, %v627_v43, %v644_v9 }
 0x30c   :  { %v653_v30 = vperm.slane %v645_v16, %v4572_v10 }
 0x30d   :  { %v643_v12 = vsel %vm398_vm8, %v642_v3, %v619_v49 }
 0x30e   :  { %v649_v27 = vperm.slane %v643_v12, %v4572_v10  ;;  %v680_v46 = vrot.slane %v653_v30, 4 }
 0x310   :  { %v668_v41 = vrot.slane %v649_v27, 4 }
 0x312   :  { %v631_v57 = vpop.permute.xlu2 %630 }
 0x313   :  { %v654_v31 = vrot.slane %v631_v57, 4 }
 0x32b   :  { %v625_v17 = vpop.permute.xlu2 %624 }
 0x32c   :  { %v712_v32 = vrot.slane %v625_v17, 4 }
 0x33a   :  { %v623_v33 = vpop.permute.xlu1 %622  ;;  %v633_v34 = vpop.permute.xlu0 %632 }
 0x33b   :  { %v655_v37 = vsel %vm398_vm8, %v654_v31, %v623_v33  ;;  %v656_v38 = vrot.slane %v623_v33, 4  ;;  %v710_v39 = vrot.slane %v633_v34, 4  ;;  %v713_v40 = vsel %vm398_vm8, %v633_v34, %v712_v32 }
 0x33c   :  { %v661_v43 = vperm.slane %v655_v37, %v4572_v10  ;;  %v721_v49 = vperm.slane %v713_v40, %v4572_v10 }
 0x33d   :  { %v657_v47 = vsel %vm398_vm8, %v631_v57, %v656_v38  ;;  %v711_v48 = vsel %vm398_vm8, %v710_v39, %v625_v17 }
 0x33e   :  { %v665_v50 = vperm.slane %v657_v47, %v4572_v10  ;;  %v666_v51 = vrot.slane %v661_v43, 4  ;;  %v669_v52 = vsel %vm398_vm8, %v661_v43, %v668_v41  ;;  %v717_v53 = vperm.slane %v711_v48, %v4572_v10 }
 0x33f   :  { %v677_v55 = vperm.slane %v669_v52, %v4583_v20  ;;  %v734_v12 = vrot.slane %v721_v49, 4 }
 0x340   :  { %v667_v56 = vsel %vm398_vm8, %v666_v51, %v649_v27  ;;  %v678_v58 = vrot.slane %v665_v50, 4  ;;  %v681_v57 = vsel %vm398_vm8, %v665_v50, %v680_v46  ;;  %v722_v11 = vrot.slane %v717_v53, 4 }
 0x341   :  { %v673_v61 = vperm.slane %v667_v56, %v4583_v20  ;;  %v689_v3 = vperm.slane %v681_v57, %v4583_v20  ;;  %v692_v4 = vrot.slane %v677_v55, 4 }
 0x342   :  { %v679_v9 = vsel %vm398_vm8, %v678_v58, %v653_v30  ;;  %v629_v13 = vpop.permute.xlu1 %628 }
 0x343   :  { %v685_v16 = vperm.slane %v679_v9, %v4583_v20  ;;  %v690_v17 = vrot.slane %v673_v61, 4  ;;  %v693_v21 = vsel %vm398_vm8, 0.0, %v692_v4  ;;  %v696_v26 = vrot.slane %v689_v3, 4 }
 0x344   :  { %v754_v27 = vsel %vm398_vm8, %v692_v4, %v673_v61  ;;  %v759_v31 = vrot.slane %v693_v21, 4  ;;  %v698_v32 = vrot.slane %v629_v13, 4  ;;  %v701_v33 = vsel %vm398_vm8, %v629_v13, %v700_v54 }
 0x345   :  { %v691_v30 = vsel %vm398_vm8, 0.0, %v690_v17  ;;  %v694_v34 = vrot.slane %v685_v16, 4  ;;  %v697_v37 = vsel %vm398_vm8, 0.0, %v696_v26  ;;  %v758_v38 = vperm.slane %v754_v27, %v4572_v10 }
 0x346   :  { %v770_v39 = vrot.slane %v697_v37, 4  ;;  %v699_v40 = vsel %vm398_vm8, %v698_v32, %v4669_v5  ;;  %v709_v41 = vperm.slane %v701_v33, %v4572_v10  ;;  %v760_v43 = vsel %vm398_vm8, %v759_v31, %v691_v30 }
 0x347   :  { %v705_v44 = vperm.slane %v699_v40, %v4572_v10  ;;  %v695_v45 = vsel %vm398_vm8, 0.0, %v694_v34  ;;  %v764_v46 = vperm.slane %v760_v43, %v4572_v10  ;;  %v765_v47 = vsel %vm398_vm8, %v696_v26, %v685_v16 }
 0x348   :  { %v735_v48 = vsel %vm398_vm8, %v734_v12, %v709_v41  ;;  %v736_v50 = vrot.slane %v709_v41, 4  ;;  %v769_v51 = vperm.slane %v765_v47, %v4572_v10  ;;  %v771_v5 = vsel %vm398_vm8, %v770_v39, %v695_v45 }
 0x349   :  { %v723_v52 = vsel %vm398_vm8, %v722_v11, %v705_v44  ;;  %v724_v54 = vrot.slane %v705_v44, 4  ;;  %v741_v55 = vperm.slane %v735_v48, %v4583_v20  ;;  %v775_v56 = vperm.slane %v771_v5, %v4572_v10 }
 0x34a   :  { %v729_v58 = vperm.slane %v723_v52, %v4583_v20  ;;  %v737_v57 = vsel %vm398_vm8, %v721_v49, %v736_v50  ;;  %v776_v61 = vrot.slane %v764_v46, 4  ;;  %v778_v3 = vrot.slane %v758_v38, 4 }
 0x34b   :  { %v725_v4 = vsel %vm398_vm8, %v717_v53, %v724_v54  ;;  %v745_v9 = vperm.slane %v737_v57, %v4583_v20  ;;  %v750_v12 = vrot.slane %v741_v55, 4  ;;  %v788_v13 = vrot.slane %v775_v56, 4 }
 0x34c   :  { %v733_v16 = vperm.slane %v725_v4, %v4583_v20  ;;  %v746_v11 = vrot.slane %v729_v58, 4  ;;  %v779_v17 = vsel %vm398_vm8, %v764_v46, %v778_v3  ;;  %v790_v21 = vrot.slane %v769_v51, 4 }
 0x34d   :  { %v751_v26 = vsel %vm398_vm8, 0.0, %v750_v12  ;;  %v752_v27 = vrot.slane %v745_v9, 4  ;;  %v787_v31 = vperm.slane %v779_v17, %v4583_v20  ;;  %v777_v49 = vsel %vm398_vm8, %v776_v61, %v758_v38 }
 0x34e   :  { %v747_v32 = vsel %vm398_vm8, 0.0, %v746_v11  ;;  %v748_v53 = vrot.slane %v733_v16, 4  ;;  %v791_v33 = vsel %vm398_vm8, %v775_v56, %v790_v21  ;;  %v783_v30 = vperm.slane %v777_v49, %v4583_v20 }
 0x34f   :  { %v753_v34 = vsel %vm398_vm8, 0.0, %v752_v27  ;;  %v819_v37 = vsel %vm398_vm8, %v752_v27, %v741_v55  ;;  %v799_v39 = vperm.slane %v791_v33, %v4583_v20  ;;  %v806_v40 = vrot.slane %v787_v31, 4 }
 0x350   :  { %v749_v41 = vsel %vm398_vm8, 0.0, %v748_v53  ;;  %v808_v43 = vsel %vm398_vm8, %v748_v53, %v729_v58  ;;  %v823_v38 = vperm.slane %v819_v37, %v4572_v10  ;;  %v824_v44 = vrot.slane %v753_v34, 4 }
 0x351   :  { %v813_v45 = vrot.slane %v749_v41, 4  ;;  %v804_v46 = vrot.slane %v799_v39, 4  ;;  %v807_v47 = vsel %vm398_vm8, %v799_v39, %v806_v40  ;;  %v789_v48 = vsel %vm398_vm8, %v788_v13, %v769_v51 }
 0x352   :  { %v825_v50 = vsel %vm398_vm8, %v824_v44, %v751_v26  ;;  %v844_v5 = vrot.slane %v823_v38, 4  ;;  %3878 = vmatpush.xpose.msk.msrb.mxu3 %vm1106_vm9, %v807_v47  ;;  %v795_v52 = vperm.slane %v789_v48, %v4583_v20  ;;  %v802_v54 = vrot.slane %v783_v30, 4 }
 0x353   :  { %v829_v55 = vperm.slane %v825_v50, %v4572_v10  ;;  %v805_v56 = vsel %vm398_vm8, %v804_v46, %v787_v31  ;;  %v812_v58 = vperm.slane %v808_v43, %v4572_v10  ;;  %v814_v57 = vsel %vm398_vm8, %v813_v45, %v747_v32 }
 0x354   :  { %v803_v61 = vsel %vm398_vm8, %v795_v52, %v802_v54  ;;  %v800_v3 = vrot.slane %v795_v52, 4  ;;  %v818_v51 = vperm.slane %v814_v57, %v4572_v10  ;;  %v598_v4 = vrot.slane %v4690_v36, 4 }
 0x355   :  { %v842_v9 = vrot.slane %v829_v55, 4  ;;  %3874 = vmatpush.xpose.msk.msra.mxu2 %vm1106_vm9, %v803_v61  ;;  %3879 = vmatmul.msk.f32.vlgmr.msrb.gmra.mxu3 %vm1106_vm9, %v4631_v22  ;;  %v832_v12 = vrot.slane %v812_v58, 4  ;;  %v845_v13 = vsel %vm398_vm8, %v829_v55, %v844_v5  ;;  %v609_v16 = vperm.slane %v4717_v15, %v4583_v20 }
 0x356   :  { %v801_v11 = vsel %vm398_vm8, %v800_v3, %v783_v30  ;;  %v853_v17 = vperm.slane %v845_v13, %v4583_v20  ;;  %v830_v21 = vrot.slane %v818_v51, 4  ;;  %v589_v36 = vsel %vm398_vm8, %v4680_v28, %v588_v59 }
 0x357   :  { %3872 = vmatpush.xpose.msk.msra.mxu1 %vm1106_vm9, %v801_v11  ;;  %v833_v22 = vsel %vm398_vm8, %v818_v51, %v832_v12  ;;  %v843_v26 = vsel %vm398_vm8, %v842_v9, %v823_v38  ;;  %v593_v15 = vperm.slane %v4712_v8, %v4583_v20  ;;  %v597_v59 = vperm.slane %v589_v36, %v4583_v20 }
 0x358   :  { %3875 = vmatmul.msk.f32.vlgmr.msra.gmra.mxu2 %vm1106_vm9, %v4634_v23  ;;  %v841_v27 = vperm.slane %v833_v22, %v4583_v20  ;;  %v858_v31 = vrot.slane %v853_v17, 4  ;;  %v831_v35 = vsel %vm398_vm8, %v830_v21, %v812_v58  ;;  %v849_v49 = vperm.slane %v843_v26, %v4583_v20 }
 0x359   :  { %3876 = vmatpush.xpose.msk.msrb.mxu2 %vm1106_vm9, %v805_v56  ;;  %v837_v28 = vperm.slane %v831_v35, %v4583_v20  ;;  %v614_v32 = vrot.slane %v609_v16, 4  ;;  %v599_v53 = vsel %vm398_vm8, %v598_v4, %v4683_v29  ;;  %v612_v40 = vrot.slane %v593_v15, 4 }
 0x35a   :  { %3873 = vmatmul.msk.f32.vlgmr.msra.gmra.mxu1 %vm1106_vm9, %v4637_v24  ;;  %v859_v23 = vsel %vm398_vm8, %v858_v31, %v841_v27  ;;  %v854_v8 = vrot.slane %v849_v49, 4  ;;  %v860_v33 = vrot.slane %v841_v27, 4  ;;  %v605_v39 = vperm.slane %v599_v53, %v4583_v20 }
 0x35b   :  { %3884 = vmatpush.xpose.msk.msra.mxu0 %vm1106_vm9, %v859_v23  ;;  %v856_v30 = vrot.slane %v837_v28, 4  ;;  %v615_v24 = vsel %vm398_vm8, %v614_v32, %v597_v59  ;;  %v616_v41 = vrot.slane %v597_v59, 4  ;;  %v280_v46 = vlaneseq }
 0x35c   :  { %v855_v34 = vsel %vm398_vm8, %v854_v8, %v837_v28  ;;  %v861_v37 = vsel %vm398_vm8, %v853_v17, %v860_v33  ;;  %v613_v43 = vsel %vm398_vm8, %v605_v39, %v612_v40  ;;  %v610_v44 = vrot.slane %v605_v39, 4 }
 0x35d   :  { %3880 = vmatpush.xpose.msk.msra.mxu2 %vm1106_vm9, %v855_v34  ;;  %3886 = vmatpush.xpose.msk.msrb.mxu1 %vm1106_vm9, %v861_v37  ;;  %v857_v29 = vsel %vm398_vm8, %v849_v49, %v856_v30  ;;  %v617_v38 = vsel %vm398_vm8, %v609_v16, %v616_v41  ;;  %v281_v47 = vand.u32 127, %v280_v46  ;;  %v4116_v50 = vmov -1e+09  }
 0x35e   :  { %3885 = vmatmul.msk.f32.vlgmr.msra.gmra.mxu0 %vm1106_vm9, %v615_v24  ;;  %3882 = vmatpush.xpose.msk.msra.mxu3 %vm1106_vm9, %v857_v29  ;;  %v611_v45 = vsel %vm398_vm8, %v610_v44, %v593_v15  ;;  %v3973_v8 = vpack.i.bf16 %v4581_v19, %v4536_v60  ;;  %v3983_v33 = vpack.i.bf16 %v4605_v42, %v4542_v62 }
 0x35f   :  { %vm282_vm10 = vcmp.lt.s32.totalorder %v281_v47, 5  ;;  %v3988_v30 = vpack.i.bf16 %v4579_v18, %v4567_v7 }
 0x360   :  { %3877 = vmatmul.msk.f32.vlgmr.msrb.gmra.mxu2 %vm1106_vm9, %v4640_v25  ;;  %v4818_v5 = vsel %vm282_vm10, 0.0, %v4116_v50 }
 0x361   :  { %3883 = vmatmul.msk.f32.vlgmr.msra.gmra.mxu3 %vm1106_vm9, %v613_v43 }
 0x362   :  { %3887 = vmatmul.msk.f32.vlgmr.msrb.gmra.mxu1 %vm1106_vm9, %v617_v38 }
 0x368   :  { %3881 = vmatmul.msk.f32.vlgmr.msra.gmra.mxu2 %vm1106_vm9, %v611_v45 }
 0x3d7   :  { %v1130_v48 = vpop.f32.mrf.mxu1 }
 0x3d8   :  { %v1315_v25 = vmul.f32 0.35355338, %v1130_v48  ;;  %v1208_v52 = vpop.f32.mrf.mxu3 }
 0x3d9   :  { %v1318_v56 = vmul.f32 0.35355338, %v1208_v52 }
 0x3da   :  { %v1323_v54 = vadd.f32 %v1315_v25, %v4818_v5 }
 0x3db   :  { %v1156_v55 = vpop.f32.mrf.mxu2  ;;  %v1326_v9 = vadd.f32 %v1318_v56, %v4818_v5  ;;  %v1286_v12 = vpop.f32.mrf.mxu0 }
 0x3dc   :  { %v1316_v58 = vmul.f32 0.35355338, %v1156_v55  ;;  %v1331_v57 = vsel %vm1106_vm9, %v1323_v54, -inf  ;;  %v1321_v16 = vmul.f32 0.35355338, %v1286_v12 }
 0x3dd   :  { %1332 = vmax.xlane.f32.xlu2 %v1331_v57  ;;  %v1340_v17 = vsel %vm1106_vm9, %v1326_v9, -inf }
 0x3de   :  { %v1324_v61 = vadd.f32 %v1316_v58, %v4818_v5  ;;  %v1329_v31 = vadd.f32 %v1321_v16, %v4818_v5 }
 0x3df   :  { %v1312_v3 = vpop.f32.mrf.mxu1 }
 0x3e0   :  { %v1322_v51 = vmul.f32 0.35355338, %v1312_v3  ;;  %v1334_v4 = vsel %vm1106_vm9, %v1324_v61, -inf  ;;  %v1349_v28 = vsel %vm1106_vm9, %v1329_v31, -inf }
 0x3e1   :  { %1335 = vmax.xlane.f32.xlu1 %v1334_v4 }
 0x3e2   :  { %v4827_v21 = vadd.f32 %v1322_v51, %v4818_v5 }
 0x3e3   :  { %v1182_v13 = vpop.f32.mrf.mxu2 }
 0x3e4   :  { %v1317_v11 = vmul.f32 0.35355338, %v1182_v13  ;;  %v1260_v36 = vpop.f32.mrf.mxu3  ;;  %v1352_v27 = vsel %vm1106_vm9, %v4827_v21, -inf }
 0x3e5   :  { %1341 = vmax.xlane.f32.xlu2 %v1340_v17  ;;  %v1320_v26 = vmul.f32 0.35355338, %v1260_v36 }
 0x3e6   :  { %v1325_v22 = vadd.f32 %v1317_v11, %v4818_v5 }
 0x3e7   :  { %v1328_v59 = vadd.f32 %v1320_v26, %v4818_v5 }
 0x3e8   :  { %v1337_v15 = vsel %vm1106_vm9, %v1325_v22, -inf }
 0x3e9   :  { %1338 = vmax.xlane.f32.xlu0 %v1337_v15  ;;  %1353 = vmax.xlane.f32.xlu1 %v1352_v27  ;;  %v1346_v53 = vsel %vm1106_vm9, %v1328_v59, -inf }
 0x3eb   :  { %v1234_v35 = vpop.f32.mrf.mxu2 }
 0x3ec   :  { %v1319_v49 = vmul.f32 0.35355338, %v1234_v35 }
 0x3ed   :  { %1350 = vmax.xlane.f32.xlu2 %v1349_v28 }
 0x3ee   :  { %v1327_v32 = vadd.f32 %v1319_v49, %v4818_v5 }
 0x3f0   :  { %v1343_v23 = vsel %vm1106_vm9, %v1327_v32, -inf }
 0x3f1   :  { %1347 = vmax.xlane.f32.xlu0 %v1346_v53  ;;  %1344 = vmax.xlane.f32.xlu1 %v1343_v23 }
 0x405   :  { %3979 = vrot.lane.b32.xlu2 %v3978_v2, %s4117_s30  ;;  %3974 = vrot.lane.b32.xlu0 %v3973_v8, %s4117_s30 }
 0x40a   :  { %3984 = vrot.lane.b32.xlu1 %v3983_v33, %s4117_s30 }
 0x40d   :  { %3989 = vrot.lane.b32.xlu2 %v3988_v30, %s4117_s30 }
 0x450   :  { %v1333_v34 = vpop.xlane.xlu2 %1332 }
 0x451   :  { %v1355_v60 = vsub.f32 %v1323_v54, %v1333_v34 }
 0x453   :  { %v1363_v19 = vmul.f32 1.442695, %v1355_v60 }
 0x454   :  { %v1336_v37 = vpop.xlane.xlu1 %1335 }
 0x455   :  { %4019 = vpow2.f32 %v1363_v19  ;;  %v1356_v39 = vsub.f32 %v1324_v61, %v1336_v37 }
 0x457   :  { %v1365_v0 = vmul.f32 1.442695, %v1356_v39 }
 0x458   :  { %v1342_v1 = vpop.xlane.xlu2 %1341 }
 0x459   :  { %4021 = vpow2.f32 %v1365_v0  ;;  %v1358_v2 = vsub.f32 %v1326_v9, %v1342_v1 }
 0x45b   :  { %v4852_v40 = vpop.eup %4019  ;;  %v1369_v62 = vmul.f32 1.442695, %v1358_v2 }
 0x45c   :  { %v1354_v42 = vpop.xlane.xlu1 %1353  ;;  %v1339_v24 = vpop.xlane.xlu0 %1338  ;;  %v1379_v7 = vsel %vm1106_vm9, %v4852_v40, 0.0 }
 0x45d   :  { %4023 = vpow2.f32 %v1369_v62  ;;  %v1357_v18 = vsub.f32 %v1325_v22, %v1339_v24  ;;  %1380 = vadd.xlane.f32.xlu0 %v1379_v7  ;;  %v1362_v54 = vsub.f32 %v4827_v21, %v1354_v42 }
 0x45f   :  { %v4856_v29 = vpop.eup %4021  ;;  %v1367_v41 = vmul.f32 1.442695, %v1357_v18  ;;  %v1377_v61 = vmul.f32 1.442695, %v1362_v54 }
 0x460   :  { %v1351_v43 = vpop.xlane.xlu2 %1350  ;;  %v1382_v38 = vsel %vm1106_vm9, %v4856_v29, 0.0 }
 0x461   :  { %v1361_v44 = vsub.f32 %v1329_v31, %v1351_v43  ;;  %1383 = vadd.xlane.f32.xlu1 %v1382_v38  ;;  %4025 = vpow2.f32 %v1367_v41 }
 0x463   :  { %v4860_v45 = vpop.eup %4023  ;;  %v1375_v46 = vmul.f32 1.442695, %v1361_v44 }
 0x464   :  { %v1345_v47 = vpop.xlane.xlu1 %1344  ;;  %v1348_v48 = vpop.xlane.xlu0 %1347  ;;  %v1388_v50 = vsel %vm1106_vm9, %v4860_v45, 0.0 }
 0x465   :  { %v1359_v25 = vsub.f32 %v1327_v32, %v1345_v47  ;;  %v1360_v52 = vsub.f32 %v1328_v59, %v1348_v48  ;;  %1389 = vadd.xlane.f32.xlu0 %v1388_v50  ;;  %4027 = vpow2.f32 %v1375_v46 }
 0x467   :  { %v1371_v55 = vmul.f32 1.442695, %v1359_v25  ;;  %v1373_v56 = vmul.f32 1.442695, %v1360_v52  ;;  %v4865_v58 = vpop.eup %4025 }
 0x468   :  { %v1385_v57 = vsel %vm1106_vm9, %v4865_v58, 0.0  ;;  %v3980_v3 = vpop.permute.xlu2 %3979 }
 0x469   :  { %4029 = vpow2.f32 %v1371_v55  ;;  %1386 = vadd.xlane.f32.xlu2 %v1385_v57  ;;  %v3982_v17 = vunpack.i.h.bf16 %v3980_v3  ;;  %v3981_v21 = vunpack.i.l.bf16 %v3980_v3 }
 0x46a   :  { %4031 = vpow2.f32 %v1373_v56 }
 0x46b   :  { %v4869_v51 = vpop.eup %4027  ;;  %4033 = vpow2.f32 %v1377_v61  ;;  %v898_v15 = vrot.slane %v3982_v17, 4  ;;  %v886_v27 = vrot.slane %v3981_v21, 4 }
 0x46c   :  { %v1397_v13 = vsel %vm1106_vm9, %v4869_v51, 0.0 }
 0x46f   :  { %v4871_v4 = vpop.eup %4029 }
 0x470   :  { %v4873_v9 = vpop.eup %4031  ;;  %v1391_v12 = vsel %vm1106_vm9, %v4871_v4, 0.0  ;;  %v3990_v36 = vpop.permute.xlu2 %3989 }
 0x471   :  { %1392 = vadd.xlane.f32.xlu0 %v1391_v12  ;;  %v1394_v16 = vsel %vm1106_vm9, %v4873_v9, 0.0  ;;  %1398 = vadd.xlane.f32.xlu2 %v1397_v13  ;;  %v4881_v11 = vpop.eup %4033  ;;  %v3992_v49 = vunpack.i.h.bf16 %v3990_v36  ;;  %v3991_v28 = vunpack.i.l.bf16 %v3990_v36 }
 0x472   :  { %1395 = vadd.xlane.f32.xlu1 %v1394_v16  ;;  %v1400_v26 = vsel %vm1106_vm9, %v4881_v11, 0.0 }
 0x473   :  { %v954_v1 = vrot.slane %v3992_v49, 4  ;;  %v942_v2 = vrot.slane %v3991_v28, 4 }
 0x477   :  { %v3975_v22 = vpop.permute.xlu0 %3974 }
 0x478   :  { %v3977_v31 = vunpack.i.h.bf16 %v3975_v22  ;;  %v3976_v35 = vunpack.i.l.bf16 %v3975_v22 }
 0x479   :  { %1401 = vadd.xlane.f32.xlu0 %v1400_v26 }
 0x47a   :  { %v899_v59 = vsel %vm398_vm8, %v898_v15, %v3977_v31  ;;  %v900_v32 = vrot.slane %v3977_v31, 4  ;;  %v887_v53 = vsel %vm398_vm8, %v886_v27, %v3976_v35  ;;  %v888_v23 = vrot.slane %v3976_v35, 4 }
 0x47b   :  { %v905_v8 = vperm.slane %v899_v59, %v4572_v10  ;;  %v893_v33 = vperm.slane %v887_v53, %v4572_v10 }
 0x47c   :  { %v901_v30 = vsel %vm398_vm8, %v3982_v17, %v900_v32  ;;  %v889_v34 = vsel %vm398_vm8, %v3981_v21, %v888_v23  ;;  %v3985_v60 = vpop.permute.xlu1 %3984 }
 0x47d   :  { %v909_v19 = vperm.slane %v901_v30, %v4572_v10  ;;  %v910_v37 = vrot.slane %v905_v8, 4  ;;  %v897_v39 = vperm.slane %v889_v34, %v4572_v10  ;;  %v912_v0 = vrot.slane %v893_v33, 4 }
 0x47e   :  { %v3987_v62 = vunpack.i.h.bf16 %v3985_v60  ;;  %v3986_v42 = vunpack.i.l.bf16 %v3985_v60 }
 0x47f   :  { %v922_v24 = vrot.slane %v909_v19, 4  ;;  %v911_v7 = vsel %vm398_vm8, %v910_v37, %v893_v33  ;;  %v913_v18 = vsel %vm398_vm8, %v905_v8, %v912_v0  ;;  %v924_v41 = vrot.slane %v897_v39, 4 }
 0x480   :  { %v917_v43 = vperm.slane %v911_v7, %v4583_v20  ;;  %v921_v38 = vperm.slane %v913_v18, %v4583_v20  ;;  %v955_v44 = vsel %vm398_vm8, %v954_v1, %v3987_v62  ;;  %v956_v46 = vrot.slane %v3987_v62, 4 }
 0x481   :  { %v923_v47 = vsel %vm398_vm8, %v922_v24, %v897_v39  ;;  %v925_v48 = vsel %vm398_vm8, %v909_v19, %v924_v41  ;;  %v961_v50 = vperm.slane %v955_v44, %v4572_v10  ;;  %v943_v25 = vsel %vm398_vm8, %v942_v2, %v3986_v42 }
 0x482   :  { %v929_v52 = vperm.slane %v923_v47, %v4583_v20  ;;  %v933_v54 = vperm.slane %v925_v48, %v4583_v20  ;;  %v934_v55 = vrot.slane %v917_v43, 4  ;;  %v936_v56 = vrot.slane %v921_v38, 4 }
 0x483   :  { %v957_v57 = vsel %vm398_vm8, %v3992_v49, %v956_v46  ;;  %v966_v61 = vrot.slane %v961_v50, 4  ;;  %v944_v3 = vrot.slane %v3986_v42, 4  ;;  %v949_v12 = vperm.slane %v943_v25, %v4572_v10 }
 0x484   :  { %v935_v13 = vsel %vm398_vm8, 0.0, %v934_v55  ;;  %v937_v16 = vsel %vm398_vm8, 0.0, %v936_v56  ;;  %v938_v17 = vrot.slane %v929_v52, 4  ;;  %v940_v21 = vrot.slane %v933_v54, 4 }
 0x485   :  { %v998_v36 = vsel %vm398_vm8, %v936_v56, %v917_v43  ;;  %v1003_v22 = vrot.slane %v937_v16, 4  ;;  %v965_v26 = vperm.slane %v957_v57, %v4572_v10  ;;  %v945_v15 = vsel %vm398_vm8, %v3991_v28, %v944_v3 }
 0x486   :  { %v941_v27 = vsel %vm398_vm8, 0.0, %v940_v21  ;;  %v953_v31 = vperm.slane %v945_v15, %v4572_v10  ;;  %v967_v35 = vsel %vm398_vm8, %v966_v61, %v949_v12  ;;  %v968_v49 = vrot.slane %v949_v12, 4 }
 0x487   :  { %v1014_v59 = vrot.slane %v941_v27, 4  ;;  %v978_v32 = vrot.slane %v965_v26, 4  ;;  %v973_v53 = vperm.slane %v967_v35, %v4583_v20  ;;  %v939_v23 = vsel %vm398_vm8, 0.0, %v938_v17 }
 0x488   :  { %v969_v8 = vsel %vm398_vm8, %v961_v50, %v968_v49  ;;  %v980_v33 = vrot.slane %v953_v31, 4  ;;  %v1002_v30 = vperm.slane %v998_v36, %v4572_v10  ;;  %v1004_v28 = vsel %vm398_vm8, %v1003_v22, %v935_v13 }
 0x489   :  { %v977_v34 = vperm.slane %v969_v8, %v4583_v20  ;;  %v979_v60 = vsel %vm398_vm8, %v978_v32, %v953_v31  ;;  %v990_v19 = vrot.slane %v973_v53, 4  ;;  %v1008_v37 = vperm.slane %v1004_v28, %v4572_v10 }
 0x48a   :  { %v981_v39 = vsel %vm398_vm8, %v965_v26, %v980_v33  ;;  %v985_v0 = vperm.slane %v979_v60, %v4583_v20  ;;  %v1009_v1 = vsel %vm398_vm8, %v940_v21, %v929_v52  ;;  %v1015_v2 = vsel %vm398_vm8, %v1014_v59, %v939_v23 }
 0x48b   :  { %v989_v62 = vperm.slane %v981_v39, %v4583_v20  ;;  %v991_v42 = vsel %vm398_vm8, 0.0, %v990_v19  ;;  %v992_v24 = vrot.slane %v977_v34, 4  ;;  %v1013_v7 = vperm.slane %v1009_v1, %v4572_v10 }
 0x48c   :  { %v994_v18 = vrot.slane %v985_v0, 4  ;;  %v1019_v41 = vperm.slane %v1015_v2, %v4572_v10  ;;  %v1022_v43 = vrot.slane %v1002_v30, 4  ;;  %v1020_v38 = vrot.slane %v1008_v37, 4 }
 0x48d   :  { %v993_v44 = vsel %vm398_vm8, 0.0, %v992_v24  ;;  %v996_v46 = vrot.slane %v989_v62, 4  ;;  %v1052_v47 = vsel %vm398_vm8, %v992_v24, %v973_v53  ;;  %v1034_v48 = vrot.slane %v1013_v7, 4 }
 0x48e   :  { %v1057_v50 = vrot.slane %v993_v44, 4  ;;  %v1023_v25 = vsel %vm398_vm8, %v1008_v37, %v1022_v43  ;;  %v1021_v52 = vsel %vm398_vm8, %v1020_v38, %v1002_v30  ;;  %v1032_v54 = vrot.slane %v1019_v41, 4 }
 0x48f   :  { %v997_v55 = vsel %vm398_vm8, 0.0, %v996_v46  ;;  %v1031_v56 = vperm.slane %v1023_v25, %v4583_v20  ;;  %v1035_v57 = vsel %vm398_vm8, %v1019_v41, %v1034_v48  ;;  %v1027_v61 = vperm.slane %v1021_v52, %v4583_v20 }
 0x490   :  { %v1068_v3 = vrot.slane %v997_v55, 4  ;;  %v1043_v12 = vperm.slane %v1035_v57, %v4583_v20  ;;  %v1033_v13 = vsel %vm398_vm8, %v1032_v54, %v1013_v7  ;;  %v995_v16 = vsel %vm398_vm8, 0.0, %v994_v18 }
 0x491   :  { %v1050_v17 = vrot.slane %v1031_v56, 4  ;;  %v1039_v21 = vperm.slane %v1033_v13, %v4583_v20  ;;  %v1046_v36 = vrot.slane %v1027_v61, 4  ;;  %v1056_v22 = vperm.slane %v1052_v47, %v4572_v10 }
 0x492   :  { %v1048_v26 = vrot.slane %v1043_v12, 4  ;;  %v1058_v15 = vsel %vm398_vm8, %v1057_v50, %v991_v42  ;;  %v1063_v27 = vsel %vm398_vm8, %v996_v46, %v985_v0  ;;  %v1069_v31 = vsel %vm398_vm8, %v1068_v3, %v995_v16 }
 0x493   :  { %v1051_v35 = vsel %vm398_vm8, %v1043_v12, %v1050_v17  ;;  %v1047_v49 = vsel %vm398_vm8, %v1039_v21, %v1046_v36  ;;  %v1044_v59 = vrot.slane %v1039_v21, 4  ;;  %v1062_v32 = vperm.slane %v1058_v15, %v4572_v10 }
 0x494   :  { %1506 = vmatpush.msra.mxu1 %v1051_v35  ;;  %1460 = vmatpush.msrb.mxu3 %v1047_v49  ;;  %v1049_v53 = vsel %vm398_vm8, %v1048_v26, %v1031_v56  ;;  %v1067_v23 = vperm.slane %v1063_v27, %v4572_v10  ;;  %v1073_v8 = vperm.slane %v1069_v31, %v4572_v10  ;;  %v1076_v33 = vrot.slane %v1056_v22, 4 }
 0x495   :  { %1483 = vmatpush.msrb.mxu0 %v1049_v53  ;;  %v1045_v30 = vsel %vm398_vm8, %v1044_v59, %v1027_v61  ;;  %v1074_v28 = vrot.slane %v1062_v32, 4 }
 0x496   :  { %1437 = vmatpush.msrb.mxu2 %v1045_v30  ;;  %v1077_v34 = vsel %vm398_vm8, %v1062_v32, %v1076_v33  ;;  %v1088_v60 = vrot.slane %v1067_v23, 4  ;;  %v1086_v19 = vrot.slane %v1073_v8, 4 }
 0x497   :  { %v1085_v37 = vperm.slane %v1077_v34, %v4583_v20  ;;  %v1075_v39 = vsel %vm398_vm8, %v1074_v28, %v1056_v22 }
 0x498   :  { %v1089_v0 = vsel %vm398_vm8, %v1073_v8, %v1088_v60  ;;  %v1081_v1 = vperm.slane %v1075_v39, %v4583_v20  ;;  %v1087_v2 = vsel %vm398_vm8, %v1086_v19, %v1067_v23 }
 0x499   :  { %v1097_v62 = vperm.slane %v1089_v0, %v4583_v20  ;;  %v1104_v42 = vrot.slane %v1085_v37, 4  ;;  %v1093_v24 = vperm.slane %v1087_v2, %v4583_v20 }
 0x49a   :  { %v1100_v7 = vrot.slane %v1081_v1, 4 }
 0x49b   :  { %v1105_v18 = vsel %vm398_vm8, %v1097_v62, %v1104_v42  ;;  %v1102_v41 = vrot.slane %v1097_v62, 4  ;;  %v1098_v43 = vrot.slane %v1093_v24, 4 }
 0x49c   :  { %1598 = vmatpush.msrb.mxu1 %v1105_v18  ;;  %v1101_v38 = vsel %vm398_vm8, %v1093_v24, %v1100_v7 }
 0x49d   :  { %1552 = vmatpush.msra.mxu3 %v1101_v38  ;;  %v1103_v44 = vsel %vm398_vm8, %v1102_v41, %v1085_v37  ;;  %v1099_v46 = vsel %vm398_vm8, %v1098_v43, %v1081_v1 }
 0x49e   :  { %1575 = vmatpush.msra.mxu0 %v1103_v44  ;;  %1529 = vmatpush.msra.mxu2 %v1099_v46 }
 0x4d0   :  { %v1381_v47 = vpop.xlane.xlu0 %1380 }
 0x4d1   :  { %4035 = vrcp.f32 %v1381_v47 }
 0x4d4   :  { %v1384_v48 = vpop.xlane.xlu1 %1383 }
 0x4d5   :  { %4037 = vrcp.f32 %v1384_v48 }
 0x4d7   :  { %v4036_v50 = vpop.eup %4035 }
 0x4d8   :  { %v1411_v25 = vmul.f32 %v4036_v50, %v4852_v40  ;;  %v1390_v52 = vpop.xlane.xlu0 %1389 }
 0x4d9   :  { %4039 = vrcp.f32 %v1390_v52 }
 0x4da   :  { %3888 = vmatmul.msk.f32.vlgmr.msrb.gmra.mxu2 %vm1106_vm9, %v1411_v25 }
 0x4db   :  { %v4038_v54 = vpop.eup %4037 }
 0x4dc   :  { %v1412_v55 = vmul.f32 %v4038_v54, %v4856_v29  ;;  %v1387_v56 = vpop.xlane.xlu2 %1386 }
 0x4dd   :  { %4041 = vrcp.f32 %v1387_v56 }
 0x4de   :  { %3889 = vmatmul.msk.f32.vlgmr.msrb.gmra.mxu3 %vm1106_vm9, %v1412_v55 }
 0x4df   :  { %v4040_v57 = vpop.eup %4039 }
 0x4e0   :  { %v1414_v61 = vmul.f32 %v4040_v57, %v4860_v45 }
 0x4e2   :  { %3891 = vmatmul.msk.f32.vlgmr.msra.gmra.mxu1 %vm1106_vm9, %v1414_v61 }
 0x4e3   :  { %v4042_v3 = vpop.eup %4041 }
 0x4e4   :  { %v1393_v12 = vpop.xlane.xlu0 %1392  ;;  %v1413_v40 = vmul.f32 %v4042_v3, %v4865_v58  ;;  %v1399_v13 = vpop.xlane.xlu2 %1398 }
 0x4e5   :  { %v1396_v16 = vpop.xlane.xlu1 %1395  ;;  %4043 = vrcp.f32 %v1393_v12 }
 0x4e6   :  { %4045 = vrcp.f32 %v1399_v13  ;;  %3890 = vmatmul.msk.f32.vlgmr.msrb.gmra.mxu0 %vm1106_vm9, %v1413_v40 }
 0x4e7   :  { %4047 = vrcp.f32 %v1396_v16 }
 0x4eb   :  { %v4044_v29 = vpop.eup %4043 }
 0x4ec   :  { %v4046_v17 = vpop.eup %4045  ;;  %v1415_v21 = vmul.f32 %v4044_v29, %v4871_v4  ;;  %v1402_v36 = vpop.xlane.xlu0 %1401 }
 0x4ed   :  { %v4048_v22 = vpop.eup %4047  ;;  %v1417_v45 = vmul.f32 %v4046_v17, %v4869_v51  ;;  %4049 = vrcp.f32 %v1402_v36 }
 0x4ee   :  { %v1416_v26 = vmul.f32 %v4048_v22, %v4873_v9  ;;  %3892 = vmatmul.msk.f32.vlgmr.msra.gmra.mxu2 %vm1106_vm9, %v1415_v21 }
 0x4ef   :  { %3894 = vmatmul.msk.f32.vlgmr.msra.gmra.mxu0 %vm1106_vm9, %v1417_v45 }
 0x4f0   :  { %3893 = vmatmul.msk.f32.vlgmr.msra.gmra.mxu3 %vm1106_vm9, %v1416_v26 }
 0x4f3   :  { %v4050_v58 = vpop.eup %4049 }
 0x4f4   :  { %v1418_v15 = vmul.f32 %v4050_v58, %v4881_v11 }
 0x4f6   :  { %3895 = vmatmul.msk.f32.vlgmr.msrb.gmra.mxu1 %vm1106_vm9, %v1418_v15 }
 0x55d   :  { %v1439_v4 = vpop.f32.mrf.mxu2 }
 0x55e   :  { %v1605_v59 = vrot.slane %v1439_v4, 4 }
 0x55f   :  { %v1508_v27 = vpop.f32.mrf.mxu1 }
 0x560   :  { %v1615_v31 = vrot.slane %v1508_v27, 4 }
 0x561   :  { %v1462_v35 = vpop.f32.mrf.mxu3 }
 0x562   :  { %v1616_v51 = vsel %vm398_vm8, %v1615_v31, %v1462_v35  ;;  %v1617_v49 = vrot.slane %v1462_v35, 4 }
 0x563   :  { %v1622_v32 = vperm.slane %v1616_v51, %v4572_v10  ;;  %v1485_v53 = vpop.f32.mrf.mxu0 }
 0x564   :  { %v1618_v9 = vsel %vm398_vm8, %v1508_v27, %v1617_v49  ;;  %v1603_v8 = vrot.slane %v1485_v53, 4  ;;  %v1606_v11 = vsel %vm398_vm8, %v1485_v53, %v1605_v59 }
 0x565   :  { %v1626_v23 = vperm.slane %v1618_v9, %v4572_v10  ;;  %v1614_v33 = vperm.slane %v1606_v11, %v4572_v10  ;;  %v1627_v34 = vrot.slane %v1622_v32, 4 }
 0x566   :  { %v1604_v28 = vsel %vm398_vm8, %v1603_v8, %v1439_v4 }
 0x567   :  { %v1639_v30 = vrot.slane %v1626_v23, 4  ;;  %v1610_v60 = vperm.slane %v1604_v28, %v4572_v10  ;;  %v1641_v19 = vrot.slane %v1614_v33, 4 }
 0x569   :  { %v1640_v37 = vsel %vm398_vm8, %v1639_v30, %v1614_v33  ;;  %v1628_v39 = vsel %vm398_vm8, %v1627_v34, %v1610_v60  ;;  %v1629_v0 = vrot.slane %v1610_v60, 4  ;;  %v1642_v1 = vsel %vm398_vm8, %v1626_v23, %v1641_v19 }
 0x56a   :  { %v1646_v2 = vperm.slane %v1640_v37, %v4583_v20  ;;  %v1634_v62 = vperm.slane %v1628_v39, %v4583_v20  ;;  %v1650_v42 = vperm.slane %v1642_v1, %v4583_v20 }
 0x56b   :  { %v1630_v24 = vsel %vm398_vm8, %v1622_v32, %v1629_v0 }
 0x56c   :  { %v1638_v7 = vperm.slane %v1630_v24, %v4583_v20  ;;  %v1651_v18 = vrot.slane %v1634_v62, 4  ;;  %v1655_v41 = vrot.slane %v1646_v2, 4  ;;  %v1657_v43 = vrot.slane %v1650_v42, 4  ;;  %v1577_v38 = vpop.f32.mrf.mxu0 }
 0x56d   :  { %v1659_v25 = vrot.slane %v1577_v38, 4 }
 0x56e   :  { %v1653_v44 = vrot.slane %v1638_v7, 4  ;;  %v1658_v46 = vsel %vm398_vm8, 0.0, %v1657_v43  ;;  %v1726_v47 = vsel %vm398_vm8, %v1657_v43, %v1646_v2  ;;  %v1656_v54 = vsel %vm398_vm8, 0.0, %v1655_v41 }
 0x56f   :  { %v1730_v48 = vperm.slane %v1726_v47, %v4572_v10  ;;  %v1731_v50 = vrot.slane %v1658_v46, 4  ;;  %v1652_v56 = vsel %vm398_vm8, 0.0, %v1651_v18 }
 0x570   :  { %v1654_v52 = vsel %vm398_vm8, 0.0, %v1653_v44  ;;  %v1715_v57 = vsel %vm398_vm8, %v1653_v44, %v1634_v62 }
 0x571   :  { %v1531_v55 = vpop.f32.mrf.mxu2  ;;  %v1732_v61 = vsel %vm398_vm8, %v1731_v50, %v1656_v54  ;;  %v1719_v40 = vperm.slane %v1715_v57, %v4572_v10  ;;  %v1720_v17 = vrot.slane %v1654_v52, 4  ;;  %v1751_v36 = vrot.slane %v1730_v48, 4 }
 0x572   :  { %v1660_v3 = vsel %vm398_vm8, %v1659_v25, %v1531_v55  ;;  %v1661_v12 = vrot.slane %v1531_v55, 4  ;;  %v1736_v21 = vperm.slane %v1732_v61, %v4572_v10 }
 0x573   :  { %v1666_v13 = vperm.slane %v1660_v3, %v4572_v10  ;;  %v1554_v16 = vpop.f32.mrf.mxu3  ;;  %v1600_v29 = vpop.f32.mrf.mxu1  ;;  %v1739_v58 = vrot.slane %v1719_v40, 4  ;;  %v1721_v4 = vsel %vm398_vm8, %v1720_v17, %v1652_v56 }
 0x574   :  { %v1662_v22 = vsel %vm398_vm8, %v1577_v38, %v1661_v12  ;;  %v1673_v45 = vrot.slane %v1554_v16, 4  ;;  %v1671_v26 = vrot.slane %v1600_v29, 4  ;;  %v1752_v31 = vsel %vm398_vm8, %v1736_v21, %v1751_v36 }
 0x575   :  { %v1670_v15 = vperm.slane %v1662_v22, %v4572_v10  ;;  %v1685_v27 = vrot.slane %v1666_v13, 4  ;;  %v1725_v49 = vperm.slane %v1721_v4, %v4572_v10  ;;  %v1760_v59 = vperm.slane %v1752_v31, %v4583_v20 }
 0x576   :  { %v1672_v35 = vsel %vm398_vm8, %v1671_v26, %v1554_v16  ;;  %v1674_v51 = vsel %vm398_vm8, %v1600_v29, %v1673_v45  ;;  %v1749_v23 = vrot.slane %v1736_v21, 4 }
 0x577   :  { %v1697_v9 = vrot.slane %v1670_v15, 4  ;;  %v1678_v32 = vperm.slane %v1672_v35, %v4572_v10  ;;  %v1682_v53 = vperm.slane %v1674_v51, %v4572_v10  ;;  %v1740_v8 = vsel %vm398_vm8, %v1725_v49, %v1739_v58 }
 0x578   :  { %v1765_v11 = vrot.slane %v1760_v59, 4  ;;  %v1737_v33 = vrot.slane %v1725_v49, 4  ;;  %v1748_v39 = vperm.slane %v1740_v8, %v4583_v20  ;;  %v1750_v42 = vsel %vm398_vm8, %v1749_v23, %v1730_v48 }
 0x579   :  { %v1683_v30 = vrot.slane %v1678_v32, 4  ;;  %v1686_v28 = vsel %vm398_vm8, %v1678_v32, %v1685_v27  ;;  %v1695_v34 = vrot.slane %v1682_v53, 4  ;;  %v1698_v60 = vsel %vm398_vm8, %v1682_v53, %v1697_v9 }
 0x57a   :  { %v1694_v19 = vperm.slane %v1686_v28, %v4583_v20  ;;  %v1706_v37 = vperm.slane %v1698_v60, %v4583_v20  ;;  %v1738_v0 = vsel %vm398_vm8, %v1737_v33, %v1719_v40  ;;  %v1766_v43 = vsel %vm398_vm8, %v1765_v11, %v1748_v39  ;;  %v1857_v60 = vld [vmem:[%s5867_s4 + $0x10] sm:$0xff] }
 0x57b   :  { %v1684_v1 = vsel %vm398_vm8, %v1683_v30, %v1666_v13  ;;  %v1696_v2 = vsel %vm398_vm8, %v1695_v34, %v1670_v15  ;;  %v1744_v62 = vperm.slane %v1738_v0, %v4583_v20  ;;  %v1767_v38 = vrot.slane %v1748_v39, 4  ;;  %1833 = vrot.lane.b32.xlu2 %v1766_v43, %s4118_s10  ;;  %v1858_v34 = vld [vmem:[%s5867_s4 + $0x18] sm:$0xff] }
 0x57c   :  { %v1690_v24 = vperm.slane %v1684_v1, %v4583_v20  ;;  %v1702_v7 = vperm.slane %v1696_v2, %v4583_v20  ;;  %v1709_v18 = vrot.slane %v1694_v19, 4  ;;  %v1713_v41 = vrot.slane %v1706_v37, 4  ;;  %1878 = vmatpush.msrb.mxu2 %v1858_v34  ;;  %v1856_v19 = vld [vmem:[%s5867_s4 + $0x8] sm:$0xff]  ;;  %v1855_v37 = vld [vmem:[%s5867_s4] sm:$0xff] }
 0x57d   :  { %v1756_v44 = vperm.slane %v1750_v42, %v4583_v20  ;;  %v1763_v46 = vrot.slane %v1744_v62, 4  ;;  %v1768_v56 = vsel %vm398_vm8, %v1760_v59, %v1767_v38 }
 0x57e   :  { %v1707_v47 = vrot.slane %v1690_v24, 4  ;;  %v1710_v50 = vsel %vm398_vm8, 0.0, %v1709_v18  ;;  %v1711_v25 = vrot.slane %v1702_v7, 4  ;;  %v1714_v52 = vsel %vm398_vm8, 0.0, %v1713_v41  ;;  %1841 = vrot.lane.b32.xlu0 %v1768_v56, %s4119_s11  ;;  %1879 = vmatpush.msrb.mxu2 %v1857_v60 }
 0x57f   :  { %v1774_v48 = vrot.slane %v1710_v50, 4  ;;  %v1780_v54 = vsel %vm398_vm8, %v1713_v41, %v1702_v7  ;;  %v1785_v55 = vrot.slane %v1714_v52, 4  ;;  %v1761_v61 = vrot.slane %v1756_v44, 4 }
 0x580   :  { %v1712_v57 = vsel %vm398_vm8, 0.0, %v1711_v25  ;;  %v1764_v3 = vsel %vm398_vm8, %v1756_v44, %v1763_v46  ;;  %v1708_v12 = vsel %vm398_vm8, 0.0, %v1707_v47  ;;  %v1769_v40 = vsel %vm398_vm8, %v1709_v18, %v1690_v24  ;;  %1880 = vmatpush.msrb.mxu2 %v1856_v19  ;;  %v5090_v44 = vld [vmem:[%s5866_s7] sm:$0xff] }
 0x581   :  { %1825 = vrot.lane.b32.xlu1 %v1764_v3, %s4120_s12  ;;  %v1775_v13 = vsel %vm398_vm8, %v1774_v48, %v1708_v12  ;;  %v1784_v16 = vperm.slane %v1780_v54, %v4572_v10  ;;  %v1786_v29 = vsel %vm398_vm8, %v1785_v55, %v1712_v57  ;;  %v1773_v17 = vperm.slane %v1769_v40, %v4572_v10 }
 0x582   :  { %v1779_v21 = vperm.slane %v1775_v13, %v4572_v10  ;;  %v1790_v36 = vperm.slane %v1786_v29, %v4572_v10  ;;  %v1762_v22 = vsel %vm398_vm8, %v1761_v61, %v1744_v62  ;;  %1881 = vmatpush.msrb.mxu2 %v1855_v37  ;;  %v1859_v46 = vperm.slane %v5090_v44, 4 }
 0x583   :  { %v1805_v45 = vrot.slane %v1784_v16, 4  ;;  %v1793_v26 = vrot.slane %v1773_v17, 4  ;;  %v1938_v34 = vperm.slane %v5090_v44, 3 }
 0x584   :  { %v1791_v58 = vrot.slane %v1779_v21, 4  ;;  %v1803_v15 = vrot.slane %v1790_v36, 4 }
 0x585   :  { %v1806_v27 = vsel %vm398_vm8, %v1790_v36, %v1805_v45  ;;  %v1794_v4 = vsel %vm398_vm8, %v1779_v21, %v1793_v26  ;;  %v1944_v36 = vld [vmem:[%s5868_s5 + $0x18] sm:$0xff]  ;;  %v1942_v26 = vld [vmem:[%s5868_s5 + $0x8] sm:$0xff] }
 0x586   :  { %v1814_v31 = vperm.slane %v1806_v27, %v4583_v20  ;;  %v1792_v35 = vsel %vm398_vm8, %v1791_v58, %v1773_v17  ;;  %v1804_v51 = vsel %vm398_vm8, %v1803_v15, %v1784_v16  ;;  %v1802_v49 = vperm.slane %v1794_v4, %v4583_v20  ;;  %1964 = vmatpush.msrb.mxu3 %v1944_v36  ;;  %v1941_v58 = vld [vmem:[%s5868_s5] sm:$0xff]  ;;  %v2008_v15 = vld [vmem:[%s5869_s6 + $0x78] sm:$0xff]  ;;  %v2007_v27 = vld [vmem:[%s5869_s6 + $0x70] sm:$0xff] }
 0x587   :  { %v1798_v59 = vperm.slane %v1792_v35, %v4583_v20  ;;  %v1810_v9 = vperm.slane %v1804_v51, %v4583_v20  ;;  %2010 = vmatpush.msrb.mxu0 %v2008_v15  ;;  %v2006_v4 = vld [vmem:[%s5869_s6 + $0x68] sm:$0xff] }
 0x588   :  { %v1819_v32 = vrot.slane %v1814_v31, 4  ;;  %v1821_v53 = vrot.slane %v1802_v49, 4 }
 0x589   :  { %v1815_v23 = vrot.slane %v1810_v9, 4  ;;  %v1817_v8 = vrot.slane %v1798_v59, 4  ;;  %2011 = vmatpush.msrb.mxu0 %v2007_v27 }
 0x58a   :  { %v1820_v11 = vsel %vm398_vm8, %v1819_v32, %v1802_v49  ;;  %v1822_v33 = vsel %vm398_vm8, %v1814_v31, %v1821_v53 }
 0x58b   :  { %1835 = vrot.lane.b32.xlu0 %v1820_v11, %s4118_s10  ;;  %v1818_v30 = vsel %vm398_vm8, %v1810_v9, %v1817_v8  ;;  %v1816_v28 = vsel %vm398_vm8, %v1815_v23, %v1798_v59  ;;  %1843 = vrot.lane.b32.xlu2 %v1822_v33, %s4119_s11  ;;  %v1935_v8 = vperm.slane %v5090_v44, 2 }
 0x58c   :  { %1827 = vrot.lane.b32.xlu1 %v1818_v30, %s4120_s12  ;;  %2012 = vmatpush.msrb.mxu0 %v2006_v4 }
 0x5d5   :  { %v1834_v0 = vpop.permute.xlu2 %1833 }
 0x5e5   :  { %v1844_v41 = vpop.permute.xlu2 %1843 }
 0x5f0   :  { %v1842_v2 = vpop.permute.xlu0 %1841 }
 0x5f3   :  { %v1826_v39 = vpop.permute.xlu1 %1825 }
 0x5f4   :  { %v1847_v1 = vsel %vm1106_vm9, %v1762_v22, %v1826_v39  ;;  %v1943_v22 = vld [vmem:[%s5868_s5 + $0x10] sm:$0xff] }
 0x5f5   :  { %v1850_v62 = vsel %vm1849_vm11, %v1847_v1, %v1834_v0  ;;  %1965 = vmatpush.msrb.mxu3 %v1943_v22 }
 0x5f6   :  { %v1853_v42 = vsel %vm1852_vm12, %v1850_v62, %v1842_v2 }
 0x5f7   :  { %3896 = vmatmul.msk.f32.vlgmr.msrb.gmra.mxu2 %vm285_vm0, %v1853_v42  ;;  %1966 = vmatpush.msrb.mxu3 %v1942_v26 }
 0x5f9   :  { %1967 = vmatpush.msrb.mxu3 %v1941_v58 }
 0x5fd   :  { %v1836_v7 = vpop.permute.xlu0 %1835 }
 0x5fe   :  { %v1828_v24 = vpop.permute.xlu1 %1827 }
 0x5ff   :  { %v1848_v18 = vsel %vm1106_vm9, %v1816_v28, %v1828_v24 }
 0x600   :  { %v1851_v43 = vsel %vm1849_vm11, %v1848_v18, %v1836_v7  ;;  %v2005_v7 = vld [vmem:[%s5869_s6 + $0x60] sm:$0xff]  ;;  %v2004_v18 = vld [vmem:[%s5869_s6 + $0x58] sm:$0xff] }
 0x601   :  { %v1854_v38 = vsel %vm1852_vm12, %v1851_v43, %v1844_v41  ;;  %2013 = vmatpush.msrb.mxu0 %v2005_v7  ;;  %v2003_v41 = vld [vmem:[%s5869_s6 + $0x50] sm:$0xff]  ;;  %v2002_v43 = vld [vmem:[%s5869_s6 + $0x48] sm:$0xff] }
 0x602   :  { %3897 = vmatmul.msk.f32.gmra.mxu2 %vm285_vm0, %v1854_v38  ;;  %v2001_v38 = vld [vmem:[%s5869_s6 + $0x40] sm:$0xff]  ;;  %v3902_v7 = vld [vmem:[%s5865_s3 + $0x28] sm:$0xff] }
 0x603   :  { %2014 = vmatpush.msrb.mxu0 %v2004_v18  ;;  %v3901_v18 = vld [vmem:[%s5865_s3 + $0x20] sm:$0xff] }
 0x605   :  { %2015 = vmatpush.msrb.mxu0 %v2003_v41 }
 0x607   :  { %2016 = vmatpush.msrb.mxu0 %v2002_v43 }
 0x609   :  { %2017 = vmatpush.msrb.mxu0 %v2001_v38 }
 0x67a   :  { %v1883_v47 = vpop.f32.mrf.mxu2 }
 0x67b   :  { %v1884_v50 = vadd.f32 %v1883_v47, %v1859_v46  ;;  %v1999_v47 = vld [vmem:[%s5869_s6 + $0x30] sm:$0xff] }
 0x67d   :  { %v5094_v25 = vadd.f32 %v1884_v50, %v4501_v63  ;;  %v1998_v50 = vld [vmem:[%s5869_s6 + $0x28] sm:$0xff] }
 0x67f   :  { %v1891_v52 = vsel %vm285_vm0, %v5094_v25, 0.0 }
 0x680   :  { %1892 = vadd.xlane.f32.xlu1 %v1891_v52  ;;  %v1997_v52 = vld [vmem:[%s5869_s6 + $0x20] sm:$0xff] }
 0x685   :  { %v1886_v48 = vpop.f32.mrf.mxu2 }
 0x686   :  { %v1887_v54 = vadd.f32 %v1886_v48, %v1859_v46  ;;  %v2000_v46 = vld [vmem:[%s5869_s6 + $0x38] sm:$0xff] }
 0x687   :  { %2018 = vmatpush.msrb.mxu0 %v2000_v46  ;;  %v1996_v48 = vld [vmem:[%s5869_s6 + $0x18] sm:$0xff] }
 0x688   :  { %v5099_v55 = vadd.f32 %v1887_v54, %v4505_v6  ;;  %v1945_v54 = vperm.slane %v5090_v44, 7 }
 0x689   :  { %2019 = vmatpush.msrb.mxu0 %v1999_v47 }
 0x68a   :  { %v1894_v56 = vsel %vm285_vm0, %v5099_v55, 0.0 }
 0x68b   :  { %1895 = vadd.xlane.f32.xlu0 %v1894_v56  ;;  %2020 = vmatpush.msrb.mxu0 %v1998_v50  ;;  %v1995_v56 = vld [vmem:[%s5869_s6 + $0x10] sm:$0xff] }
 0x68d   :  { %2021 = vmatpush.msrb.mxu0 %v1997_v52 }
 0x68f   :  { %2022 = vmatpush.msrb.mxu0 %v1996_v48  ;;  %v3900_v48 = vld [vmem:[%s5866_s7 + $0x8] sm:$0xff] }
 0x691   :  { %2023 = vmatpush.msrb.mxu0 %v1995_v56 }
 0x6f3   :  { %v1893_v57 = vpop.xlane.xlu1 %1892 }
 0x6f4   :  { %v1897_v61 = vmul.f32 %v1893_v57, %v4509_v14 }
 0x6f6   :  { %v1899_v3 = vsub.f32 %v5094_v25, %v1897_v61  ;;  %v1994_v61 = vld [vmem:[%s5869_s6 + $0x8] sm:$0xff] }
 0x6f7   :  { %2024 = vmatpush.msrb.mxu0 %v1994_v61 }
 0x6f8   :  { %v1901_v63 = vmul.f32 %v1899_v3, %v1899_v3 }
 0x6fa   :  { %v1903_v12 = vsel %vm285_vm0, %v1901_v63, 0.0  ;;  %v1993_v63 = vld [vmem:[%s5869_s6] sm:$0xff] }
 0x6fb   :  { %1904 = vadd.xlane.f32.xlu2 %v1903_v12  ;;  %2025 = vmatpush.msrb.mxu0 %v1993_v63 }
 0x6fe   :  { %v1896_v40 = vpop.xlane.xlu0 %1895 }
 0x6ff   :  { %v1898_v13 = vmul.f32 %v1896_v40, %v4509_v14 }
 0x701   :  { %v1900_v16 = vsub.f32 %v5099_v55, %v1898_v13 }
 0x703   :  { %v1902_v6 = vmul.f32 %v1900_v16, %v1900_v16 }
 0x705   :  { %v1906_v29 = vsel %vm285_vm0, %v1902_v6, 0.0 }
 0x706   :  { %1907 = vadd.xlane.f32.xlu1 %v1906_v29 }
 0x76e   :  { %v1905_v17 = vpop.xlane.xlu2 %1904 }
 0x76f   :  { %v1909_v21 = vmul.f32 %v1905_v17, %v4509_v14 }
 0x771   :  { %v1911_v45 = vadd.f32 1e-06, %v1909_v21 }
 0x773   :  { %4051 = vrsqrt.f32 %v1911_v45  ;;  %vm1919_vm14 = vweird.f32 %v1911_v45 }
 0x779   :  { %v4052_v31 = vpop.eup %4051  ;;  %v1908_v35 = vpop.xlane.xlu1 %1907 }
 0x77a   :  { %v1914_v51 = vmul.f32 %v4052_v31, %v1911_v45  ;;  %v1910_v49 = vmul.f32 %v1908_v35, %v4509_v14  ;;  %vm1920_vm13 = vweird.f32 %v4052_v31 }
 0x77b   :  { %vm1921_vm15 = vmor %vm1919_vm14, %vm1920_vm13 }
 0x77c   :  { %v1915_v59 = vmul.f32 %v4052_v31, %v1914_v51  ;;  %v1912_v9 = vadd.f32 1e-06, %v1910_v49 }
 0x77e   :  { %v1916_v32 = vmul.f32 0.5, %v1915_v59  ;;  %4053 = vrsqrt.f32 %v1912_v9  ;;  %vm1929_vm2 = vweird.f32 %v1912_v9  ;;  %v2009_v59 = vperm.slane %v5090_v44, 5 }
 0x780   :  { %v1917_v53 = vsub.f32 1.5, %v1916_v32 }
 0x782   :  { %v1918_v23 = vmul.f32 %v4052_v31, %v1917_v53 }
 0x784   :  { %v4054_v11 = vpop.eup %4053  ;;  %v1922_v33 = vsel %vm1921_vm15, %v4052_v31, %v1918_v23 }
 0x785   :  { %v1933_v30 = vmul.f32 %v1922_v33, %v1899_v3  ;;  %v1924_v28 = vmul.f32 %v4054_v11, %v1912_v9  ;;  %vm1930_vm1 = vweird.f32 %v4054_v11 }
 0x786   :  { %vm1931_vm3 = vmor %vm1929_vm2, %vm1930_vm1 }
 0x787   :  { %v1936_v60 = vmul.f32 %v1935_v8, %v1933_v30  ;;  %v1925_v19 = vmul.f32 %v4054_v11, %v1924_v28 }
 0x789   :  { %v1926_v37 = vmul.f32 0.5, %v1925_v19  ;;  %v1939_v39 = vadd.f32 %v1938_v34, %v1936_v60 }
 0x78b   :  { %v1927_v0 = vsub.f32 1.5, %v1926_v37  ;;  %3898 = vmatmul.msk.f32.vlgmr.msrb.gmra.mxu3 %vm285_vm0, %v1939_v39 }
 0x78d   :  { %v1928_v1 = vmul.f32 %v4054_v11, %v1927_v0 }
 0x78f   :  { %v1932_v2 = vsel %vm1931_vm3, %v4054_v11, %v1928_v1 }
 0x790   :  { %v1934_v62 = vmul.f32 %v1932_v2, %v1900_v16 }
 0x792   :  { %v1937_v42 = vmul.f32 %v1935_v8, %v1934_v62  ;;  %v3904_v62 = vld [vmem:[%s5865_s3 + $0x38] sm:$0xff] }
 0x793   :  { %2111 = vmatpush.msra.mxu1 %v3904_v62 }
 0x794   :  { %v1940_v24 = vadd.f32 %v1938_v34, %v1937_v42  ;;  %v3903_v42 = vld [vmem:[%s5865_s3 + $0x30] sm:$0xff] }
 0x795   :  { %2112 = vmatpush.msra.mxu1 %v3903_v42 }
 0x796   :  { %3899 = vmatmul.msk.f32.gmra.mxu3 %vm285_vm0, %v1940_v24 }
 0x797   :  { %2113 = vmatpush.msra.mxu1 %v3902_v7 }
 0x799   :  { %2114 = vmatpush.msra.mxu1 %v3901_v18 }
 0x80e   :  { %v1969_v57 = vpop.f32.mrf.mxu3 }
 0x80f   :  { %v1970_v3 = vadd.f32 %v1969_v57, %v1945_v54  ;;  %v2081_v57 = vperm.slane %v3900_v48, 0 }
 0x811   :  { %v1975_v12 = vmul.f32 %v1970_v3, %v1970_v3 }
 0x813   :  { %v1977_v40 = vmul.f32 %v1975_v12, %v1970_v3 }
 0x815   :  { %v1979_v13 = vmul.f32 0.044715, %v1977_v40  ;;  %v2084_v40 = vperm.slane %v3900_v48, 1 }
 0x817   :  { %v1981_v16 = vadd.f32 %v1979_v13, %v1970_v3 }
 0x819   :  { %v1983_v6 = vmul.f32 0.7978846, %v1981_v16  ;;  %v1972_v29 = vpop.f32.mrf.mxu3 }
 0x81a   :  { %v1973_v17 = vadd.f32 %v1972_v29, %v1945_v54 }
 0x81b   :  { %4055 = vtanh.f32 %v1983_v6 }
 0x81c   :  { %v1976_v21 = vmul.f32 %v1973_v17, %v1973_v17 }
 0x81e   :  { %v1978_v36 = vmul.f32 %v1976_v21, %v1973_v17 }
 0x820   :  { %v1980_v22 = vmul.f32 0.044715, %v1978_v36 }
 0x821   :  { %v4056_v45 = vpop.eup %4055 }
 0x822   :  { %v1987_v26 = vadd.f32 1.0, %v4056_v45  ;;  %v1982_v58 = vadd.f32 %v1980_v22, %v1973_v17 }
 0x824   :  { %v1989_v15 = vmul.f32 0.5, %v1987_v26  ;;  %v1984_v27 = vmul.f32 0.7978846, %v1982_v58  ;;  %v2092_v58 = vperm.slane %v3900_v48, 6 }
 0x826   :  { %v1991_v4 = vmul.f32 %v1989_v15, %v1970_v3  ;;  %4057 = vtanh.f32 %v1984_v27 }
 0x828   :  { %2026 = vmatmul.f32.vlgmr.msrb.gmra.mxu0 %v1991_v4 }
 0x82c   :  { %v4058_v31 = vpop.eup %4057 }
 0x82d   :  { %v1988_v35 = vadd.f32 1.0, %v4058_v31 }
 0x82f   :  { %v1990_v51 = vmul.f32 0.5, %v1988_v35 }
 0x831   :  { %v1992_v49 = vmul.f32 %v1990_v51, %v1973_v17 }
 0x833   :  { %2029 = vmatmul.f32.gmra.mxu0 %v1992_v49 }
 0x8a5   :  { %v2027_v9 = vpop.f32.mrf.mxu0 }
 0x8a6   :  { %v2028_v32 = vadd.f32 %v2027_v9, %v2009_v59 }
 0x8a8   :  { %v5178_v53 = vadd.f32 %v2028_v32, %v5094_v25 }
 0x8aa   :  { %v2037_v23 = vsel %vm285_vm0, %v5178_v53, 0.0 }
 0x8ab   :  { %2038 = vadd.xlane.f32.xlu0 %v2037_v23 }
 0x8b0   :  { %v2030_v8 = vpop.f32.mrf.mxu0 }
 0x8b1   :  { %v2031_v11 = vadd.f32 %v2030_v8, %v2009_v59 }
 0x8b3   :  { %v5183_v33 = vadd.f32 %v2031_v11, %v5099_v55 }
 0x8b5   :  { %v2040_v30 = vsel %vm285_vm0, %v5183_v33, 0.0 }
 0x8b6   :  { %2041 = vadd.xlane.f32.xlu2 %v2040_v30 }
 0x91e   :  { %v2039_v28 = vpop.xlane.xlu0 %2038 }
 0x91f   :  { %v2043_v44 = vmul.f32 %v2039_v28, %v4509_v14 }
 0x921   :  { %v2045_v34 = vsub.f32 %v5178_v53, %v2043_v44 }
 0x923   :  { %v2047_v25 = vmul.f32 %v2045_v34, %v2045_v34 }
 0x925   :  { %v2049_v60 = vsel %vm285_vm0, %v2047_v25, 0.0 }
 0x926   :  { %2050 = vadd.xlane.f32.xlu1 %v2049_v60 }
 0x929   :  { %v2042_v19 = vpop.xlane.xlu2 %2041 }
 0x92a   :  { %v2044_v37 = vmul.f32 %v2042_v19, %v4509_v14 }
 0x92c   :  { %v2046_v39 = vsub.f32 %v5183_v33, %v2044_v37 }
 0x92e   :  { %v2048_v55 = vmul.f32 %v2046_v39, %v2046_v39 }
 0x930   :  { %v2052_v0 = vsel %vm285_vm0, %v2048_v55, 0.0 }
 0x931   :  { %2053 = vadd.xlane.f32.xlu0 %v2052_v0 }
 0x999   :  { %v2051_v1 = vpop.xlane.xlu1 %2050 }
 0x99a   :  { %v2055_v2 = vmul.f32 %v2051_v1, %v4509_v14 }
 0x99c   :  { %v2057_v24 = vadd.f32 1e-06, %v2055_v2 }
 0x99e   :  { %4059 = vrsqrt.f32 %v2057_v24  ;;  %vm2065_vm5 = vweird.f32 %v2057_v24 }
 0x9a4   :  { %v4060_v41 = vpop.eup %4059  ;;  %v2054_v43 = vpop.xlane.xlu0 %2053 }
 0x9a5   :  { %v2060_v38 = vmul.f32 %v4060_v41, %v2057_v24  ;;  %v2056_v46 = vmul.f32 %v2054_v43, %v4509_v14  ;;  %vm2066_vm4 = vweird.f32 %v4060_v41 }
 0x9a6   :  { %vm2067_vm6 = vmor %vm2065_vm5, %vm2066_vm4 }
 0x9a7   :  { %v2061_v47 = vmul.f32 %v4060_v41, %v2060_v38  ;;  %v2058_v50 = vadd.f32 1e-06, %v2056_v46 }
 0x9a9   :  { %v2062_v52 = vmul.f32 0.5, %v2061_v47  ;;  %4061 = vrsqrt.f32 %v2058_v50  ;;  %vm2075_vm10 = vweird.f32 %v2058_v50 }
 0x9ab   :  { %v2063_v54 = vsub.f32 1.5, %v2062_v52 }
 0x9ad   :  { %v2064_v56 = vmul.f32 %v4060_v41, %v2063_v54 }
 0x9af   :  { %v4062_v61 = vpop.eup %4061  ;;  %v2068_v3 = vsel %vm2067_vm6, %v4060_v41, %v2064_v56 }
 0x9b0   :  { %v2079_v63 = vmul.f32 %v2068_v3, %v2045_v34  ;;  %v2070_v12 = vmul.f32 %v4062_v61, %v2058_v50  ;;  %vm2076_vm7 = vweird.f32 %v4062_v61 }
 0x9b1   :  { %vm2077_vm13 = vmor %vm2075_vm10, %vm2076_vm7 }
 0x9b2   :  { %v2082_v13 = vmul.f32 %v2081_v57, %v2079_v63  ;;  %v2071_v16 = vmul.f32 %v4062_v61, %v2070_v12 }
 0x9b4   :  { %v2072_v6 = vmul.f32 0.5, %v2071_v16  ;;  %v2085_v29 = vadd.f32 %v2084_v40, %v2082_v13 }
 0x9b6   :  { %v2073_v17 = vsub.f32 1.5, %v2072_v6  ;;  %3905 = vmatmul.msk.f32.vlgmr.msra.gmra.mxu1 %vm285_vm0, %v2085_v29 }
 0x9b8   :  { %v2074_v21 = vmul.f32 %v4062_v61, %v2073_v17 }
 0x9ba   :  { %v2078_v36 = vsel %vm2077_vm13, %v4062_v61, %v2074_v21 }
 0x9bb   :  { %v2080_v22 = vmul.f32 %v2078_v36, %v2046_v39 }
 0x9bd   :  { %v2083_v45 = vmul.f32 %v2081_v57, %v2080_v22 }
 0x9bf   :  { %v2086_v26 = vadd.f32 %v2084_v40, %v2083_v45 }
 0x9c1   :  { %3906 = vmatmul.msk.f32.gmra.mxu1 %vm285_vm0, %v2086_v26 }
 0xa33   :  { %v2116_v15 = vpop.f32.mrf.mxu1 }
 0xa34   :  { %v5212_v27 = vadd.f32 %v2116_v15, %v2092_v58 }
 0xa36   :  { %2136 = vrot.lane.b32.xlu0 %v5212_v27, %s4113_s29  ;;  %2130 = vrot.lane.b32.xlu1 %v5212_v27, %s4111_s27  ;;  %v2144_v49 = vrot.slane %v5212_v27, 4 }
 0xa37   :  { %2124 = vrot.lane.b32.xlu2 %v5212_v27, %s4110_s26 }
 0xa3e   :  { %v2119_v4 = vpop.f32.mrf.mxu1 }
 0xa3f   :  { %v5220_v31 = vadd.f32 %v2119_v4, %v2092_v58 }
 0xa41   :  { %2138 = vrot.lane.b32.xlu1 %v5220_v31, %s4113_s29  ;;  %2132 = vrot.lane.b32.xlu0 %v5220_v31, %s4111_s27 }
 0xa42   :  { %2126 = vrot.lane.b32.xlu2 %v5220_v31, %s4110_s26 }
 0xa4a   :  { %2362 = vrot.lane.b32.xlu2 %v5212_v27, %s4112_s28 }
 0xa91   :  { %v2125_v35 = vpop.permute.xlu2 %2124 }
 0xa92   :  { %2366 = vrot.lane.b32.xlu0 %v2125_v35, %s4112_s28  ;;  %v2156_v51 = vrot.slane %v2125_v35, 4  ;;  %v3993_v17 = vpack.i.bf16 %v2125_v35, %v5212_v27 }
 0xa9a   :  { %2364 = vrot.lane.b32.xlu0 %v5220_v31, %s4112_s28 }
 0xa9c   :  { %v5261_v24 = vpop.permute.xlu2 %2126 }
 0xaa8   :  { %v5234_v59 = vpop.permute.xlu1 %2130  ;;  %v5236_v9 = vpop.permute.xlu0 %2136 }
 0xaa9   :  { %v2142_v32 = vrot.slane %v5234_v59, 4  ;;  %v2145_v23 = vsel %vm398_vm8, %v5234_v59, %v2144_v49  ;;  %v2154_v8 = vrot.slane %v5236_v9, 4  ;;  %v2157_v11 = vsel %vm398_vm8, %v5236_v9, %v2156_v51  ;;  %2370 = vrot.lane.b32.xlu1 %v5234_v59, %s4112_s28  ;;  %2374 = vrot.lane.b32.xlu2 %v5236_v9, %s4112_s28 }
 0xaaa   :  { %v2153_v30 = vperm.slane %v2145_v23, %v4572_v10  ;;  %v2165_v28 = vperm.slane %v2157_v11, %v4572_v10  ;;  %v3998_v44 = vpack.i.bf16 %v5236_v9, %v5234_v59 }
 0xaab   :  { %v2143_v34 = vsel %vm398_vm8, %v2142_v32, %v5212_v27  ;;  %v2155_v25 = vsel %vm398_vm8, %v2154_v8, %v2125_v35 }
 0xaac   :  { %v2149_v60 = vperm.slane %v2143_v34, %v4572_v10  ;;  %v2180_v19 = vrot.slane %v2153_v30, 4  ;;  %v2161_v37 = vperm.slane %v2155_v25, %v4572_v10  ;;  %v2178_v39 = vrot.slane %v2165_v28, 4 }
 0xaae   :  { %v2168_v55 = vrot.slane %v2149_v60, 4  ;;  %v2166_v0 = vrot.slane %v2161_v37, 4  ;;  %v2179_v1 = vsel %vm398_vm8, %v2178_v39, %v2153_v30  ;;  %v2181_v2 = vsel %vm398_vm8, %v2165_v28, %v2180_v19 }
 0xaaf   :  { %v2185_v62 = vperm.slane %v2179_v1, %v4583_v20  ;;  %v2189_v42 = vperm.slane %v2181_v2, %v4583_v20 }
 0xab0   :  { %v2167_v7 = vsel %vm398_vm8, %v2166_v0, %v2149_v60  ;;  %v2169_v18 = vsel %vm398_vm8, %v2161_v37, %v2168_v55  ;;  %v2200_v37 = vrot.slane %v5220_v31, 4  ;;  %v2212_v0 = vrot.slane %v5261_v24, 4 }
 0xab1   :  { %v2173_v41 = vperm.slane %v2167_v7, %v4583_v20  ;;  %v2177_v43 = vperm.slane %v2169_v18, %v4583_v20  ;;  %v2196_v38 = vrot.slane %v2189_v42, 4  ;;  %2368 = vrot.lane.b32.xlu1 %v5261_v24, %s4112_s28  ;;  %v2194_v50 = vrot.slane %v2185_v62, 4  ;;  %v2363_v7 = vpop.permute.xlu2 %2362 }
 0xab3   :  { %v2190_v46 = vrot.slane %v2173_v41, 4  ;;  %v2192_v47 = vrot.slane %v2177_v43, 4  ;;  %v2197_v52 = vsel %vm398_vm8, 0.0, %v2196_v38  ;;  %v5270_v48 = vpop.permute.xlu1 %2138  ;;  %v5272_v54 = vpop.permute.xlu0 %2132  ;;  %v2265_v56 = vsel %vm398_vm8, %v2196_v38, %v2185_v62 }
 0xab4   :  { %v2270_v57 = vrot.slane %v2197_v52, 4  ;;  %2376 = vrot.lane.b32.xlu0 %v5270_v48, %s4112_s28  ;;  %2372 = vrot.lane.b32.xlu2 %v5272_v54, %s4112_s28  ;;  %v2195_v63 = vsel %vm398_vm8, 0.0, %v2194_v50  ;;  %v2269_v12 = vperm.slane %v2265_v56, %v4572_v10  ;;  %v2198_v39 = vrot.slane %v5272_v54, 4 }
 0xab5   :  { %v2193_v61 = vsel %vm398_vm8, 0.0, %v2192_v47  ;;  %v2191_v40 = vsel %vm398_vm8, 0.0, %v2190_v46  ;;  %v2254_v13 = vsel %vm398_vm8, %v2192_v47, %v2173_v41  ;;  %v2201_v55 = vsel %vm398_vm8, %v5272_v54, %v2200_v37 }
 0xab6   :  { %v2259_v3 = vrot.slane %v2193_v61, 4  ;;  %v2271_v6 = vsel %vm398_vm8, %v2270_v57, %v2195_v63  ;;  %v2258_v29 = vperm.slane %v2254_v13, %v4572_v10  ;;  %v2290_v45 = vrot.slane %v2269_v12, 4 }
 0xab7   :  { %v2275_v36 = vperm.slane %v2271_v6, %v4572_v10  ;;  %v2210_v1 = vrot.slane %v5270_v48, 4  ;;  %v2199_v2 = vsel %vm398_vm8, %v2198_v39, %v5220_v31  ;;  %v2209_v62 = vperm.slane %v2201_v55, %v4572_v10 }
 0xab8   :  { %v2260_v16 = vsel %vm398_vm8, %v2259_v3, %v2191_v40  ;;  %v2278_v22 = vrot.slane %v2258_v29, 4  ;;  %v2213_v42 = vsel %vm398_vm8, %v5270_v48, %v2212_v0  ;;  %v2205_v18 = vperm.slane %v2199_v2, %v4572_v10 }
 0xab9   :  { %v2264_v21 = vperm.slane %v2260_v16, %v4572_v10  ;;  %v2291_v58 = vsel %vm398_vm8, %v2275_v36, %v2290_v45  ;;  %v2288_v27 = vrot.slane %v2275_v36, 4  ;;  %v2211_v41 = vsel %vm398_vm8, %v2210_v1, %v5261_v24 }
 0xaba   :  { %v2299_v51 = vperm.slane %v2291_v58, %v4583_v20  ;;  %v2221_v43 = vperm.slane %v2213_v42, %v4572_v10  ;;  %v2236_v38 = vrot.slane %v2209_v62, 4  ;;  %v2217_v46 = vperm.slane %v2211_v41, %v4572_v10 }
 0xabb   :  { %v2279_v26 = vsel %vm398_vm8, %v2264_v21, %v2278_v22  ;;  %v2276_v15 = vrot.slane %v2264_v21, 4  ;;  %v2289_v23 = vsel %vm398_vm8, %v2288_v27, %v2269_v12  ;;  %v2224_v47 = vrot.slane %v2205_v18, 4 }
 0xabc   :  { %3994 = vrot.lane.b32.xlu0 %v3993_v17, %s4117_s30  ;;  %v2287_v4 = vperm.slane %v2279_v26, %v4583_v20  ;;  %v2304_v32 = vrot.slane %v2299_v51, 4  ;;  %v2295_v8 = vperm.slane %v2289_v23, %v4583_v20  ;;  %v2234_v50 = vrot.slane %v2221_v43, 4 }
 0xabd   :  { %v2277_v49 = vsel %vm398_vm8, %v2276_v15, %v2258_v29  ;;  %v2237_v52 = vsel %vm398_vm8, %v2221_v43, %v2236_v38  ;;  %v2222_v57 = vrot.slane %v2217_v46, 4  ;;  %v2225_v61 = vsel %vm398_vm8, %v2217_v46, %v2224_v47 }
 0xabe   :  { %v2283_v35 = vperm.slane %v2277_v49, %v4583_v20  ;;  %v2306_v30 = vrot.slane %v2287_v4, 4  ;;  %v5300_v28 = vsel %vm398_vm8, %v2304_v32, %v2287_v4  ;;  %v2300_v34 = vrot.slane %v2295_v8, 4 }
 0xabf   :  { %v2245_v63 = vperm.slane %v2237_v52, %v4583_v20  ;;  %v2235_v12 = vsel %vm398_vm8, %v2234_v50, %v2209_v62  ;;  %v2233_v13 = vperm.slane %v2225_v61, %v4583_v20  ;;  %v2223_v6 = vsel %vm398_vm8, %v2222_v57, %v2205_v18 }
 0xac0   :  { %v2302_v11 = vrot.slane %v2283_v35, 4  ;;  %v5306_v60 = vsel %vm398_vm8, %v2299_v51, %v2306_v30  ;;  %v5309_v19 = vsel %vm398_vm8, %v2300_v34, %v2283_v35  ;;  %v2241_v29 = vperm.slane %v2235_v12, %v4583_v20 }
 0xac1   :  { %v2252_v17 = vrot.slane %v2245_v63, 4  ;;  %v2229_v36 = vperm.slane %v2223_v6, %v4583_v20  ;;  %v2248_v22 = vrot.slane %v2233_v13, 4  ;;  %v2388_v49 = vrot.slane %v2363_v7, 4 }
 0xac2   :  { %v5303_v25 = vsel %vm398_vm8, %v2295_v8, %v2302_v11  ;;  %v2250_v58 = vrot.slane %v2241_v29, 4 }
 0xac3   :  { %v2253_v15 = vsel %vm398_vm8, 0.0, %v2252_v17  ;;  %v2246_v35 = vrot.slane %v2229_v36, 4  ;;  %v2249_v32 = vsel %vm398_vm8, 0.0, %v2248_v22  ;;  %v2319_v47 = vsel %vm398_vm8, %v2252_v17, %v2241_v29 }
 0xac4   :  { %v2324_v11 = vrot.slane %v2253_v15, 4  ;;  %v2251_v39 = vsel %vm398_vm8, 0.0, %v2250_v58  ;;  %v2313_v1 = vrot.slane %v2249_v32, 4  ;;  %v2308_v29 = vsel %vm398_vm8, %v2248_v22, %v2229_v36 }
 0xac5   :  { %v2247_v46 = vsel %vm398_vm8, 0.0, %v2246_v35 }
 0xac6   :  { %v2325_v50 = vsel %vm398_vm8, %v2324_v11, %v2251_v39 }
 0xac7   :  { %v5363_v17 = vperm.slane %v2325_v50, %v4572_v10 }
 0xb03   :  { %v2375_v3 = vpop.permute.xlu2 %2374 }
 0xb04   :  { %v2367_v56 = vpop.permute.xlu0 %2366  ;;  %v2398_v16 = vrot.slane %v2375_v3, 4 }
 0xb05   :  { %v2400_v40 = vrot.slane %v2367_v56, 4 }
 0xb06   :  { %v2399_v45 = vsel %vm398_vm8, %v2398_v16, %v2367_v56 }
 0xb07   :  { %v2401_v21 = vsel %vm398_vm8, %v2375_v3, %v2400_v40  ;;  %v2405_v27 = vperm.slane %v2399_v45, %v4572_v10  ;;  %v2314_v40 = vsel %vm398_vm8, %v2313_v1, %v2247_v46 }
 0xb08   :  { %v2409_v4 = vperm.slane %v2401_v21, %v4572_v10 }
 0xb09   :  { %v2410_v2 = vrot.slane %v2405_v27, 4 }
 0xb0a   :  { %v2422_v55 = vrot.slane %v2409_v4, 4 }
 0xb0c   :  { %v2365_v51 = vpop.permute.xlu0 %2364 }
 0xb0d   :  { %v2444_v30 = vrot.slane %v2365_v51, 4 }
 0xb0e   :  { %v2373_v26 = vpop.permute.xlu2 %2372 }
 0xb0f   :  { %v2442_v23 = vrot.slane %v2373_v26, 4  ;;  %v2445_v62 = vsel %vm398_vm8, %v2373_v26, %v2444_v30  ;;  %v5367_v26 = vperm.slane %v2319_v47, %v4572_v10  ;;  %v5390_v47 = vperm.slane %v2308_v29, %v4572_v10 }
 0xb10   :  { %v2453_v56 = vperm.slane %v2445_v62, %v4572_v10 }
 0xb11   :  { %v2443_v18 = vsel %vm398_vm8, %v2442_v23, %v2365_v51  ;;  %v5370_v51 = vperm.slane %v2314_v40, %v4572_v10 }
 0xb12   :  { %v2449_v3 = vperm.slane %v2443_v18, %v4572_v10  ;;  %v2480_v58 = vrot.slane %v2453_v56, 4 }
 0xb13   :  { %v2330_v29 = vrot.slane %v5370_v51, 4 }
 0xb1b   :  { %v2371_v8 = vpop.permute.xlu1 %2370 }
 0xb1c   :  { %v2386_v34 = vrot.slane %v2371_v8, 4  ;;  %v2389_v37 = vsel %vm398_vm8, %v2371_v8, %v2388_v49  ;;  %v2468_v49 = vrot.slane %v2449_v3, 4 }
 0xb1d   :  { %v2397_v0 = vperm.slane %v2389_v37, %v4572_v10 }
 0xb1e   :  { %v2387_v42 = vsel %vm398_vm8, %v2386_v34, %v2363_v7 }
 0xb1f   :  { %v2393_v41 = vperm.slane %v2387_v42, %v4572_v10  ;;  %v2423_v43 = vsel %vm398_vm8, %v2422_v55, %v2397_v0  ;;  %v2424_v38 = vrot.slane %v2397_v0, 4 }
 0xb20   :  { %v2429_v52 = vperm.slane %v2423_v43, %v4583_v20 }
 0xb21   :  { %v2411_v57 = vsel %vm398_vm8, %v2410_v2, %v2393_v41  ;;  %v2412_v7 = vrot.slane %v2393_v41, 4  ;;  %v2425_v61 = vsel %vm398_vm8, %v2409_v4, %v2424_v38 }
 0xb22   :  { %v2417_v63 = vperm.slane %v2411_v57, %v4583_v20  ;;  %v2433_v12 = vperm.slane %v2425_v61, %v4583_v20  ;;  %v2438_v16 = vrot.slane %v2429_v52, 4 }
 0xb23   :  { %v2413_v13 = vsel %vm398_vm8, %v2405_v27, %v2412_v7  ;;  %v2369_v6 = vpop.permute.xlu1 %2368 }
 0xb24   :  { %v2421_v21 = vperm.slane %v2413_v13, %v4583_v20  ;;  %v2440_v45 = vrot.slane %v2433_v12, 4  ;;  %v2434_v15 = vrot.slane %v2417_v63, 4  ;;  %v2456_v4 = vrot.slane %v2369_v6, 4 }
 0xb25   :  { %v2439_v32 = vsel %vm398_vm8, 0.0, %v2438_v16 }
 0xb26   :  { %v2436_v27 = vrot.slane %v2421_v21, 4  ;;  %v2441_v35 = vsel %vm398_vm8, 0.0, %v2440_v45  ;;  %v2509_v36 = vsel %vm398_vm8, %v2440_v45, %v2429_v52  ;;  %v2377_v22 = vpop.permute.xlu0 %2376  ;;  %v2435_v55 = vsel %vm398_vm8, 0.0, %v2434_v15 }
 0xb27   :  { %v2514_v23 = vrot.slane %v2441_v35, 4  ;;  %v2454_v8 = vrot.slane %v2377_v22, 4  ;;  %v2457_v11 = vsel %vm398_vm8, %v2377_v22, %v2456_v4  ;;  %v2513_v37 = vperm.slane %v2509_v36, %v4572_v10 }
 0xb28   :  { %v2437_v30 = vsel %vm398_vm8, 0.0, %v2436_v27  ;;  %v2498_v34 = vsel %vm398_vm8, %v2436_v27, %v2417_v63  ;;  %v2465_v39 = vperm.slane %v2457_v11, %v4572_v10  ;;  %v2342_v27 = vrot.slane %v5363_v17, 4 }
 0xb29   :  { %v2503_v0 = vrot.slane %v2437_v30, 4  ;;  %v2515_v1 = vsel %vm398_vm8, %v2514_v23, %v2439_v32  ;;  %v2455_v2 = vsel %vm398_vm8, %v2454_v8, %v2369_v6  ;;  %v2502_v38 = vperm.slane %v2498_v34, %v4572_v10 }
 0xb2a   :  { %v2519_v62 = vperm.slane %v2515_v1, %v4572_v10  ;;  %v2461_v42 = vperm.slane %v2455_v2, %v4572_v10  ;;  %v2478_v18 = vrot.slane %v2465_v39, 4  ;;  %v2481_v41 = vsel %vm398_vm8, %v2465_v39, %v2480_v58 }
 0xb2b   :  { %v2489_v43 = vperm.slane %v2481_v41, %v4583_v20  ;;  %v2504_v46 = vsel %vm398_vm8, %v2503_v0, %v2435_v55  ;;  %v2534_v50 = vrot.slane %v2513_v37, 4  ;;  %v2522_v6 = vrot.slane %v2502_v38, 4 }
 0xb2c   :  { %v2466_v52 = vrot.slane %v2461_v42, 4  ;;  %v2469_v57 = vsel %vm398_vm8, %v2461_v42, %v2468_v49  ;;  %v2479_v7 = vsel %vm398_vm8, %v2478_v18, %v2453_v56  ;;  %v2532_v61 = vrot.slane %v2519_v62, 4 }
 0xb2d   :  { %v2477_v63 = vperm.slane %v2469_v57, %v4583_v20  ;;  %v2485_v12 = vperm.slane %v2479_v7, %v4583_v20  ;;  %v2496_v40 = vrot.slane %v2489_v43, 4  ;;  %v2508_v16 = vperm.slane %v2504_v46, %v4572_v10 }
 0xb2e   :  { %v2467_v13 = vsel %vm398_vm8, %v2466_v52, %v2449_v3  ;;  %v2535_v49 = vsel %vm398_vm8, %v2519_v62, %v2534_v50  ;;  %v2533_v22 = vsel %vm398_vm8, %v2532_v61, %v2513_v37  ;;  %v2331_v55 = vsel %vm398_vm8, %v2330_v29, %v5390_v47 }
 0xb2f   :  { %v2473_v21 = vperm.slane %v2467_v13, %v4583_v20  ;;  %v2492_v45 = vrot.slane %v2477_v63, 4  ;;  %v2494_v58 = vrot.slane %v2485_v12, 4  ;;  %v2497_v15 = vsel %vm398_vm8, 0.0, %v2496_v40 }
 0xb30   :  { %v2563_v56 = vsel %vm398_vm8, %v2496_v40, %v2485_v12  ;;  %v2568_v4 = vrot.slane %v2497_v15, 4  ;;  %v2523_v39 = vsel %vm398_vm8, %v2508_v16, %v2522_v6  ;;  %v2543_v37 = vperm.slane %v2535_v49, %v4583_v20 }
 0xb31   :  { %v2490_v35 = vrot.slane %v2473_v21, 4  ;;  %v2493_v3 = vsel %vm398_vm8, 0.0, %v2492_v45  ;;  %v2495_v36 = vsel %vm398_vm8, 0.0, %v2494_v58  ;;  %v2552_v32 = vsel %vm398_vm8, %v2492_v45, %v2473_v21 }
 0xb32   :  { %v2557_v23 = vrot.slane %v2493_v3, 4  ;;  %v2567_v8 = vperm.slane %v2563_v56, %v4572_v10  ;;  %v2569_v11 = vsel %vm398_vm8, %v2568_v4, %v2495_v36  ;;  %v2531_v1 = vperm.slane %v2523_v39, %v4583_v20 }
 0xb33   :  { %v2491_v30 = vsel %vm398_vm8, 0.0, %v2490_v35  ;;  %v2573_v34 = vperm.slane %v2569_v11, %v4572_v10  ;;  %v2520_v2 = vrot.slane %v2508_v16, 4  ;;  %v2539_v62 = vperm.slane %v2533_v22, %v4583_v20 }
 0xb34   :  { %v2588_v0 = vrot.slane %v2567_v8, 4  ;;  %v2556_v42 = vperm.slane %v2552_v32, %v4572_v10  ;;  %v2558_v18 = vsel %vm398_vm8, %v2557_v23, %v2491_v30  ;;  %v2548_v43 = vrot.slane %v2543_v37, 4 }
 0xb35   :  { %v2586_v41 = vrot.slane %v2573_v34, 4  ;;  %v2521_v46 = vsel %vm398_vm8, %v2520_v2, %v2502_v38  ;;  %v2550_v50 = vrot.slane %v2531_v1, 4  ;;  %v2562_v52 = vperm.slane %v2558_v18, %v4572_v10 }
 0xb36   :  { %v2527_v57 = vperm.slane %v2521_v46, %v4583_v20  ;;  %v2544_v7 = vrot.slane %v2539_v62, 4  ;;  %v2576_v61 = vrot.slane %v2556_v42, 4  ;;  %v2589_v63 = vsel %vm398_vm8, %v2573_v34, %v2588_v0 }
 0xb37   :  { %v2549_v12 = vsel %vm398_vm8, %v2548_v43, %v2531_v1  ;;  %v2551_v40 = vsel %vm398_vm8, %v2543_v37, %v2550_v50  ;;  %v2597_v13 = vperm.slane %v2589_v63, %v4583_v20  ;;  %v2574_v16 = vrot.slane %v2562_v52, 4 }
 0xb38   :  { %3911 = vmatpush.xpose.msk.msrb.mxu1 %vm1106_vm9, %v2549_v12  ;;  %v2545_v38 = vsel %vm398_vm8, %v2544_v7, %v2527_v57  ;;  %v2546_v6 = vrot.slane %v2527_v57, 4  ;;  %v2577_v29 = vsel %vm398_vm8, %v2562_v52, %v2576_v61  ;;  %v2587_v21 = vsel %vm398_vm8, %v2586_v41, %v2567_v8 }
 0xb39   :  { %3907 = vmatpush.xpose.msk.msra.mxu2 %vm1106_vm9, %v2545_v38  ;;  %v2585_v45 = vperm.slane %v2577_v29, %v4583_v20  ;;  %v2602_v58 = vrot.slane %v2597_v13, 4  ;;  %v2575_v15 = vsel %vm398_vm8, %v2574_v16, %v2556_v42  ;;  %v2593_v56 = vperm.slane %v2587_v21, %v4583_v20 }
 0xb3a   :  { %v2547_v4 = vsel %vm398_vm8, %v2539_v62, %v2546_v6  ;;  %v2581_v49 = vperm.slane %v2575_v15, %v4583_v20  ;;  %v2337_v35 = vperm.slane %v2331_v55, %v4583_v20  ;;  %v2343_v3 = vsel %vm398_vm8, %v2342_v27, %v5367_v26 }
 0xb3b   :  { %3912 = vmatmul.msk.f32.vlgmr.msrb.gmra.mxu1 %vm1106_vm9, %v5300_v28  ;;  %3909 = vmatpush.xpose.msk.msra.mxu3 %vm1106_vm9, %v2547_v4  ;;  %v2603_v36 = vsel %vm398_vm8, %v2602_v58, %v2585_v45  ;;  %v2598_v22 = vrot.slane %v2593_v56, 4  ;;  %v2604_v32 = vrot.slane %v2585_v45, 4  ;;  %v2344_v8 = vrot.slane %v5367_v26, 4 }
 0xb3c   :  { %3908 = vmatmul.msk.f32.vlgmr.msra.gmra.mxu2 %vm1106_vm9, %v5309_v19  ;;  %v2600_v23 = vrot.slane %v2581_v49, 4  ;;  %v2349_v28 = vperm.slane %v2343_v3, %v4583_v20  ;;  %v2356_v34 = vrot.slane %v2337_v35, 4  ;;  %v2332_v39 = vrot.slane %v5390_v47, 4 }
 0xb3d   :  { %3913 = vmatpush.xpose.msk.msrb.mxu2 %vm1106_vm9, %v2551_v40  ;;  %v2599_v11 = vsel %vm398_vm8, %v2598_v22, %v2581_v49  ;;  %v2605_v27 = vsel %vm398_vm8, %v2597_v13, %v2604_v32  ;;  %v2345_v19 = vsel %vm398_vm8, %v5363_v17, %v2344_v8  ;;  %v4003_v8 = vpack.i.bf16 %v5261_v24, %v5220_v31 }
 0xb3e   :  { %3910 = vmatmul.msk.f32.vlgmr.msra.gmra.mxu3 %vm1106_vm9, %v5303_v25  ;;  %v2601_v30 = vsel %vm398_vm8, %v2593_v56, %v2600_v23  ;;  %v2354_v26 = vrot.slane %v2349_v28, 4  ;;  %v2357_v55 = vsel %vm398_vm8, %v2349_v28, %v2356_v34  ;;  %v2333_v25 = vsel %vm398_vm8, %v5370_v51, %v2332_v39 }
 0xb3f   :  { %3915 = vmatpush.xpose.msk.msrb.mxu3 %vm1106_vm9, %v2599_v11  ;;  %3917 = vmatpush.xpose.msk.msra.mxu1 %vm1106_vm9, %v2601_v30  ;;  %v2353_v0 = vperm.slane %v2345_v19, %v4583_v20  ;;  %v2341_v1 = vperm.slane %v2333_v25, %v4583_v20  ;;  %v4008_v23 = vpack.i.bf16 %v5270_v48, %v5272_v54  ;;  %v5501_v11 = vpop.permute.xlu0 %3994 }
 0xb40   :  { %v2355_v47 = vsel %vm398_vm8, %v2354_v26, %v2337_v35 }
 0xb41   :  { %3919 = vmatpush.xpose.msk.msra.mxu2 %vm1106_vm9, %v2603_v36  ;;  %v2358_v17 = vrot.slane %v2353_v0, 4  ;;  %v2360_v37 = vrot.slane %v2341_v1, 4 }
 0xb43   :  { %3921 = vmatpush.xpose.msk.msra.mxu3 %vm1106_vm9, %v2605_v27  ;;  %3918 = vmatmul.msk.f32.vlgmr.msra.gmra.mxu1 %vm1106_vm9, %v2357_v55  ;;  %v2359_v2 = vsel %vm398_vm8, %v2358_v17, %v2341_v1  ;;  %v2361_v51 = vsel %vm398_vm8, %v2353_v0, %v2360_v37 }
 0xb44   :  { %3914 = vmatmul.msk.f32.vlgmr.msrb.gmra.mxu2 %vm1106_vm9, %v5306_v60 }
 0xb46   :  { %3916 = vmatmul.msk.f32.vlgmr.msrb.gmra.mxu3 %vm1106_vm9, %v2355_v47 }
 0xb4c   :  { %3920 = vmatmul.msk.f32.vlgmr.msra.gmra.mxu2 %vm1106_vm9, %v2359_v2 }
 0xb4e   :  { %3922 = vmatmul.msk.f32.vlgmr.msra.gmra.mxu3 %vm1106_vm9, %v2361_v51 }
 0xbb8   :  { %v2925_v62 = vpop.f32.mrf.mxu1 }
 0xbb9   :  { %v3060_v42 = vmul.f32 0.35355338, %v2925_v62 }
 0xbbb   :  { %v3068_v60 = vadd.f32 %v3060_v42, %v4818_v5 }
 0xbbd   :  { %v3080_v18 = vsel %vm1106_vm9, %v3068_v60, -inf }
 0xbbe   :  { %3081 = vmax.xlane.f32.xlu1 %v3080_v18 }
 0xbbf   :  { %v2873_v41 = vpop.f32.mrf.mxu2 }
 0xbc0   :  { %v3058_v43 = vmul.f32 0.35355338, %v2873_v41  ;;  %v3003_v46 = vpop.f32.mrf.mxu1 }
 0xbc1   :  { %v2899_v50 = vpop.f32.mrf.mxu3  ;;  %v3063_v7 = vmul.f32 0.35355338, %v3003_v46 }
 0xbc2   :  { %v3059_v52 = vmul.f32 0.35355338, %v2899_v50  ;;  %v3066_v57 = vadd.f32 %v3058_v43, %v4818_v5 }
 0xbc3   :  { %v3071_v40 = vadd.f32 %v3063_v7, %v4818_v5 }
 0xbc4   :  { %v3074_v61 = vsel %vm1106_vm9, %v3066_v57, -inf  ;;  %v3067_v63 = vadd.f32 %v3059_v52, %v4818_v5 }
 0xbc5   :  { %3075 = vmax.xlane.f32.xlu0 %v3074_v61  ;;  %v3089_v29 = vsel %vm1106_vm9, %v3071_v40, -inf }
 0xbc6   :  { %v3077_v12 = vsel %vm1106_vm9, %v3067_v63, -inf }
 0xbc7   :  { %3078 = vmax.xlane.f32.xlu2 %v3077_v12  ;;  %v2951_v13 = vpop.f32.mrf.mxu2 }
 0xbc8   :  { %v3061_v16 = vmul.f32 0.35355338, %v2951_v13 }
 0xbc9   :  { %v2977_v38 = vpop.f32.mrf.mxu3 }
 0xbca   :  { %v3069_v6 = vadd.f32 %v3061_v16, %v4818_v5  ;;  %v3062_v21 = vmul.f32 0.35355338, %v2977_v38 }
 0xbcc   :  { %v3083_v45 = vsel %vm1106_vm9, %v3069_v6, -inf  ;;  %v3070_v56 = vadd.f32 %v3062_v21, %v4818_v5 }
 0xbcd   :  { %3084 = vmax.xlane.f32.xlu1 %v3083_v45  ;;  %3090 = vmax.xlane.f32.xlu0 %v3089_v29 }
 0xbce   :  { %v3086_v36 = vsel %vm1106_vm9, %v3070_v56, -inf }
 0xbcf   :  { %v3029_v58 = vpop.f32.mrf.mxu2 }
 0xbd0   :  { %v3064_v15 = vmul.f32 0.35355338, %v3029_v58 }
 0xbd1   :  { %v3055_v4 = vpop.f32.mrf.mxu3 }
 0xbd2   :  { %v3072_v49 = vadd.f32 %v3064_v15, %v4818_v5  ;;  %v3065_v35 = vmul.f32 0.35355338, %v3055_v4 }
 0xbd4   :  { %v3092_v3 = vsel %vm1106_vm9, %v3072_v49, -inf  ;;  %v3073_v22 = vadd.f32 %v3065_v35, %v4818_v5 }
 0xbd5   :  { %3093 = vmax.xlane.f32.xlu2 %v3092_v3  ;;  %3087 = vmax.xlane.f32.xlu1 %v3086_v36 }
 0xbd6   :  { %v3095_v32 = vsel %vm1106_vm9, %v3073_v22, -inf }
 0xbdd   :  { %3096 = vmax.xlane.f32.xlu2 %v3095_v32  ;;  %v3996_v32 = vunpack.i.l.bf16 %v5501_v11 }
 0xbe1   :  { %4009 = vrot.lane.b32.xlu0 %v4008_v23, %s4117_s30 }
 0xbee   :  { %3999 = vrot.lane.b32.xlu1 %v3998_v44, %s4117_s30 }
 0xbf5   :  { %4004 = vrot.lane.b32.xlu2 %v4003_v8, %s4117_s30 }
 0xc31   :  { %v3082_v5 = vpop.xlane.xlu1 %3081 }
 0xc32   :  { %v3100_v27 = vsub.f32 %v3068_v60, %v3082_v5 }
 0xc34   :  { %v3110_v28 = vmul.f32 1.442695, %v3100_v27 }
 0xc36   :  { %4063 = vpow2.f32 %v3110_v28 }
 0xc38   :  { %v3076_v30 = vpop.xlane.xlu0 %3075 }
 0xc39   :  { %v3098_v48 = vsub.f32 %v3066_v57, %v3076_v30 }
 0xc3a   :  { %v3079_v54 = vpop.xlane.xlu2 %3078 }
 0xc3b   :  { %v3106_v34 = vmul.f32 1.442695, %v3098_v48  ;;  %v3099_v39 = vsub.f32 %v3067_v63, %v3079_v54 }
 0xc3c   :  { %v5503_v19 = vpop.eup %4063 }
 0xc3d   :  { %4065 = vpow2.f32 %v3106_v34  ;;  %v3108_v59 = vmul.f32 1.442695, %v3099_v39  ;;  %v3128_v31 = vsel %vm1106_vm9, %v5503_v19, 0.0 }
 0xc3e   :  { %3129 = vadd.xlane.f32.xlu0 %v3128_v31 }
 0xc3f   :  { %4067 = vpow2.f32 %v3108_v59 }
 0xc40   :  { %v3085_v9 = vpop.xlane.xlu1 %3084  ;;  %v3091_v44 = vpop.xlane.xlu0 %3090 }
 0xc41   :  { %v3101_v24 = vsub.f32 %v3069_v6, %v3085_v9  ;;  %v3103_v26 = vsub.f32 %v3071_v40, %v3091_v44 }
 0xc43   :  { %v5507_v55 = vpop.eup %4065  ;;  %v3112_v25 = vmul.f32 1.442695, %v3101_v24  ;;  %v3116_v0 = vmul.f32 1.442695, %v3103_v26  ;;  %v2632_v26 = vrot.slane %v3996_v32, 4 }
 0xc44   :  { %v3122_v47 = vsel %vm1106_vm9, %v5507_v55, 0.0 }
 0xc45   :  { %v5511_v1 = vpop.eup %4067  ;;  %4069 = vpow2.f32 %v3112_v25  ;;  %3123 = vadd.xlane.f32.xlu1 %v3122_v47 }
 0xc46   :  { %4071 = vpow2.f32 %v3116_v0  ;;  %v3125_v17 = vsel %vm1106_vm9, %v5511_v1, 0.0 }
 0xc47   :  { %3126 = vadd.xlane.f32.xlu2 %v3125_v17 }
 0xc48   :  { %v3094_v37 = vpop.xlane.xlu2 %3093  ;;  %v3088_v2 = vpop.xlane.xlu1 %3087 }
 0xc49   :  { %v3104_v51 = vsub.f32 %v3072_v49, %v3094_v37  ;;  %v3102_v62 = vsub.f32 %v3070_v56, %v3088_v2 }
 0xc4b   :  { %v5515_v42 = vpop.eup %4069  ;;  %v3118_v60 = vmul.f32 1.442695, %v3104_v51  ;;  %v3114_v18 = vmul.f32 1.442695, %v3102_v62 }
 0xc4c   :  { %v5517_v41 = vpop.eup %4071  ;;  %v3131_v46 = vsel %vm1106_vm9, %v5515_v42, 0.0 }
 0xc4d   :  { %4073 = vpow2.f32 %v3118_v60  ;;  %v3137_v43 = vsel %vm1106_vm9, %v5517_v41, 0.0 }
 0xc4e   :  { %4075 = vpow2.f32 %v3114_v18  ;;  %3138 = vadd.xlane.f32.xlu1 %v3137_v43 }
 0xc4f   :  { %3132 = vadd.xlane.f32.xlu2 %v3131_v46 }
 0xc50   :  { %v3097_v50 = vpop.xlane.xlu2 %3096 }
 0xc51   :  { %v3105_v52 = vsub.f32 %v3073_v22, %v3097_v50  ;;  %v3997_v22 = vunpack.i.h.bf16 %v5501_v11 }
 0xc53   :  { %v5523_v57 = vpop.eup %4073  ;;  %v3120_v7 = vmul.f32 1.442695, %v3105_v52  ;;  %v4010_v61 = vpop.permute.xlu0 %4009  ;;  %v2644_v24 = vrot.slane %v3997_v22, 4 }
 0xc54   :  { %v5525_v63 = vpop.eup %4075  ;;  %v3140_v12 = vsel %vm1106_vm9, %v5523_v57, 0.0  ;;  %v4012_v40 = vunpack.i.h.bf16 %v4010_v61  ;;  %v4011_v13 = vunpack.i.l.bf16 %v4010_v61 }
 0xc55   :  { %4077 = vpow2.f32 %v3120_v7  ;;  %3141 = vadd.xlane.f32.xlu0 %v3140_v12  ;;  %v3134_v16 = vsel %vm1106_vm9, %v5525_v63, 0.0 }
 0xc56   :  { %v2698_v6 = vrot.slane %v4012_v40, 4  ;;  %v2686_v29 = vrot.slane %v4011_v13, 4 }
 0xc57   :  { %3135 = vadd.xlane.f32.xlu2 %v3134_v16 }
 0xc58   :  { %v4005_v38 = vpop.permute.xlu2 %4004 }
 0xc59   :  { %v4007_v21 = vunpack.i.h.bf16 %v4005_v38  ;;  %v4006_v45 = vunpack.i.l.bf16 %v4005_v38 }
 0xc5b   :  { %v5531_v58 = vpop.eup %4077  ;;  %v2700_v15 = vrot.slane %v4007_v21, 4  ;;  %v2687_v56 = vsel %vm398_vm8, %v2686_v29, %v4006_v45  ;;  %v2688_v4 = vrot.slane %v4006_v45, 4  ;;  %v2699_v49 = vsel %vm398_vm8, %v2698_v6, %v4007_v21 }
 0xc5c   :  { %v2693_v35 = vperm.slane %v2687_v56, %v4572_v10  ;;  %v2705_v3 = vperm.slane %v2699_v49, %v4572_v10  ;;  %v3143_v36 = vsel %vm1106_vm9, %v5531_v58, 0.0 }
 0xc5d   :  { %v2689_v23 = vsel %vm398_vm8, %v4011_v13, %v2688_v4  ;;  %v2701_v8 = vsel %vm398_vm8, %v4012_v40, %v2700_v15  ;;  %3144 = vadd.xlane.f32.xlu0 %v3143_v36 }
 0xc5e   :  { %v2697_v5 = vperm.slane %v2689_v23, %v4572_v10  ;;  %v2709_v27 = vperm.slane %v2701_v8, %v4572_v10  ;;  %v2710_v28 = vrot.slane %v2705_v3, 4  ;;  %v2712_v30 = vrot.slane %v2693_v35, 4 }
 0xc60   :  { %v2711_v48 = vsel %vm398_vm8, %v2710_v28, %v2693_v35  ;;  %v2713_v54 = vsel %vm398_vm8, %v2705_v3, %v2712_v30  ;;  %v2722_v34 = vrot.slane %v2709_v27, 4  ;;  %v2724_v39 = vrot.slane %v2697_v5, 4  ;;  %v4000_v59 = vpop.permute.xlu1 %3999 }
 0xc61   :  { %v2717_v11 = vperm.slane %v2711_v48, %v4583_v20  ;;  %v2721_v31 = vperm.slane %v2713_v54, %v4583_v20  ;;  %v4002_v9 = vunpack.i.h.bf16 %v4000_v59  ;;  %v4001_v44 = vunpack.i.l.bf16 %v4000_v59 }
 0xc62   :  { %v2723_v25 = vsel %vm398_vm8, %v2722_v34, %v2697_v5  ;;  %v2725_v0 = vsel %vm398_vm8, %v2709_v27, %v2724_v39 }
 0xc63   :  { %v2729_v47 = vperm.slane %v2723_v25, %v4583_v20  ;;  %v2733_v17 = vperm.slane %v2725_v0, %v4583_v20  ;;  %v2734_v37 = vrot.slane %v2717_v11, 4  ;;  %v2736_v2 = vrot.slane %v2721_v31, 4 }
 0xc64   :  { %v2642_v51 = vrot.slane %v4002_v9, 4  ;;  %v2630_v62 = vrot.slane %v4001_v44, 4  ;;  %v2633_v60 = vsel %vm398_vm8, %v4001_v44, %v2632_v26  ;;  %v2645_v18 = vsel %vm398_vm8, %v4002_v9, %v2644_v24 }
 0xc65   :  { %v2737_v43 = vsel %vm398_vm8, 0.0, %v2736_v2  ;;  %v2738_v46 = vrot.slane %v2729_v47, 4  ;;  %v2740_v50 = vrot.slane %v2733_v17, 4  ;;  %v2641_v52 = vperm.slane %v2633_v60, %v4572_v10 }
 0xc66   :  { %v2801_v7 = vrot.slane %v2737_v43, 4  ;;  %v2631_v61 = vsel %vm398_vm8, %v2630_v62, %v3996_v32  ;;  %v2643_v12 = vsel %vm398_vm8, %v2642_v51, %v3997_v22  ;;  %v2653_v40 = vperm.slane %v2645_v18, %v4572_v10 }
 0xc67   :  { %v2741_v13 = vsel %vm398_vm8, 0.0, %v2740_v50  ;;  %v2637_v16 = vperm.slane %v2631_v61, %v4572_v10  ;;  %v2649_v38 = vperm.slane %v2643_v12, %v4572_v10  ;;  %v2668_v6 = vrot.slane %v2641_v52, 4 }
 0xc68   :  { %v2812_v29 = vrot.slane %v2741_v13, 4  ;;  %v2666_v21 = vrot.slane %v2653_v40, 4  ;;  %v2735_v45 = vsel %vm398_vm8, 0.0, %v2734_v37  ;;  %v2739_v15 = vsel %vm398_vm8, 0.0, %v2738_v46 }
 0xc69   :  { %v2654_v56 = vrot.slane %v2649_v38, 4  ;;  %v2656_v4 = vrot.slane %v2637_v16, 4  ;;  %v2669_v49 = vsel %vm398_vm8, %v2653_v40, %v2668_v6  ;;  %v2796_v35 = vsel %vm398_vm8, %v2736_v2, %v2717_v11 }
 0xc6a   :  { %v2667_v3 = vsel %vm398_vm8, %v2666_v21, %v2641_v52  ;;  %v2677_v36 = vperm.slane %v2669_v49, %v4583_v20  ;;  %v2800_v22 = vperm.slane %v2796_v35, %v4572_v10  ;;  %v2802_v32 = vsel %vm398_vm8, %v2801_v7, %v2735_v45 }
 0xc6b   :  { %v2655_v23 = vsel %vm398_vm8, %v2654_v56, %v2637_v16  ;;  %v2657_v8 = vsel %vm398_vm8, %v2649_v38, %v2656_v4  ;;  %v2673_v5 = vperm.slane %v2667_v3, %v4583_v20  ;;  %v2806_v27 = vperm.slane %v2802_v32, %v4572_v10 }
 0xc6c   :  { %v2661_v28 = vperm.slane %v2655_v23, %v4583_v20  ;;  %v2665_v30 = vperm.slane %v2657_v8, %v4583_v20  ;;  %v2684_v48 = vrot.slane %v2677_v36, 4  ;;  %v2807_v54 = vsel %vm398_vm8, %v2740_v50, %v2729_v47 }
 0xc6d   :  { %v2682_v34 = vrot.slane %v2673_v5, 4  ;;  %v2811_v39 = vperm.slane %v2807_v54, %v4572_v10  ;;  %v2813_v59 = vsel %vm398_vm8, %v2812_v29, %v2739_v15  ;;  %v2820_v11 = vrot.slane %v2800_v22, 4 }
 0xc6e   :  { %v2678_v31 = vrot.slane %v2661_v28, 4  ;;  %v2680_v9 = vrot.slane %v2665_v30, 4  ;;  %v2685_v44 = vsel %vm398_vm8, 0.0, %v2684_v48  ;;  %v2753_v24 = vsel %vm398_vm8, %v2684_v48, %v2673_v5 }
 0xc6f   :  { %v2758_v26 = vrot.slane %v2685_v44, 4  ;;  %v2757_v25 = vperm.slane %v2753_v24, %v4572_v10  ;;  %v2817_v0 = vperm.slane %v2813_v59, %v4572_v10  ;;  %v2683_v47 = vsel %vm398_vm8, 0.0, %v2682_v34 }
 0xc70   :  { %v2681_v17 = vsel %vm398_vm8, 0.0, %v2680_v9  ;;  %v2742_v37 = vsel %vm398_vm8, %v2680_v9, %v2661_v28  ;;  %v2821_v2 = vsel %vm398_vm8, %v2806_v27, %v2820_v11  ;;  %v2679_v43 = vsel %vm398_vm8, 0.0, %v2678_v31 }
 0xc71   :  { %v2747_v51 = vrot.slane %v2681_v17, 4  ;;  %v2746_v62 = vperm.slane %v2742_v37, %v4572_v10  ;;  %v2759_v60 = vsel %vm398_vm8, %v2758_v26, %v2683_v47  ;;  %v2778_v18 = vrot.slane %v2757_v25, 4 }
 0xc72   :  { %v2763_v46 = vperm.slane %v2759_v60, %v4572_v10  ;;  %v2832_v50 = vrot.slane %v2811_v39, 4  ;;  %v2818_v52 = vrot.slane %v2806_v27, 4  ;;  %v2829_v12 = vperm.slane %v2821_v2, %v4583_v20 }
 0xc73   :  { %v2748_v7 = vsel %vm398_vm8, %v2747_v51, %v2679_v43  ;;  %v2766_v61 = vrot.slane %v2746_v62, 4  ;;  %v2830_v40 = vrot.slane %v2817_v0, 4 }
 0xc74   :  { %v2752_v13 = vperm.slane %v2748_v7, %v4572_v10  ;;  %v2779_v16 = vsel %vm398_vm8, %v2763_v46, %v2778_v18  ;;  %v2833_v38 = vsel %vm398_vm8, %v2817_v0, %v2832_v50  ;;  %v2776_v6 = vrot.slane %v2763_v46, 4 }
 0xc75   :  { %v2787_v29 = vperm.slane %v2779_v16, %v4583_v20  ;;  %v2841_v21 = vperm.slane %v2833_v38, %v4583_v20  ;;  %v2819_v45 = vsel %vm398_vm8, %v2818_v52, %v2800_v22  ;;  %v2831_v15 = vsel %vm398_vm8, %v2830_v40, %v2811_v39 }
 0xc76   :  { %v2767_v56 = vsel %vm398_vm8, %v2752_v13, %v2766_v61  ;;  %v2764_v4 = vrot.slane %v2752_v13, 4  ;;  %v2777_v49 = vsel %vm398_vm8, %v2776_v6, %v2757_v25  ;;  %v2825_v35 = vperm.slane %v2819_v45, %v4583_v20 }
 0xc77   :  { %v2775_v3 = vperm.slane %v2767_v56, %v4583_v20  ;;  %v2792_v36 = vrot.slane %v2787_v29, 4  ;;  %v2846_v32 = vrot.slane %v2841_v21, 4  ;;  %v2783_v23 = vperm.slane %v2777_v49, %v4583_v20 }
 0xc78   :  { %v2765_v8 = vsel %vm398_vm8, %v2764_v4, %v2746_v62  ;;  %v2837_v5 = vperm.slane %v2831_v15, %v4583_v20  ;;  %v2848_v30 = vrot.slane %v2829_v12, 4  ;;  %v2844_v39 = vrot.slane %v2825_v35, 4 }
 0xc79   :  { %v2793_v22 = vsel %vm398_vm8, %v2792_v36, %v2775_v3  ;;  %v2771_v27 = vperm.slane %v2765_v8, %v4583_v20  ;;  %v2788_v28 = vrot.slane %v2783_v23, 4  ;;  %v2847_v48 = vsel %vm398_vm8, %v2846_v32, %v2829_v12 }
 0xc7a   :  { %3226 = vmatpush.msrb.mxu3 %v2793_v22  ;;  %v2794_v54 = vrot.slane %v2775_v3, 4  ;;  %v2842_v34 = vrot.slane %v2837_v5, 4  ;;  %v2849_v44 = vsel %vm398_vm8, %v2841_v21, %v2848_v30  ;;  %v2845_v26 = vsel %vm398_vm8, %v2837_v5, %v2844_v39 }
 0xc7b   :  { %v2789_v59 = vsel %vm398_vm8, %v2788_v28, %v2771_v27  ;;  %v2790_v11 = vrot.slane %v2771_v27, 4 }
 0xc7c   :  { %3318 = vmatpush.msra.mxu3 %v2847_v48  ;;  %3180 = vmatpush.msrb.mxu1 %v2789_v59  ;;  %v2795_v31 = vsel %vm398_vm8, %v2787_v29, %v2794_v54  ;;  %v2843_v9 = vsel %vm398_vm8, %v2842_v34, %v2825_v35 }
 0xc7d   :  { %3249 = vmatpush.msra.mxu0 %v2795_v31  ;;  %v2791_v24 = vsel %vm398_vm8, %v2783_v23, %v2790_v11 }
 0xc7e   :  { %3272 = vmatpush.msra.mxu1 %v2843_v9  ;;  %3203 = vmatpush.msrb.mxu2 %v2791_v24 }
 0xc7f   :  { %3341 = vmatpush.msrb.mxu0 %v2849_v44 }
 0xc80   :  { %3295 = vmatpush.msra.mxu2 %v2845_v26 }
 0xcb1   :  { %v3130_v25 = vpop.xlane.xlu0 %3129 }
 0xcb2   :  { %4079 = vrcp.f32 %v3130_v25 }
 0xcb8   :  { %v4080_v0 = vpop.eup %4079  ;;  %v3124_v17 = vpop.xlane.xlu1 %3123 }
 0xcb9   :  { %v3156_v47 = vmul.f32 %v4080_v0, %v5503_v19  ;;  %4081 = vrcp.f32 %v3124_v17 }
 0xcba   :  { %v3127_v37 = vpop.xlane.xlu2 %3126 }
 0xcbb   :  { %4083 = vrcp.f32 %v3127_v37  ;;  %3925 = vmatmul.msk.f32.vlgmr.msrb.gmra.mxu3 %vm1106_vm9, %v3156_v47 }
 0xcbf   :  { %v4082_v2 = vpop.eup %4081 }
 0xcc0   :  { %v3154_v51 = vmul.f32 %v4082_v2, %v5507_v55 }
 0xcc1   :  { %v4084_v62 = vpop.eup %4083  ;;  %v3139_v60 = vpop.xlane.xlu1 %3138 }
 0xcc2   :  { %v3155_v18 = vmul.f32 %v4084_v62, %v5511_v1  ;;  %4085 = vrcp.f32 %v3139_v60  ;;  %v3133_v43 = vpop.xlane.xlu2 %3132  ;;  %3923 = vmatmul.msk.f32.vlgmr.msrb.gmra.mxu1 %vm1106_vm9, %v3154_v51 }
 0xcc3   :  { %4087 = vrcp.f32 %v3133_v43 }
 0xcc4   :  { %3924 = vmatmul.msk.f32.vlgmr.msrb.gmra.mxu2 %vm1106_vm9, %v3155_v18 }
 0xcc8   :  { %v4086_v19 = vpop.eup %4085  ;;  %v3142_v46 = vpop.xlane.xlu0 %3141 }
 0xcc9   :  { %v4088_v50 = vpop.eup %4087  ;;  %4089 = vrcp.f32 %v3142_v46  ;;  %v3159_v52 = vmul.f32 %v4086_v19, %v5517_v41 }
 0xcca   :  { %v3157_v7 = vmul.f32 %v4088_v50, %v5515_v42  ;;  %v3136_v55 = vpop.xlane.xlu2 %3135 }
 0xccb   :  { %4091 = vrcp.f32 %v3136_v55 }
 0xccc   :  { %3926 = vmatmul.msk.f32.vlgmr.msra.gmra.mxu0 %vm1106_vm9, %v3157_v7  ;;  %3928 = vmatmul.msk.f32.vlgmr.msra.gmra.mxu2 %vm1106_vm9, %v3159_v52 }
 0xccf   :  { %v4090_v1 = vpop.eup %4089 }
 0xcd0   :  { %v3160_v61 = vmul.f32 %v4090_v1, %v5523_v57  ;;  %v3145_v12 = vpop.xlane.xlu0 %3144 }
 0xcd1   :  { %v4092_v40 = vpop.eup %4091  ;;  %4093 = vrcp.f32 %v3145_v12 }
 0xcd2   :  { %v3158_v13 = vmul.f32 %v4092_v40, %v5525_v63  ;;  %3929 = vmatmul.msk.f32.vlgmr.msra.gmra.mxu3 %vm1106_vm9, %v3160_v61 }
 0xcd4   :  { %3927 = vmatmul.msk.f32.vlgmr.msra.gmra.mxu1 %vm1106_vm9, %v3158_v13 }
 0xcd7   :  { %v4094_v41 = vpop.eup %4093 }
 0xcd8   :  { %v3161_v42 = vmul.f32 %v4094_v41, %v5531_v58 }
 0xcda   :  { %3930 = vmatmul.msk.f32.vlgmr.msrb.gmra.mxu0 %vm1106_vm9, %v3161_v42 }
 0xd3e   :  { %v3228_v16 = vpop.f32.mrf.mxu3 }
 0xd3f   :  { %v3182_v38 = vpop.f32.mrf.mxu1  ;;  %v3346_v29 = vrot.slane %v3228_v16, 4 }
 0xd40   :  { %v3348_v6 = vrot.slane %v3182_v38, 4 }
 0xd41   :  { %v3347_v21 = vsel %vm398_vm8, %v3346_v29, %v3182_v38 }
 0xd42   :  { %v3349_v57 = vsel %vm398_vm8, %v3228_v16, %v3348_v6  ;;  %v3353_v56 = vperm.slane %v3347_v21, %v4572_v10 }
 0xd43   :  { %v3357_v45 = vperm.slane %v3349_v57, %v4572_v10 }
 0xd44   :  { %v3372_v32 = vrot.slane %v3353_v56, 4 }
 0xd45   :  { %v3384_v35 = vrot.slane %v3357_v45, 4 }
 0xd47   :  { %v3205_v63 = vpop.f32.mrf.mxu2 }
 0xd48   :  { %v3360_v15 = vrot.slane %v3205_v63, 4 }
 0xd49   :  { %v3251_v4 = vpop.f32.mrf.mxu0 }
 0xd4a   :  { %v3358_v49 = vrot.slane %v3251_v4, 4  ;;  %v3361_v58 = vsel %vm398_vm8, %v3251_v4, %v3360_v15 }
 0xd4b   :  { %v3369_v3 = vperm.slane %v3361_v58, %v4572_v10 }
 0xd4c   :  { %v3359_v36 = vsel %vm398_vm8, %v3358_v49, %v3205_v63 }
 0xd4d   :  { %v3365_v23 = vperm.slane %v3359_v36, %v4572_v10  ;;  %v3382_v8 = vrot.slane %v3369_v3, 4  ;;  %v3385_v5 = vsel %vm398_vm8, %v3369_v3, %v3384_v35 }
 0xd4e   :  { %v3393_v22 = vperm.slane %v3385_v5, %v4583_v20 }
 0xd4f   :  { %v3370_v27 = vrot.slane %v3365_v23, 4  ;;  %v3373_v28 = vsel %vm398_vm8, %v3365_v23, %v3372_v32  ;;  %v3383_v30 = vsel %vm398_vm8, %v3382_v8, %v3357_v45  ;;  %v3297_v24 = vpop.f32.mrf.mxu2 }
 0xd50   :  { %v3381_v48 = vperm.slane %v3373_v28, %v4583_v20  ;;  %v3389_v54 = vperm.slane %v3383_v30, %v4583_v20  ;;  %v3400_v34 = vrot.slane %v3393_v22, 4  ;;  %v3416_v62 = vrot.slane %v3297_v24, 4 }
 0xd51   :  { %v3371_v39 = vsel %vm398_vm8, %v3370_v27, %v3353_v56  ;;  %v3274_v59 = vpop.f32.mrf.mxu1 }
 0xd52   :  { %v3377_v11 = vperm.slane %v3371_v39, %v4583_v20  ;;  %v3396_v31 = vrot.slane %v3381_v48, 4  ;;  %v3398_v9 = vrot.slane %v3389_v54, 4  ;;  %v3401_v44 = vsel %vm398_vm8, 0.0, %v3400_v34 }
 0xd53   :  { %v3469_v26 = vsel %vm398_vm8, %v3400_v34, %v3389_v54  ;;  %v3474_v25 = vrot.slane %v3401_v44, 4  ;;  %v3404_v0 = vrot.slane %v3274_v59, 4 }
 0xd54   :  { %v3394_v17 = vrot.slane %v3377_v11, 4  ;;  %v3397_v47 = vsel %vm398_vm8, 0.0, %v3396_v31  ;;  %v3399_v37 = vsel %vm398_vm8, 0.0, %v3398_v9  ;;  %v3473_v2 = vperm.slane %v3469_v26, %v4572_v10 }
 0xd55   :  { %v3463_v51 = vrot.slane %v3397_v47, 4  ;;  %v3320_v60 = vpop.f32.mrf.mxu3  ;;  %v3458_v18 = vsel %vm398_vm8, %v3396_v31, %v3377_v11  ;;  %v3475_v43 = vsel %vm398_vm8, %v3474_v25, %v3399_v37 }
 0xd56   :  { %v3402_v19 = vrot.slane %v3320_v60, 4  ;;  %v3405_v46 = vsel %vm398_vm8, %v3320_v60, %v3404_v0  ;;  %v3395_v50 = vsel %vm398_vm8, 0.0, %v3394_v17  ;;  %v3462_v52 = vperm.slane %v3458_v18, %v4572_v10 }
 0xd57   :  { %v3413_v7 = vperm.slane %v3405_v46, %v4572_v10  ;;  %v3343_v55 = vpop.f32.mrf.mxu0  ;;  %v3464_v1 = vsel %vm398_vm8, %v3463_v51, %v3395_v50  ;;  %v3479_v61 = vperm.slane %v3475_v43, %v4572_v10  ;;  %v3494_v12 = vrot.slane %v3473_v2, 4 }
 0xd58   :  { %v3403_v40 = vsel %vm398_vm8, %v3402_v19, %v3274_v59  ;;  %v3414_v13 = vrot.slane %v3343_v55, 4  ;;  %v3417_v41 = vsel %vm398_vm8, %v3343_v55, %v3416_v62  ;;  %v3468_v42 = vperm.slane %v3464_v1, %v4572_v10 }
 0xd59   :  { %v3409_v16 = vperm.slane %v3403_v40, %v4572_v10  ;;  %v3440_v38 = vrot.slane %v3413_v7, 4  ;;  %v3425_v6 = vperm.slane %v3417_v41, %v4572_v10  ;;  %v3482_v29 = vrot.slane %v3462_v52, 4 }
 0xd5a   :  { %v3415_v57 = vsel %vm398_vm8, %v3414_v13, %v3297_v24  ;;  %v3495_v21 = vsel %vm398_vm8, %v3479_v61, %v3494_v12  ;;  %v3480_v45 = vrot.slane %v3468_v42, 4  ;;  %v3492_v63 = vrot.slane %v3479_v61, 4 }
 0xd5b   :  { %v3428_v15 = vrot.slane %v3409_v16, 4  ;;  %v3421_v56 = vperm.slane %v3415_v57, %v4572_v10  ;;  %v3438_v4 = vrot.slane %v3425_v6, 4  ;;  %v3441_v49 = vsel %vm398_vm8, %v3425_v6, %v3440_v38 }
 0xd5c   :  { %v3449_v58 = vperm.slane %v3441_v49, %v4583_v20  ;;  %v3483_v35 = vsel %vm398_vm8, %v3468_v42, %v3482_v29  ;;  %v3503_v3 = vperm.slane %v3495_v21, %v4583_v20  ;;  %v3481_v36 = vsel %vm398_vm8, %v3480_v45, %v3462_v52 }
 0xd5d   :  { %v3426_v32 = vrot.slane %v3421_v56, 4  ;;  %v3429_v23 = vsel %vm398_vm8, %v3421_v56, %v3428_v15  ;;  %v3439_v8 = vsel %vm398_vm8, %v3438_v4, %v3413_v7  ;;  %v3491_v5 = vperm.slane %v3483_v35, %v4583_v20  ;;  %v3933_v35 = vld [vmem:[%s5867_s4 + $0x30] sm:$0xff] }
 0xd5e   :  { %v3437_v22 = vperm.slane %v3429_v23, %v4583_v20  ;;  %v3445_v27 = vperm.slane %v3439_v8, %v4583_v20  ;;  %v3456_v28 = vrot.slane %v3449_v58, 4  ;;  %v3508_v30 = vrot.slane %v3503_v3, 4 }
 0xd5f   :  { %v3427_v48 = vsel %vm398_vm8, %v3426_v32, %v3409_v16  ;;  %v3510_v54 = vrot.slane %v3491_v5, 4  ;;  %v3487_v34 = vperm.slane %v3481_v36, %v4583_v20  ;;  %v3493_v39 = vsel %vm398_vm8, %v3492_v63, %v3473_v2  ;;  %v3931_v36 = vld [vmem:[%s5867_s4 + $0x20] sm:$0xff] }
 0xd60   :  { %v3433_v59 = vperm.slane %v3427_v48, %v4583_v20  ;;  %v3452_v11 = vrot.slane %v3437_v22, 4  ;;  %v3454_v31 = vrot.slane %v3445_v27, 4  ;;  %v3457_v9 = vsel %vm398_vm8, 0.0, %v3456_v28 }
 0xd61   :  { %v3523_v44 = vsel %vm398_vm8, %v3456_v28, %v3445_v27  ;;  %v3528_v24 = vrot.slane %v3457_v9, 4  ;;  %v3509_v26 = vsel %vm398_vm8, %v3508_v30, %v3491_v5  ;;  %v3511_v25 = vsel %vm398_vm8, %v3503_v3, %v3510_v54  ;;  %v3932_v3 = vld [vmem:[%s5867_s4 + $0x28] sm:$0xff] }
 0xd62   :  { %v3450_v0 = vrot.slane %v3433_v59, 4  ;;  %v3453_v17 = vsel %vm398_vm8, 0.0, %v3452_v11  ;;  %v3455_v47 = vsel %vm398_vm8, 0.0, %v3454_v31  ;;  %v3527_v37 = vperm.slane %v3523_v44, %v4572_v10  ;;  %3576 = vrot.lane.b32.xlu2 %v3509_v26, %s4118_s10  ;;  %3584 = vrot.lane.b32.xlu0 %v3511_v25, %s4119_s11 }
 0xd63   :  { %v3517_v2 = vrot.slane %v3453_v17, 4  ;;  %v3499_v51 = vperm.slane %v3493_v39, %v4583_v20  ;;  %v3506_v62 = vrot.slane %v3487_v34, 4  ;;  %v3512_v60 = vsel %vm398_vm8, %v3452_v11, %v3433_v59  ;;  %v5742_v59 = vld [vmem:[%s5866_s7 + $0x8] sm:$0xff] }
 0xd64   :  { %v3451_v18 = vsel %vm398_vm8, 0.0, %v3450_v0  ;;  %v3516_v43 = vperm.slane %v3512_v60, %v4572_v10  ;;  %v3529_v19 = vsel %vm398_vm8, %v3528_v24, %v3455_v47  ;;  %v3548_v46 = vrot.slane %v3527_v37, 4 }
 0xd65   :  { %v3504_v50 = vrot.slane %v3499_v51, 4  ;;  %v3507_v52 = vsel %vm398_vm8, %v3499_v51, %v3506_v62  ;;  %v3518_v7 = vsel %vm398_vm8, %v3517_v2, %v3451_v18  ;;  %v3533_v55 = vperm.slane %v3529_v19, %v4572_v10  ;;  %v3940_v19 = vld [vmem:[%s5868_s5 + $0x38] sm:$0xff] }
 0xd66   :  { %3568 = vrot.lane.b32.xlu1 %v3507_v52, %s4120_s12  ;;  %v3522_v1 = vperm.slane %v3518_v7, %v4572_v10  ;;  %v3536_v61 = vrot.slane %v3516_v43, 4  ;;  %v3601_v11 = vperm.slane %v5742_v59, 4  ;;  %3707 = vmatpush.msrb.mxu2 %v3940_v19  ;;  %v3937_v7 = vld [vmem:[%s5868_s5 + $0x20] sm:$0xff] }
 0xd67   :  { %v3549_v12 = vsel %vm398_vm8, %v3533_v55, %v3548_v46  ;;  %v3546_v40 = vrot.slane %v3533_v55, 4  ;;  %v3505_v13 = vsel %vm398_vm8, %v3504_v50, %v3487_v34  ;;  %v3939_v46 = vld [vmem:[%s5868_s5 + $0x30] sm:$0xff]  ;;  %v3938_v50 = vld [vmem:[%s5868_s5 + $0x28] sm:$0xff] }
 0xd68   :  { %v3537_v41 = vsel %vm398_vm8, %v3522_v1, %v3536_v61  ;;  %v3557_v42 = vperm.slane %v3549_v12, %v4583_v20  ;;  %v3534_v16 = vrot.slane %v3522_v1, 4  ;;  %3708 = vmatpush.msrb.mxu2 %v3939_v46  ;;  %v3958_v61 = vld [vmem:[%s5869_s6 + $0xf8] sm:$0xff]  ;;  %v3957_v12 = vld [vmem:[%s5869_s6 + $0xf0] sm:$0xff] }
 0xd69   :  { %v3545_v38 = vperm.slane %v3537_v41, %v4583_v20  ;;  %v3547_v6 = vsel %vm398_vm8, %v3546_v40, %v3527_v37  ;;  %3754 = vmatpush.msrb.mxu3 %v3958_v61  ;;  %v3956_v40 = vld [vmem:[%s5869_s6 + $0xe8] sm:$0xff] }
 0xd6a   :  { %v3562_v29 = vrot.slane %v3557_v42, 4  ;;  %v3535_v57 = vsel %vm398_vm8, %v3534_v16, %v3516_v43  ;;  %v3553_v10 = vperm.slane %v3547_v6, %v4583_v20  ;;  %3709 = vmatpush.msrb.mxu2 %v3938_v50 }
 0xd6b   :  { %v3564_v21 = vrot.slane %v3545_v38, 4  ;;  %v3541_v45 = vperm.slane %v3535_v57, %v4583_v20  ;;  %v3934_v20 = vld [vmem:[%s5867_s4 + $0x38] sm:$0xff]  ;;  %3755 = vmatpush.msrb.mxu3 %v3957_v12 }
 0xd6c   :  { %v3563_v63 = vsel %vm398_vm8, %v3562_v29, %v3545_v38  ;;  %v3558_v15 = vrot.slane %v3553_v10, 4  ;;  %3620 = vmatpush.msrb.mxu1 %v3934_v20  ;;  %3710 = vmatpush.msrb.mxu2 %v3937_v7 }
 0xd6d   :  { %3578 = vrot.lane.b32.xlu0 %v3563_v63, %s4118_s10  ;;  %v3565_v56 = vsel %vm398_vm8, %v3557_v42, %v3564_v21  ;;  %v3560_v4 = vrot.slane %v3541_v45, 4  ;;  %3756 = vmatpush.msrb.mxu3 %v3956_v40 }
 0xd6e   :  { %3586 = vrot.lane.b32.xlu2 %v3565_v56, %s4119_s11  ;;  %v3559_v49 = vsel %vm398_vm8, %v3558_v15, %v3541_v45  ;;  %3621 = vmatpush.msrb.mxu1 %v3933_v35  ;;  %v3677_v45 = vperm.slane %v5742_v59, 2 }
 0xd6f   :  { %v3561_v58 = vsel %vm398_vm8, %v3553_v10, %v3560_v4  ;;  %v3680_v4 = vperm.slane %v5742_v59, 3 }
 0xd70   :  { %3570 = vrot.lane.b32.xlu1 %v3561_v58, %s4120_s12  ;;  %3622 = vmatpush.msrb.mxu1 %v3932_v3 }
 0xd72   :  { %3623 = vmatpush.msrb.mxu1 %v3931_v36 }
 0xdbc   :  { %v3577_v23 = vpop.permute.xlu2 %3576 }
 0xdc8   :  { %v3587_v54 = vpop.permute.xlu2 %3586 }
 0xdd4   :  { %v3585_v5 = vpop.permute.xlu0 %3584 }
 0xdd8   :  { %v3569_v32 = vpop.permute.xlu1 %3568 }
 0xdd9   :  { %v3590_v8 = vsel %vm1106_vm9, %v3505_v13, %v3569_v32 }
 0xdda   :  { %v3592_v22 = vsel %vm1849_vm11, %v3590_v8, %v3577_v23 }
 0xddb   :  { %v3594_v27 = vsel %vm1852_vm12, %v3592_v22, %v3585_v5  ;;  %v3955_v22 = vld [vmem:[%s5869_s6 + $0xe0] sm:$0xff] }
 0xddc   :  { %3935 = vmatmul.msk.f32.vlgmr.msrb.gmra.mxu1 %vm285_vm0, %v3594_v27  ;;  %3757 = vmatpush.msrb.mxu3 %v3955_v22  ;;  %v3954_v27 = vld [vmem:[%s5869_s6 + $0xd8] sm:$0xff] }
 0xdde   :  { %3758 = vmatpush.msrb.mxu3 %v3954_v27 }
 0xddf   :  { %v3579_v30 = vpop.permute.xlu0 %3578 }
 0xde2   :  { %v3571_v28 = vpop.permute.xlu1 %3570 }
 0xde3   :  { %v3591_v48 = vsel %vm1106_vm9, %v3559_v49, %v3571_v28  ;;  %v3953_v28 = vld [vmem:[%s5869_s6 + $0xd0] sm:$0xff] }
 0xde4   :  { %v3593_v34 = vsel %vm1849_vm11, %v3591_v48, %v3579_v30  ;;  %3759 = vmatpush.msrb.mxu3 %v3953_v28  ;;  %v3952_v30 = vld [vmem:[%s5869_s6 + $0xc8] sm:$0xff]  ;;  %v3951_v48 = vld [vmem:[%s5869_s6 + $0xc0] sm:$0xff] }
 0xde5   :  { %v3595_v39 = vsel %vm1852_vm12, %v3593_v34, %v3587_v54  ;;  %v3950_v54 = vld [vmem:[%s5869_s6 + $0xb8] sm:$0xff]  ;;  %v3949_v34 = vld [vmem:[%s5869_s6 + $0xb0] sm:$0xff] }
 0xde6   :  { %3936 = vmatmul.msk.f32.gmra.mxu1 %vm285_vm0, %v3595_v39  ;;  %3760 = vmatpush.msrb.mxu3 %v3952_v30  ;;  %v3948_v39 = vld [vmem:[%s5869_s6 + $0xa8] sm:$0xff] }
 0xde8   :  { %3761 = vmatpush.msrb.mxu3 %v3951_v48 }
 0xdea   :  { %3762 = vmatpush.msrb.mxu3 %v3950_v54 }
 0xdec   :  { %3763 = vmatpush.msrb.mxu3 %v3949_v34 }
 0xdee   :  { %3764 = vmatpush.msrb.mxu3 %v3948_v39  ;;  %v3783_v39 = vld [vmem:[%s5870_s8 + $0x20] sm:$0xff] }
 0xe59   :  { %v3625_v31 = vpop.f32.mrf.mxu1 }
 0xe5a   :  { %v3626_v9 = vadd.f32 %v3625_v31, %v3601_v11  ;;  %v3946_v31 = vld [vmem:[%s5869_s6 + $0x98] sm:$0xff] }
 0xe5c   :  { %v5746_v44 = vadd.f32 %v3626_v9, %v5178_v53  ;;  %v3945_v9 = vld [vmem:[%s5869_s6 + $0x90] sm:$0xff] }
 0xe5e   :  { %v3633_v24 = vsel %vm285_vm0, %v5746_v44, 0.0 }
 0xe5f   :  { %3634 = vadd.xlane.f32.xlu1 %v3633_v24  ;;  %v3944_v24 = vld [vmem:[%s5869_s6 + $0x88] sm:$0xff] }
 0xe63   :  { %v3628_v26 = vpop.f32.mrf.mxu1 }
 0xe64   :  { %v3629_v25 = vadd.f32 %v3628_v26, %v3601_v11  ;;  %v3947_v11 = vld [vmem:[%s5869_s6 + $0xa0] sm:$0xff] }
 0xe65   :  { %3765 = vmatpush.msrb.mxu3 %v3947_v11  ;;  %v3943_v26 = vld [vmem:[%s5869_s6 + $0x80] sm:$0xff] }
 0xe66   :  { %v5751_v0 = vadd.f32 %v3629_v25, %v5183_v33  ;;  %v3688_v25 = vperm.slane %v5742_v59, 7 }
 0xe67   :  { %3766 = vmatpush.msrb.mxu3 %v3946_v31 }
 0xe68   :  { %v3636_v17 = vsel %vm285_vm0, %v5751_v0, 0.0 }
 0xe69   :  { %3637 = vadd.xlane.f32.xlu0 %v3636_v17  ;;  %3767 = vmatpush.msrb.mxu3 %v3945_v9  ;;  %v3828_v9 = vperm.slane %v3783_v39, 1 }
 0xe6b   :  { %3768 = vmatpush.msrb.mxu3 %v3944_v24 }
 0xe6d   :  { %3769 = vmatpush.msrb.mxu3 %v3943_v26 }
 0xed2   :  { %v3635_v47 = vpop.xlane.xlu1 %3634 }
 0xed3   :  { %v3639_v37 = vmul.f32 %v3635_v47, %v4509_v14 }
 0xed5   :  { %v3641_v2 = vsub.f32 %v5746_v44, %v3639_v37 }
 0xed7   :  { %v3643_v53 = vmul.f32 %v3641_v2, %v3641_v2 }
 0xed9   :  { %v3645_v51 = vsel %vm285_vm0, %v3643_v53, 0.0 }
 0xeda   :  { %3646 = vadd.xlane.f32.xlu2 %v3645_v51 }
 0xedc   :  { %v3638_v62 = vpop.xlane.xlu0 %3637 }
 0xedd   :  { %v3640_v60 = vmul.f32 %v3638_v62, %v4509_v14 }
 0xedf   :  { %v3642_v18 = vsub.f32 %v5751_v0, %v3640_v60 }
 0xee1   :  { %v3644_v33 = vmul.f32 %v3642_v18, %v3642_v18 }
 0xee3   :  { %v3648_v43 = vsel %vm285_vm0, %v3644_v33, 0.0 }
 0xee4   :  { %3649 = vadd.xlane.f32.xlu1 %v3648_v43 }
 0xf4d   :  { %v3647_v52 = vpop.xlane.xlu2 %3646 }
 0xf4e   :  { %v3651_v55 = vmul.f32 %v3647_v52, %v4509_v14 }
 0xf50   :  { %v3653_v1 = vadd.f32 1e-06, %v3651_v55 }
 0xf52   :  { %4095 = vrsqrt.f32 %v3653_v1  ;;  %vm3661_vm9 = vweird.f32 %v3653_v1 }
 0xf57   :  { %v3650_v13 = vpop.xlane.xlu1 %3649 }
 0xf58   :  { %v4096_v41 = vpop.eup %4095  ;;  %v3652_v42 = vmul.f32 %v3650_v13, %v4509_v14 }
 0xf59   :  { %v3656_v16 = vmul.f32 %v4096_v41, %v3653_v1  ;;  %vm3662_vm8 = vweird.f32 %v4096_v41 }
 0xf5a   :  { %v3654_v38 = vadd.f32 1e-06, %v3652_v42  ;;  %vm3663_vm11 = vmor %vm3661_vm9, %vm3662_vm8 }
 0xf5b   :  { %v3657_v6 = vmul.f32 %v4096_v41, %v3656_v16 }
 0xf5c   :  { %4097 = vrsqrt.f32 %v3654_v38  ;;  %vm3671_vm14 = vweird.f32 %v3654_v38 }
 0xf5d   :  { %v3658_v29 = vmul.f32 0.5, %v3657_v6 }
 0xf5f   :  { %v3659_v57 = vsub.f32 1.5, %v3658_v29 }
 0xf61   :  { %v3660_v10 = vmul.f32 %v4096_v41, %v3659_v57 }
 0xf62   :  { %v4098_v21 = vpop.eup %4097 }
 0xf63   :  { %v3664_v63 = vsel %vm3663_vm11, %v4096_v41, %v3660_v10  ;;  %v3666_v15 = vmul.f32 %v4098_v21, %v3654_v38  ;;  %vm3672_vm12 = vweird.f32 %v4098_v21  ;;  %v3753_v41 = vperm.slane %v5742_v59, 5 }
 0xf64   :  { %v3675_v56 = vmul.f32 %v3664_v63, %v3641_v2  ;;  %vm3673_vm15 = vmor %vm3671_vm14, %vm3672_vm12 }
 0xf65   :  { %v3667_v49 = vmul.f32 %v4098_v21, %v3666_v15 }
 0xf66   :  { %v3678_v58 = vmul.f32 %v3677_v45, %v3675_v56 }
 0xf67   :  { %v3668_v20 = vmul.f32 0.5, %v3667_v49 }
 0xf68   :  { %v3681_v35 = vadd.f32 %v3680_v4, %v3678_v58 }
 0xf69   :  { %v3669_v3 = vsub.f32 1.5, %v3668_v20 }
 0xf6a   :  { %3941 = vmatmul.msk.f32.vlgmr.msrb.gmra.mxu2 %vm285_vm0, %v3681_v35  ;;  %v3781_v35 = vld [vmem:[%s5870_s8 + $0x10] sm:$0xff] }
 0xf6b   :  { %v3670_v36 = vmul.f32 %v4098_v21, %v3669_v3  ;;  %v3780_v3 = vld [vmem:[%s5870_s8 + $0x8] sm:$0xff] }
 0xf6d   :  { %v3674_v32 = vsel %vm3673_vm15, %v4098_v21, %v3670_v36 }
 0xf6e   :  { %v3676_v23 = vmul.f32 %v3674_v32, %v3642_v18  ;;  %v3779_v32 = vld [vmem:[%s5870_s8] sm:$0xff] }
 0xf70   :  { %v3679_v8 = vmul.f32 %v3677_v45, %v3676_v23 }
 0xf72   :  { %v3682_v5 = vadd.f32 %v3680_v4, %v3679_v8 }
 0xf74   :  { %3942 = vmatmul.msk.f32.gmra.mxu2 %vm285_vm0, %v3682_v5 }
 0xfed   :  { %v3712_v17 = vpop.f32.mrf.mxu2 }
 0xfee   :  { %v3713_v47 = vadd.f32 %v3712_v17, %v3688_v25 }
 0xff0   :  { %v3718_v37 = vmul.f32 %v3713_v47, %v3713_v47 }
 0xff2   :  { %v3720_v2 = vmul.f32 %v3718_v37, %v3713_v47 }
 0xff4   :  { %v3722_v53 = vmul.f32 0.044715, %v3720_v2 }
 0xff6   :  { %v3724_v51 = vadd.f32 %v3722_v53, %v3713_v47 }
 0xff7   :  { %v3715_v62 = vpop.f32.mrf.mxu2 }
 0xff8   :  { %v3726_v60 = vmul.f32 0.7978846, %v3724_v51  ;;  %v3716_v18 = vadd.f32 %v3715_v62, %v3688_v25 }
 0xffa   :  { %4099 = vtanh.f32 %v3726_v60  ;;  %v3719_v33 = vmul.f32 %v3716_v18, %v3716_v18 }
 0xffc   :  { %v3721_v43 = vmul.f32 %v3719_v33, %v3716_v18 }
 0xffe   :  { %v3723_v19 = vmul.f32 0.044715, %v3721_v43  ;;  %v3834_v43 = vperm.slane %v3783_v39, 0 }
0x1000   :  { %v4100_v46 = vpop.eup %4099  ;;  %v3725_v50 = vadd.f32 %v3723_v19, %v3716_v18 }
0x1001   :  { %v3730_v52 = vadd.f32 1.0, %v4100_v46 }
0x1002   :  { %v3727_v7 = vmul.f32 0.7978846, %v3725_v50 }
0x1003   :  { %v3732_v55 = vmul.f32 0.5, %v3730_v52 }
0x1004   :  { %4101 = vtanh.f32 %v3727_v7 }
0x1005   :  { %v3734_v1 = vmul.f32 %v3732_v55, %v3713_v47 }
0x1007   :  { %3770 = vmatmul.f32.vlgmr.msrb.gmra.mxu3 %v3734_v1 }
0x100a   :  { %v4102_v61 = vpop.eup %4101 }
0x100b   :  { %v3731_v12 = vadd.f32 1.0, %v4102_v61 }
0x100d   :  { %v3733_v40 = vmul.f32 0.5, %v3731_v12 }
0x100f   :  { %v3735_v13 = vmul.f32 %v3733_v40, %v3716_v18 }
0x1011   :  { %3773 = vmatmul.f32.gmra.mxu3 %v3735_v13 }
0x108a   :  { %v3771_v42 = vpop.f32.mrf.mxu3 }
0x108b   :  { %v3772_v16 = vadd.f32 %v3771_v42, %v3753_v41 }
0x108d   :  { %v3777_v38 = vadd.f32 %v3772_v16, %v5746_v44 }
0x108f   :  { %v3784_v6 = vsel %vm285_vm0, %v3777_v38, 0.0 }
0x1090   :  { %3785 = vadd.xlane.f32.xlu0 %v3784_v6 }
0x1094   :  { %v3774_v29 = vpop.f32.mrf.mxu3 }
0x1095   :  { %v3775_v57 = vadd.f32 %v3774_v29, %v3753_v41 }
0x1097   :  { %v3778_v10 = vadd.f32 %v3775_v57, %v5751_v0  ;;  %v3782_v0 = vld [vmem:[%s5870_s8 + $0x18] sm:$0xff] }
0x1098   :  { %3853 = vmatpush.msra.mxu0 %v3782_v0 }
0x1099   :  { %v3787_v21 = vsel %vm285_vm0, %v3778_v10, 0.0 }
0x109a   :  { %3788 = vadd.xlane.f32.xlu2 %v3787_v21  ;;  %3854 = vmatpush.msra.mxu0 %v3781_v35 }
0x109c   :  { %3855 = vmatpush.msra.mxu0 %v3780_v3 }
0x109e   :  { %3856 = vmatpush.msra.mxu0 %v3779_v32 }
0x1103   :  { %v3786_v45 = vpop.xlane.xlu0 %3785 }
0x1104   :  { %v3790_v63 = vmul.f32 %v3786_v45, %v4509_v14 }
0x1106   :  { %v3792_v15 = vsub.f32 %v3777_v38, %v3790_v63 }
0x1108   :  { %v3794_v56 = vmul.f32 %v3792_v15, %v3792_v15 }
0x110a   :  { %v3796_v59 = vsel %vm285_vm0, %v3794_v56, 0.0 }
0x110b   :  { %3797 = vadd.xlane.f32.xlu1 %v3796_v59 }
0x110d   :  { %v3789_v4 = vpop.xlane.xlu2 %3788 }
0x110e   :  { %v3791_v44 = vmul.f32 %v3789_v4, %v4509_v14 }
0x1110   :  { %v3793_v49 = vsub.f32 %v3778_v10, %v3791_v44 }
0x1112   :  { %v3795_v58 = vmul.f32 %v3793_v49, %v3793_v49 }
0x1114   :  { %v3799_v20 = vsel %vm285_vm0, %v3795_v58, 0.0 }
0x1115   :  { %3800 = vadd.xlane.f32.xlu0 %v3799_v20 }
0x117e   :  { %v3798_v36 = vpop.xlane.xlu1 %3797 }
0x117f   :  { %v3802_v23 = vmul.f32 %v3798_v36, %v4509_v14 }
0x1181   :  { %v3804_v8 = vadd.f32 1e-06, %v3802_v23 }
0x1183   :  { %4103 = vrsqrt.f32 %v3804_v8  ;;  %vm3812_vm2 = vweird.f32 %v3804_v8 }
0x1188   :  { %v3801_v5 = vpop.xlane.xlu0 %3800 }
0x1189   :  { %v4104_v22 = vpop.eup %4103  ;;  %v3803_v27 = vmul.f32 %v3801_v5, %v4509_v14  ;;  %v3831_v14 = vperm.slane %v3783_v39, 2 }
0x118a   :  { %v3807_v28 = vmul.f32 %v4104_v22, %v3804_v8  ;;  %vm3813_vm1 = vweird.f32 %v4104_v22 }
0x118b   :  { %v3805_v30 = vadd.f32 1e-06, %v3803_v27  ;;  %vm3814_vm3 = vmor %vm3812_vm2, %vm3813_vm1 }
0x118c   :  { %v3808_v48 = vmul.f32 %v4104_v22, %v3807_v28 }
0x118d   :  { %4105 = vrsqrt.f32 %v3805_v30  ;;  %vm3822_vm5 = vweird.f32 %v3805_v30 }
0x118e   :  { %v3809_v54 = vmul.f32 0.5, %v3808_v48 }
0x1190   :  { %v3810_v34 = vsub.f32 1.5, %v3809_v54 }
0x1192   :  { %v3811_v11 = vmul.f32 %v4104_v22, %v3810_v34 }
0x1193   :  { %v4106_v31 = vpop.eup %4105 }
0x1194   :  { %v3815_v24 = vsel %vm3814_vm3, %v4104_v22, %v3811_v11  ;;  %v3817_v26 = vmul.f32 %v4106_v31, %v3805_v30  ;;  %vm3823_vm4 = vweird.f32 %v4106_v31 }
0x1195   :  { %v3826_v25 = vmul.f32 %v3815_v24, %v3792_v15  ;;  %vm3824_vm6 = vmor %vm3822_vm5, %vm3823_vm4 }
0x1196   :  { %v3818_v17 = vmul.f32 %v4106_v31, %v3817_v26 }
0x1197   :  { %v3829_v47 = vmul.f32 %v3828_v9, %v3826_v25 }
0x1198   :  { %v3819_v37 = vmul.f32 0.5, %v3818_v17 }
0x1199   :  { %v3832_v2 = vadd.f32 %v3831_v14, %v3829_v47 }
0x119a   :  { %v3820_v53 = vsub.f32 1.5, %v3819_v37 }
0x119b   :  { %3959 = vmatmul.msk.f32.vlgmr.msra.gmra.mxu0 %vm285_vm0, %v3832_v2 }
0x119c   :  { %v3821_v51 = vmul.f32 %v4106_v31, %v3820_v53 }
0x119e   :  { %v3825_v62 = vsel %vm3824_vm6, %v4106_v31, %v3821_v51 }
0x119f   :  { %v3827_v60 = vmul.f32 %v3825_v62, %v3793_v49 }
0x11a1   :  { %v3830_v18 = vmul.f32 %v3828_v9, %v3827_v60 }
0x11a3   :  { %v3833_v33 = vadd.f32 %v3831_v14, %v3830_v18 }
0x11a5   :  { %3960 = vmatmul.msk.f32.gmra.mxu0 %vm285_vm0, %v3833_v33 }
0x1218   :  { %v3858_v19 = vpop.f32.mrf.mxu0 }
0x1219   :  { %v3859_v46 = vadd.f32 %v3858_v19, %v3834_v43 }
0x121b   :  { %3864 = vst [vmem:[%s5871_s9] sm:$0xff] %v3859_v46 }
0x1222   :  { %v3861_v50 = vpop.f32.mrf.mxu0 }
0x1223   :  { %v3862_v52 = vadd.f32 %v3861_v50, %v3834_v43 }
0x1225   :  { %3865 = vst [vmem:[%s5871_s9 + $0x8] sm:$0xff] %v3862_v52 }

</bundles_post_ra>
